<compile_context>
chip_gen: v7x
topology: tpu7x:2x2x1
jax: 0.10.0
libtpu: 0.0.40
codegen_flags: <defaults>
</compile_context>

<pallas_src>
import functools

import jax
import jax.numpy as jnp
from jax.experimental import pallas as pl
from jax.experimental.pallas import tpu as pltpu


# ---------------------------------------------------------------------------
# Fused kernel: (per-image) GEMM -> phase col2im gather -> +shift -> ReLU
# ---------------------------------------------------------------------------
def _fused_decoder_kernel(x_ref, w_ref, shift_ref, o_ref, *, H, W, Cout, k, s, p, pad_t):
    # x_ref    : (Hp*W, Cin)      zero-padded (rows) NHWC input, flattened per image
    # w_ref    : (Cin, k*k*Cout)  ConvTranspose2d weights, BN scale folded into columns
    # shift_ref: (1, Cout)        beta + (bias - running_mean) * scale
    # o_ref    : (s, s, H*W, Cout) phase-major output: o[ph, pw, q*W+r, co] -> pixel (s*q+ph, s*r+pw)
    HW = H * W

    # One lane-dense MXU GEMM: every (kh, kw, co) tap for every (padded) input pixel.
    t = jnp.dot(x_ref[...], w_ref[...], preferred_element_type=jnp.float32)  # (Hp*W, k*k*Cout)
    shift = shift_ref[...]                                                    # (1, Cout)

    # Width-boundary masks (the flat row slice wraps across image rows for dw != 0).
    r_idx = jax.lax.broadcasted_iota(jnp.int32, (HW, 1), 0) % W
    masks = {}

    def keep_mask(dw):
        if dw == 0:
            return None
        if dw not in masks:
            masks[dw] = (r_idx >= max(dw, 0)) & (r_idx < W + min(dw, 0))
        return masks[dw]

    # Stride-phase col2im: output phase (ph, pw) only needs taps kh ≡ ph+p (mod s), kw ≡ pw+p (mod s).
    for ph in range(s):
        for pw in range(s):
            acc = jnp.zeros((HW, Cout), jnp.float32)
            for kh in range(k):
                if (kh - ph - p) % s:
                    continue
                dh = (kh - ph - p) // s          # source row offset: ih = q - dh (padded by pad_t rows)
                for kw in range(k):
                    if (kw - pw - p) % s:
                        continue
                    dw = (kw - pw - p) // s      # source col offset: iw = r - dw
                    start = (pad_t - dh) * W - dw
                    c0 = (kh * k + kw) * Cout
                    contrib = t[start:start + HW, c0:c0 + Cout]   # static slice (gather, no scatter)
                    m = keep_mask(dw)
                    if m is not None:
                        contrib = jnp.where(m, contrib, 0.0)
                    acc = acc + contrib
            o_ref[ph, pw] = jnp.maximum(acc + shift, 0.0).astype(o_ref.dtype)


# ---------------------------------------------------------------------------
# DecoderBlock forward (Pallas-backed)
# ---------------------------------------------------------------------------
def decoder_block_forward(x, x_skip, params, *, stride, padding, skip_connection,
                          matmul_dtype=jnp.bfloat16, out_dtype=jnp.float32):
    """x, x_skip: NCHW float32. Returns NCHW `out_dtype`."""
    w_t = params["w"]          # (Cin_total, Cout, k, k) -- PyTorch ConvTranspose2d layout
    bias = params["b"]
    gamma, beta = params["gamma"], params["beta"]
    r_mean, r_var, eps = params["running_mean"], params["running_var"], params["eps"]

    if skip_connection:
        x = jnp.concatenate([x, x_skip], axis=1)      # channel concat (dim=1, NCHW)

    N, Cin, H, W = x.shape
    Cin_w, Cout, k, _ = w_t.shape
    assert Cin_w == Cin
    s, p = stride, padding
    # Fused path covers the standard learned-upsample configuration (H_out == s*H).
    assert k >= s and 2 * p == k - s, "fused Pallas path requires k >= stride and 2*padding == k - stride"

    # Fold eval-mode BatchNorm: scale into weight columns, (bias - mean)*scale + beta into a shift.
    scale = gamma / jnp.sqrt(r_var + eps)                             # (Cout,)
    shift = (beta + (bias - r_mean) * scale).reshape(1, Cout).astype(jnp.float32)
    w2d = (w_t * scale[None, :, None, None]).transpose(0, 2, 3, 1).reshape(Cin, k * k * Cout)

    # Tap row/col offsets for the phase decomposition -> zero-pad margins (plus 1 guard row per side
    # so the flat width-shifted slices never leave the array).
    offs = sorted({(kh - ph - p) // s for ph in range(s) for kh in range(k) if (kh - ph - p) % s == 0})
    dmin, dmax = offs[0], offs[-1]
    pad_t = dmax + (1 if dmax > 0 else 0)
    pad_b = (-dmin) + (1 if dmin < 0 else 0)
    Hp = H + pad_t + pad_b

    # NCHW -> zero-padded, flattened NHWC (one fused XLA copy; replaces the old separate jnp.pad of x2d).
    x_nhwc = jnp.transpose(x, (0, 2, 3, 1))
    x_pad = jnp.pad(x_nhwc, ((0, 0), (pad_t, pad_b), (0, 0), (0, 0)))
    x_flat = x_pad.reshape(N, Hp * W, Cin).astype(matmul_dtype)

    kernel = functools.partial(_fused_decoder_kernel,
                               H=H, W=W, Cout=Cout, k=k, s=s, p=p, pad_t=pad_t)

    out_phase = pl.pallas_call(
        kernel,
        out_shape=jax.ShapeDtypeStruct((N, s, s, H * W, Cout), out_dtype),
        grid_spec=pltpu.PrefetchScalarGridSpec(
            num_scalar_prefetch=0,
            grid=(N,),
            in_specs=[
                pl.BlockSpec((None, Hp * W, Cin), lambda n: (n, 0, 0)),
                pl.BlockSpec((Cin, k * k * Cout), lambda n: (0, 0)),
                pl.BlockSpec((1, Cout), lambda n: (0, 0)),
            ],
            out_specs=pl.BlockSpec((None, s, s, H * W, Cout), lambda n: (n, 0, 0, 0, 0)),
        ),
        compiler_params=pltpu.CompilerParams(dimension_semantics=("parallel",)),
    )(x_flat, w2d.astype(matmul_dtype), shift)

    # Phase-major -> NCHW: out[n, co, s*q+ph, s*r+pw] = out_phase[n, ph, pw, q*W+r, co]
    # (single XLA transpose; unavoidable to match the PyTorch layout — keep NHWC when chaining blocks).
    out6 = out_phase.reshape(N, s, s, H, W, Cout)
    return jnp.transpose(out6, (0, 5, 3, 1, 4, 2)).reshape(N, Cout, s * H, s * W)


# ---------------------------------------------------------------------------
# Pure-JAX reference (independent math: explicit scatter-add ConvTranspose2d in NCHW)
# ---------------------------------------------------------------------------
def decoder_block_reference(x, x_skip, params, *, stride, padding, skip_connection):
    w_t, bias = params["w"], params["b"]
    gamma, beta = params["gamma"], params["beta"]
    r_mean, r_var, eps = params["running_mean"], params["running_var"], params["eps"]

    if skip_connection:
        x = jnp.concatenate([x, x_skip], axis=1)
    N, Cin, H, W = x.shape
    Cout, k = w_t.shape[1], w_t.shape[2]
    s, p = stride, padding
    H_out = (H - 1) * s - 2 * p + k
    W_out = (W - 1) * s - 2 * p + k
    full_h, full_w = (H - 1) * s + k, (W - 1) * s + k

    y = jnp.zeros((N, Cout, full_h, full_w), jnp.float32)
    for kh in range(k):
        for kw in range(k):
            contrib = jnp.einsum("nchw,co->nohw", x, w_t[:, :, kh, kw])
            y = y.at[:, :, kh:kh + (H - 1) * s + 1:s, kw:kw + (W - 1) * s + 1:s].add(contrib)
    y = y[:, :, p:p + H_out, p:p + W_out] + bias[None, :, None, None]

    # eval-mode BatchNorm2d
    y = (y - r_mean[None, :, None, None]) / jnp.sqrt(r_var[None, :, None, None] + eps)
    y = y * gamma[None, :, None, None] + beta[None, :, None, None]
    return jnp.maximum(y, 0.0)


# ---------------------------------------------------------------------------
if __name__ == "__main__":
    # Module config: skip_connection=True, k=4, stride=2, padding=1, batchnorm, ReLU.
    in_channels = 4
    out_channels = 8
    filter_size = 4
    stride = 2
    padding = 1
    skip_connection = True

    N, H, W = 2, 16, 16
    cin_total = 2 * in_channels if skip_connection else in_channels
    H_out = (H - 1) * stride - 2 * padding + filter_size
    W_out = (W - 1) * stride - 2 * padding + filter_size

    key = jax.random.PRNGKey(0)
    k_x, k_xs, k_w, k_b, k_g, k_be, k_m, k_v = jax.random.split(key, 8)

    x = jax.random.normal(k_x, (N, in_channels, H, W), jnp.float32)
    x_skip = jax.random.normal(k_xs, (N, in_channels, H, W), jnp.float32)

    params = {
        "w": 0.1 * jax.random.normal(k_w, (cin_total, out_channels, filter_size, filter_size), jnp.float32),
        "b": 0.05 * jax.random.normal(k_b, (out_channels,), jnp.float32),
        "gamma": 1.0 + 0.1 * jax.random.normal(k_g, (out_channels,), jnp.float32),
        "beta": 0.1 * jax.random.normal(k_be, (out_channels,), jnp.float32),
        "running_mean": 0.05 * jax.random.normal(k_m, (out_channels,), jnp.float32),
        "running_var": 1.0 + 0.1 * jnp.abs(jax.random.normal(k_v, (out_channels,), jnp.float32)),
        "eps": 1e-5,
    }

    ref = decoder_block_reference(
        x, x_skip, params, stride=stride, padding=padding, skip_connection=skip_connection
    )

    # Strict correctness check: f32 MXU path (tight tolerance).
    fwd_f32 = functools.partial(
        decoder_block_forward, stride=stride, padding=padding,
        skip_connection=skip_connection, matmul_dtype=jnp.float32,
    )
    out_f32 = jax.block_until_ready(jax.jit(fwd_f32)(x, x_skip, params))
    assert out_f32.shape == (N, out_channels, H_out, W_out), out_f32.shape
    assert jnp.allclose(out_f32, ref, rtol=1e-4, atol=1e-4), float(jnp.max(jnp.abs(out_f32 - ref)))

    # Performance path: bf16 MXU inputs, f32 accumulation (looser tolerance for bf16 rounding).
    fwd_bf16 = functools.partial(
        decoder_block_forward, stride=stride, padding=padding,
        skip_connection=skip_connection, matmul_dtype=jnp.bfloat16,
    )
    out_bf16 = jax.block_until_ready(jax.jit(fwd_bf16)(x, x_skip, params))
    assert out_bf16.shape == (N, out_channels, H_out, W_out), out_bf16.shape
    assert jnp.allclose(out_bf16, ref, rtol=5e-2, atol=5e-2), float(jnp.max(jnp.abs(out_bf16 - ref)))

    print("KERNEL_OK")
</pallas_src>

<mosaic_0001>
module attributes {stable_mosaic.version = 11 : i64} {
  func.func @_fused_decoder_kernel(%arg0: i32, %arg1: memref<1x320x8xf32, #tpu.memory_space<vmem>>, %arg2: memref<8x128xf32, #tpu.memory_space<vmem>>, %arg3: memref<1x8xf32, #tpu.memory_space<vmem>>, %arg4: memref<1x2x2x256x8xf32, #tpu.memory_space<vmem>>) attributes {dimension_semantics = [#tpu.dimension_semantics<parallel>], iteration_bounds = array<i64: 2>, scalar_prefetch = 0 : i64, scratch_operands = 0 : i64, tpu.core_type = #tpu.core_type<tc>, window_params = [{transform_indices = @transform_0, window_bounds = array<i64: 1, 320, 8>}, {pipeline_mode = #tpu.pipeline_mode<synchronous>, transform_indices = @transform_1, window_bounds = array<i64: 8, 128>}, {pipeline_mode = #tpu.pipeline_mode<synchronous>, transform_indices = @transform_2, window_bounds = array<i64: 1, 8>}, {transform_indices = @transform_3, window_bounds = array<i64: 1, 2, 2, 256, 8>}]} {
    %c0 = arith.constant 0 : index
    %c0_0 = arith.constant 0 : index
    %c0_1 = arith.constant 0 : index
    %0 = vector.load %arg1[%c0, %c0_0, %c0_1] : memref<1x320x8xf32, #tpu.memory_space<vmem>>, vector<1x320x8xf32>
    %1 = vector.shape_cast %0 : vector<1x320x8xf32> to vector<320x8xf32>
    %c0_2 = arith.constant 0 : index
    %c0_3 = arith.constant 0 : index
    %2 = vector.load %arg2[%c0_2, %c0_3] : memref<8x128xf32, #tpu.memory_space<vmem>>, vector<8x128xf32>
    %cst = arith.constant dense<0.000000e+00> : vector<320x128xf32>
    %3 = tpu.matmul %1, %2, %cst {dimension_numbers = #tpu.dot_dimension_numbers<[1], [0], [0], [1], [0, 0, 1, 1], [], []>} : vector<320x8xf32>, vector<8x128xf32>, vector<320x128xf32> -> vector<320x128xf32>
    %c0_4 = arith.constant 0 : index
    %c0_5 = arith.constant 0 : index
    %4 = vector.load %arg3[%c0_4, %c0_5] : memref<1x8xf32, #tpu.memory_space<vmem>>, vector<1x8xf32>
    %5 = tpu.iota {dimensions = array<i32: 0>} : vector<256x1xi32>
    %c16_i32 = arith.constant 16 : i32
    %c0_i32 = arith.constant 0 : i32
    %6 = arith.cmpi eq, %c16_i32, %c0_i32 : i32
    %c1_i32 = arith.constant 1 : i32
    %7 = arith.select %6, %c1_i32, %c16_i32 : i32
    %8 = vector.broadcast %7 : i32 to vector<256x1xi32>
    %9 = arith.remsi %5, %8 : vector<256x1xi32>
    %c0_i32_6 = arith.constant 0 : i32
    %10 = vector.broadcast %c0_i32_6 : i32 to vector<256x1xi32>
    %11 = arith.cmpi ne, %9, %10 : vector<256x1xi32>
    %c0_i32_7 = arith.constant 0 : i32
    %12 = vector.broadcast %c0_i32_7 : i32 to vector<256x1xi32>
    %13 = arith.cmpi slt, %9, %12 : vector<256x1xi32>
    %c0_i32_8 = arith.constant 0 : i32
    %14 = arith.cmpi slt, %7, %c0_i32_8 : i32
    %15 = vector.broadcast %14 : i1 to vector<256x1xi1>
    %16 = vector.broadcast %15 : vector<256x1xi1> to vector<256x1xi1>
    %17 = arith.xori %13, %16 : vector<256x1xi1>
    %18 = arith.andi %17, %11 : vector<256x1xi1>
    %19 = vector.broadcast %7 : i32 to vector<256x1xi32>
    %20 = arith.addi %9, %19 : vector<256x1xi32>
    %21 = arith.select %18, %20, %9 : vector<256x1xi1>, vector<256x1xi32>
    %cst_9 = arith.constant 0.000000e+00 : f32
    %22 = vector.broadcast %cst_9 : f32 to vector<256x8xf32>
    %23 = vector.extract_strided_slice %3 {offsets = [32, 40], sizes = [256, 8], strides = [1, 1]} : vector<320x128xf32> to vector<256x8xf32>
    %24 = arith.addf %22, %23 : vector<256x8xf32>
    %25 = vector.extract_strided_slice %3 {offsets = [31, 56], sizes = [256, 8], strides = [1, 1]} : vector<320x128xf32> to vector<256x8xf32>
    %c1_i32_10 = arith.constant 1 : i32
    %26 = vector.broadcast %c1_i32_10 : i32 to vector<256x1xi32>
    %27 = arith.cmpi sge, %21, %26 : vector<256x1xi32>
    %c16_i32_11 = arith.constant 16 : i32
    %28 = vector.broadcast %c16_i32_11 : i32 to vector<256x1xi32>
    %29 = arith.cmpi slt, %21, %28 : vector<256x1xi32>
    %30 = arith.andi %27, %29 : vector<256x1xi1>
    %cst_12 = arith.constant 0.000000e+00 : f32
    %31 = vector.shape_cast %30 : vector<256x1xi1> to vector<256x1xi1>
    %32 = vector.broadcast %31 : vector<256x1xi1> to vector<256x8xi1>
    %33 = vector.broadcast %cst_12 : f32 to vector<256x8xf32>
    %34 = arith.select %32, %25, %33 : vector<256x8xi1>, vector<256x8xf32>
    %35 = arith.addf %24, %34 : vector<256x8xf32>
    %36 = vector.extract_strided_slice %3 {offsets = [16, 104], sizes = [256, 8], strides = [1, 1]} : vector<320x128xf32> to vector<256x8xf32>
    %37 = arith.addf %35, %36 : vector<256x8xf32>
    %38 = vector.extract_strided_slice %3 {offsets = [15, 120], sizes = [256, 8], strides = [1, 1]} : vector<320x128xf32> to vector<256x8xf32>
    %cst_13 = arith.constant 0.000000e+00 : f32
    %39 = vector.shape_cast %30 : vector<256x1xi1> to vector<256x1xi1>
    %40 = vector.broadcast %39 : vector<256x1xi1> to vector<256x8xi1>
    %41 = vector.broadcast %cst_13 : f32 to vector<256x8xf32>
    %42 = arith.select %40, %38, %41 : vector<256x8xi1>, vector<256x8xf32>
    %43 = arith.addf %37, %42 : vector<256x8xf32>
    %44 = vector.broadcast %4 : vector<1x8xf32> to vector<256x8xf32>
    %45 = arith.addf %43, %44 : vector<256x8xf32>
    %cst_14 = arith.constant 0.000000e+00 : f32
    %46 = vector.broadcast %cst_14 : f32 to vector<256x8xf32>
    %47 = arith.maximumf %45, %46 : vector<256x8xf32>
    %c0_15 = arith.constant 0 : index
    %c0_16 = arith.constant 0 : index
    %c0_17 = arith.constant 0 : index
    %c0_18 = arith.constant 0 : index
    %c0_19 = arith.constant 0 : index
    %48 = vector.load %arg4[%c0_15, %c0_16, %c0_17, %c0_18, %c0_19] : memref<1x2x2x256x8xf32, #tpu.memory_space<vmem>>, vector<1x1x1x256x8xf32>
    %49 = vector.shape_cast %48 : vector<1x1x1x256x8xf32> to vector<256x8xf32>
    %50 = vector.shape_cast %47 : vector<256x8xf32> to vector<1x1x1x256x8xf32>
    tpu.vector_store %arg4[%c0_15, %c0_16, %c0_17, %c0_18, %c0_19], %50 {strides = array<i32>} : memref<1x2x2x256x8xf32, #tpu.memory_space<vmem>>, vector<1x1x1x256x8xf32>,
    %cst_20 = arith.constant 0.000000e+00 : f32
    %51 = vector.broadcast %cst_20 : f32 to vector<256x8xf32>
    %52 = vector.extract_strided_slice %3 {offsets = [33, 32], sizes = [256, 8], strides = [1, 1]} : vector<320x128xf32> to vector<256x8xf32>
    %c0_i32_21 = arith.constant 0 : i32
    %53 = vector.broadcast %c0_i32_21 : i32 to vector<256x1xi32>
    %54 = arith.cmpi sge, %21, %53 : vector<256x1xi32>
    %c15_i32 = arith.constant 15 : i32
    %55 = vector.broadcast %c15_i32 : i32 to vector<256x1xi32>
    %56 = arith.cmpi slt, %21, %55 : vector<256x1xi32>
    %57 = arith.andi %54, %56 : vector<256x1xi1>
    %cst_22 = arith.constant 0.000000e+00 : f32
    %58 = vector.shape_cast %57 : vector<256x1xi1> to vector<256x1xi1>
    %59 = vector.broadcast %58 : vector<256x1xi1> to vector<256x8xi1>
    %60 = vector.broadcast %cst_22 : f32 to vector<256x8xf32>
    %61 = arith.select %59, %52, %60 : vector<256x8xi1>, vector<256x8xf32>
    %62 = arith.addf %51, %61 : vector<256x8xf32>
    %63 = vector.extract_strided_slice %3 {offsets = [32, 48], sizes = [256, 8], strides = [1, 1]} : vector<320x128xf32> to vector<256x8xf32>
    %64 = arith.addf %62, %63 : vector<256x8xf32>
    %65 = vector.extract_strided_slice %3 {offsets = [17, 96], sizes = [256, 8], strides = [1, 1]} : vector<320x128xf32> to vector<256x8xf32>
    %cst_23 = arith.constant 0.000000e+00 : f32
    %66 = vector.shape_cast %57 : vector<256x1xi1> to vector<256x1xi1>
    %67 = vector.broadcast %66 : vector<256x1xi1> to vector<256x8xi1>
    %68 = vector.broadcast %cst_23 : f32 to vector<256x8xf32>
    %69 = arith.select %67, %65, %68 : vector<256x8xi1>, vector<256x8xf32>
    %70 = arith.addf %64, %69 : vector<256x8xf32>
    %71 = vector.extract_strided_slice %3 {offsets = [16, 112], sizes = [256, 8], strides = [1, 1]} : vector<320x128xf32> to vector<256x8xf32>
    %72 = arith.addf %70, %71 : vector<256x8xf32>
    %73 = vector.broadcast %4 : vector<1x8xf32> to vector<256x8xf32>
    %74 = arith.addf %72, %73 : vector<256x8xf32>
    %cst_24 = arith.constant 0.000000e+00 : f32
    %75 = vector.broadcast %cst_24 : f32 to vector<256x8xf32>
    %76 = arith.maximumf %74, %75 : vector<256x8xf32>
    %c0_25 = arith.constant 0 : index
    %c0_26 = arith.constant 0 : index
    %c1 = arith.constant 1 : index
    %c0_27 = arith.constant 0 : index
    %c0_28 = arith.constant 0 : index
    %77 = vector.load %arg4[%c0_25, %c0_26, %c1, %c0_27, %c0_28] : memref<1x2x2x256x8xf32, #tpu.memory_space<vmem>>, vector<1x1x1x256x8xf32>
    %78 = vector.shape_cast %77 : vector<1x1x1x256x8xf32> to vector<256x8xf32>
    %79 = vector.shape_cast %76 : vector<256x8xf32> to vector<1x1x1x256x8xf32>
    tpu.vector_store %arg4[%c0_25, %c0_26, %c1, %c0_27, %c0_28], %79 {strides = array<i32>} : memref<1x2x2x256x8xf32, #tpu.memory_space<vmem>>, vector<1x1x1x256x8xf32>,
    %cst_29 = arith.constant 0.000000e+00 : f32
    %80 = vector.broadcast %cst_29 : f32 to vector<256x8xf32>
    %81 = vector.extract_strided_slice %3 {offsets = [48, 8], sizes = [256, 8], strides = [1, 1]} : vector<320x128xf32> to vector<256x8xf32>
    %82 = arith.addf %80, %81 : vector<256x8xf32>
    %83 = vector.extract_strided_slice %3 {offsets = [47, 24], sizes = [256, 8], strides = [1, 1]} : vector<320x128xf32> to vector<256x8xf32>
    %cst_30 = arith.constant 0.000000e+00 : f32
    %84 = vector.shape_cast %30 : vector<256x1xi1> to vector<256x1xi1>
    %85 = vector.broadcast %84 : vector<256x1xi1> to vector<256x8xi1>
    %86 = vector.broadcast %cst_30 : f32 to vector<256x8xf32>
    %87 = arith.select %85, %83, %86 : vector<256x8xi1>, vector<256x8xf32>
    %88 = arith.addf %82, %87 : vector<256x8xf32>
    %89 = vector.extract_strided_slice %3 {offsets = [32, 72], sizes = [256, 8], strides = [1, 1]} : vector<320x128xf32> to vector<256x8xf32>
    %90 = arith.addf %88, %89 : vector<256x8xf32>
    %91 = vector.extract_strided_slice %3 {offsets = [31, 88], sizes = [256, 8], strides = [1, 1]} : vector<320x128xf32> to vector<256x8xf32>
    %cst_31 = arith.constant 0.000000e+00 : f32
    %92 = vector.shape_cast %30 : vector<256x1xi1> to vector<256x1xi1>
    %93 = vector.broadcast %92 : vector<256x1xi1> to vector<256x8xi1>
    %94 = vector.broadcast %cst_31 : f32 to vector<256x8xf32>
    %95 = arith.select %93, %91, %94 : vector<256x8xi1>, vector<256x8xf32>
    %96 = arith.addf %90, %95 : vector<256x8xf32>
    %97 = vector.broadcast %4 : vector<1x8xf32> to vector<256x8xf32>
    %98 = arith.addf %96, %97 : vector<256x8xf32>
    %cst_32 = arith.constant 0.000000e+00 : f32
    %99 = vector.broadcast %cst_32 : f32 to vector<256x8xf32>
    %100 = arith.maximumf %98, %99 : vector<256x8xf32>
    %c0_33 = arith.constant 0 : index
    %c1_34 = arith.constant 1 : index
    %c0_35 = arith.constant 0 : index
    %c0_36 = arith.constant 0 : index
    %c0_37 = arith.constant 0 : index
    %101 = vector.load %arg4[%c0_33, %c1_34, %c0_35, %c0_36, %c0_37] : memref<1x2x2x256x8xf32, #tpu.memory_space<vmem>>, vector<1x1x1x256x8xf32>
    %102 = vector.shape_cast %101 : vector<1x1x1x256x8xf32> to vector<256x8xf32>
    %103 = vector.shape_cast %100 : vector<256x8xf32> to vector<1x1x1x256x8xf32>
    tpu.vector_store %arg4[%c0_33, %c1_34, %c0_35, %c0_36, %c0_37], %103 {strides = array<i32>} : memref<1x2x2x256x8xf32, #tpu.memory_space<vmem>>, vector<1x1x1x256x8xf32>,
    %cst_38 = arith.constant 0.000000e+00 : f32
    %104 = vector.broadcast %cst_38 : f32 to vector<256x8xf32>
    %105 = vector.extract_strided_slice %3 {offsets = [49, 0], sizes = [256, 8], strides = [1, 1]} : vector<320x128xf32> to vector<256x8xf32>
    %cst_39 = arith.constant 0.000000e+00 : f32
    %106 = vector.shape_cast %57 : vector<256x1xi1> to vector<256x1xi1>
    %107 = vector.broadcast %106 : vector<256x1xi1> to vector<256x8xi1>
    %108 = vector.broadcast %cst_39 : f32 to vector<256x8xf32>
    %109 = arith.select %107, %105, %108 : vector<256x8xi1>, vector<256x8xf32>
    %110 = arith.addf %104, %109 : vector<256x8xf32>
    %111 = vector.extract_strided_slice %3 {offsets = [48, 16], sizes = [256, 8], strides = [1, 1]} : vector<320x128xf32> to vector<256x8xf32>
    %112 = arith.addf %110, %111 : vector<256x8xf32>
    %113 = vector.extract_strided_slice %3 {offsets = [33, 64], sizes = [256, 8], strides = [1, 1]} : vector<320x128xf32> to vector<256x8xf32>
    %cst_40 = arith.constant 0.000000e+00 : f32
    %114 = vector.shape_cast %57 : vector<256x1xi1> to vector<256x1xi1>
    %115 = vector.broadcast %114 : vector<256x1xi1> to vector<256x8xi1>
    %116 = vector.broadcast %cst_40 : f32 to vector<256x8xf32>
    %117 = arith.select %115, %113, %116 : vector<256x8xi1>, vector<256x8xf32>
    %118 = arith.addf %112, %117 : vector<256x8xf32>
    %119 = vector.extract_strided_slice %3 {offsets = [32, 80], sizes = [256, 8], strides = [1, 1]} : vector<320x128xf32> to vector<256x8xf32>
    %120 = arith.addf %118, %119 : vector<256x8xf32>
    %121 = vector.broadcast %4 : vector<1x8xf32> to vector<256x8xf32>
    %122 = arith.addf %120, %121 : vector<256x8xf32>
    %cst_41 = arith.constant 0.000000e+00 : f32
    %123 = vector.broadcast %cst_41 : f32 to vector<256x8xf32>
    %124 = arith.maximumf %122, %123 : vector<256x8xf32>
    %c0_42 = arith.constant 0 : index
    %c1_43 = arith.constant 1 : index
    %c1_44 = arith.constant 1 : index
    %c0_45 = arith.constant 0 : index
    %c0_46 = arith.constant 0 : index
    %125 = vector.load %arg4[%c0_42, %c1_43, %c1_44, %c0_45, %c0_46] : memref<1x2x2x256x8xf32, #tpu.memory_space<vmem>>, vector<1x1x1x256x8xf32>
    %126 = vector.shape_cast %125 : vector<1x1x1x256x8xf32> to vector<256x8xf32>
    %127 = vector.shape_cast %124 : vector<256x8xf32> to vector<1x1x1x256x8xf32>
    tpu.vector_store %arg4[%c0_42, %c1_43, %c1_44, %c0_45, %c0_46], %127 {strides = array<i32>} : memref<1x2x2x256x8xf32, #tpu.memory_space<vmem>>, vector<1x1x1x256x8xf32>,
    return
  }
  func.func @transform_0(%arg0: i32) -> (i32, i32, i32) {
    %c0_i32 = arith.constant 0 : i32
    %c0_i32_0 = arith.constant 0 : i32
    %c0_i32_1 = arith.constant 0 : i32
    return %arg0, %c0_i32, %c0_i32_0 : i32, i32, i32
  }
  func.func @transform_1(%arg0: i32) -> (i32, i32) {
    %c0_i32 = arith.constant 0 : i32
    %c0_i32_0 = arith.constant 0 : i32
    %c0_i32_1 = arith.constant 0 : i32
    return %c0_i32, %c0_i32_0 : i32, i32
  }
  func.func @transform_2(%arg0: i32) -> (i32, i32) {
    %c0_i32 = arith.constant 0 : i32
    %c0_i32_0 = arith.constant 0 : i32
    %c0_i32_1 = arith.constant 0 : i32
    return %c0_i32, %c0_i32_0 : i32, i32
  }
  func.func @transform_3(%arg0: i32) -> (i32, i32, i32, i32, i32) {
    %c0_i32 = arith.constant 0 : i32
    %c0_i32_0 = arith.constant 0 : i32
    %c0_i32_1 = arith.constant 0 : i32
    %c0_i32_2 = arith.constant 0 : i32
    %c0_i32_3 = arith.constant 0 : i32
    return %arg0, %c0_i32, %c0_i32_0, %c0_i32_1, %c0_i32_2 : i32, i32, i32, i32, i32
  }
}

</mosaic_0001>

<bundles_post_ra>
// kernel: decoder_block_forward.1
= control target key start
LH: loop header
LB: loop body
LE: loop exit
PB: predicated region body
PF: predicated region fallthrough
CT: control target
= control target key end

     0   :  { %s4989_s12 = smov 0   ;;  %s8337_s0 = inlined_call_operand.vmem [shape: f32[2,320,8], index: 0, kind: input, shape index: {}]   ;;  %s8338_s1 = inlined_call_operand.vmem [shape: f32[8,128], index: 1, kind: input, shape index: {}]   ;;  %s8339_s2 = inlined_call_operand.vmem [shape: f32[1,8], index: 2, kind: input, shape index: {}]   ;;  %s8340_s3 = inlined_call_operand.vmem [shape: f32[2,2,2,256,8], index: 3, kind: output, shape index: {}]  }
   0x1 LB: > { %s4670_s13 = sadd.s32 4294967295, %s4954_s12   ;;  %p4674_p0 = scmp.ge.s32.totalorder %s4954_s12, 1  ;;  %s4954_s12 = sphi %s4989_s12, %s13_s12  }
   0x2   : > { %p137_p1 = scmp.lt.s32.totalorder %s4954_s12, 3 }
   0x4   : > { %p138_p2 = pnand %p4674_p0, %p137_p1 }
   0x6   : > { %141 = sbr.rel (%p138_p2) target bundleno = 1732 (0x6c4), region = 32 }
   0xd   : > { %v211_v0 = vld [vmem:[%s8338_s1] sm:$0xff]  ;;  %p161_p3 = scmp.lt.s32.totalorder %s4670_s13, 1  ;;  %s4956_s18 = smov 40   ;;  %vm8539_vm0 = vcmask 64512   ;;  %vm1239_vm1 = vcmask 1040384   ;;  %vm8540_vm2 = vcmask 1046528  }
   0xe   : > { %v4718_v1 = vld [vmem:[%s8339_s2] ss:$0 sm:$0xff]  ;;  %4859 = vmatprep.subr.mxu0 %v211_v0  ;;  %4921 = vmatprep.subr.mxu1 %v211_v0  ;;  %s4957_s23 = smov 64   ;;  %s4958_s24 = smov 72  }
   0xf   : > { %4860 = vmatpush3.msra.mxu0 %v211_v0  ;;  %4922 = vmatpush3.msra.mxu1 %v211_v0  ;;  %s9563_s13 = smov (!%p161_p3, %s4670_s13), 1  ;;  %s4959_s25 = smov 8  }
  0x10   : > { %2021 = vrot.lane.b32.xlu0 %v4718_v1, %s4956_s18  ;;  %s4923_s19 = smul.u32 320, %s9563_s13  ;;  %s4960_s26 = smov 96  }
  0x11   : > { %s4961_s27 = smov 80   ;;  %s4962_s28 = smov 88  }
  0x12   : > { %s5010_s22 = scalar_lea.vmem %s8337_s0, %s4923_s19  ;;  %s4963_s29 = smov 32  }
  0x13   : > { %v171_v2 = vld [vmem:[%s5010_s22] sm:$0xff]  ;;  %v172_v4 = vld [vmem:[%s5010_s22 + $0x8] sm:$0xff]  ;;  %v173_v6 = vld [vmem:[%s5010_s22 + $0x10] sm:$0xff]  ;;  %s4817_s30 = sshll.u32 %s9563_s13, 10  ;;  %s4964_s7 = smov 16  }
  0x14   : > { %v191_v3 = vld [vmem:[%s5010_s22 + $0xa0] sm:$0xff]  ;;  %4861 = vmatprep.mubr.msk.f32.mxu0 %vm8539_vm0, %v171_v2  ;;  %v192_v5 = vld [vmem:[%s5010_s22 + $0xa8] sm:$0xff]  ;;  %v193_v7 = vld [vmem:[%s5010_s22 + $0xb0] sm:$0xff]  ;;  %s6583_s6 = scalar_lea.vmem %s8340_s3, %s4817_s30  ;;  %s4965_s8 = smov 104  }
  0x15   : > { %4891 = vmatprep.mubr.msk.f32.mxu1 %vm8539_vm0, %v191_v3  ;;  %4862 = vmatmul.mubr.msk.f32.vlgmr.msra.gmra.mrb[0].mxu0 %vm8539_vm0, %v172_v4  ;;  %v174_v8 = vld [vmem:[%s5010_s22 + $0x18] sm:$0xff]  ;;  %v175_v10 = vld [vmem:[%s5010_s22 + $0x20] sm:$0xff]  ;;  %v176_v12 = vld [vmem:[%s5010_s22 + $0x28] sm:$0xff]  ;;  %s4966_s14 = smov 120   ;;  %s4967_s15 = smov 112  }
  0x16   : > { %4892 = vmatmul.mubr.msk.f32.vlgmr.msra.gmra.mrb[0].mxu1 %vm8539_vm0, %v192_v5  ;;  %4864 = vmatprep.mubr.msk.f32.mxu0 %vm8539_vm0, %v173_v6  ;;  %v194_v9 = vld [vmem:[%s5010_s22 + $0xb8] sm:$0xff]  ;;  %v195_v11 = vld [vmem:[%s5010_s22 + $0xc0] sm:$0xff]  ;;  %v196_v13 = vld [vmem:[%s5010_s22 + $0xc8] sm:$0xff]  ;;  %s4968_s16 = smov 48  }
  0x17   : > { %4894 = vmatprep.mubr.msk.f32.mxu1 %vm8539_vm0, %v193_v7  ;;  %v177_v14 = vld [vmem:[%s5010_s22 + $0x30] sm:$0xff]  ;;  %v178_v16 = vld [vmem:[%s5010_s22 + $0x38] sm:$0xff]  ;;  %v179_v18 = vld [vmem:[%s5010_s22 + $0x40] sm:$0xff] }
  0x18   : > { %v197_v15 = vld [vmem:[%s5010_s22 + $0xd0] sm:$0xff]  ;;  %v198_v17 = vld [vmem:[%s5010_s22 + $0xd8] sm:$0xff]  ;;  %v199_v19 = vld [vmem:[%s5010_s22 + $0xe0] sm:$0xff] }
  0x19   : > { %4865 = vmatmul.mubr.msk.f32.gmra.mrb[2].mxu0 %vm8539_vm0, %v174_v8  ;;  %v180_v20 = vld [vmem:[%s5010_s22 + $0x48] sm:$0xff]  ;;  %v181_v22 = vld [vmem:[%s5010_s22 + $0x50] sm:$0xff]  ;;  %v182_v24 = vld [vmem:[%s5010_s22 + $0x58] sm:$0xff] }
  0x1a   : > { %4895 = vmatmul.mubr.msk.f32.gmra.mrb[2].mxu1 %vm8539_vm0, %v194_v9  ;;  %4867 = vmatprep.mubr.msk.f32.mxu0 %vm8539_vm0, %v175_v10  ;;  %v200_v21 = vld [vmem:[%s5010_s22 + $0xe8] sm:$0xff]  ;;  %v201_v23 = vld [vmem:[%s5010_s22 + $0xf0] sm:$0xff]  ;;  %v202_v25 = vld [vmem:[%s5010_s22 + $0xf8] sm:$0xff] }
  0x1b   : > { %4897 = vmatprep.mubr.msk.f32.mxu1 %vm8539_vm0, %v195_v11  ;;  %v183_v26 = vld [vmem:[%s5010_s22 + $0x60] sm:$0xff]  ;;  %v184_v28 = vld [vmem:[%s5010_s22 + $0x68] sm:$0xff]  ;;  %v185_v30 = vld [vmem:[%s5010_s22 + $0x70] sm:$0xff] }
  0x1c   : > { %v203_v27 = vld [vmem:[%s5010_s22 + $0x100] sm:$0xff]  ;;  %v204_v29 = vld [vmem:[%s5010_s22 + $0x108] sm:$0xff]  ;;  %v205_v31 = vld [vmem:[%s5010_s22 + $0x110] sm:$0xff] }
  0x1d   : > { %4868 = vmatmul.mubr.msk.f32.gmra.mrb[4].mxu0 %vm8539_vm0, %v176_v12  ;;  %v186_v32 = vld [vmem:[%s5010_s22 + $0x78] sm:$0xff]  ;;  %v187_v34 = vld [vmem:[%s5010_s22 + $0x80] sm:$0xff]  ;;  %v188_v36 = vld [vmem:[%s5010_s22 + $0x88] sm:$0xff] }
  0x1e   : > { %4898 = vmatmul.mubr.msk.f32.gmra.mrb[4].mxu1 %vm8539_vm0, %v196_v13  ;;  %4870 = vmatprep.mubr.msk.f32.mxu0 %vm8539_vm0, %v177_v14  ;;  %v206_v33 = vld [vmem:[%s5010_s22 + $0x118] sm:$0xff]  ;;  %v207_v35 = vld [vmem:[%s5010_s22 + $0x120] sm:$0xff]  ;;  %v208_v37 = vld [vmem:[%s5010_s22 + $0x128] sm:$0xff] }
  0x1f   : > { %4900 = vmatprep.mubr.msk.f32.mxu1 %vm8539_vm0, %v197_v15  ;;  %v189_v38 = vld [vmem:[%s5010_s22 + $0x90] sm:$0xff]  ;;  %v190_v39 = vld [vmem:[%s5010_s22 + $0x98] sm:$0xff] }
  0x21   : > { %4871 = vmatmul.mubr.msk.f32.gmra.mrb[6].mxu0 %vm8539_vm0, %v178_v16 }
  0x22   : > { %4901 = vmatmul.mubr.msk.f32.gmra.mrb[6].mxu1 %vm8539_vm0, %v198_v17  ;;  %4873 = vmatprep.mubr.msk.f32.mxu0 %vm8539_vm0, %v179_v18 }
  0x23   : > { %4903 = vmatprep.mubr.msk.f32.mxu1 %vm8539_vm0, %v199_v19 }
  0x25   : > { %4874 = vmatmul.mubr.msk.f32.gmra.mrb[8].mxu0 %vm8539_vm0, %v180_v20 }
  0x26   : > { %4904 = vmatmul.mubr.msk.f32.gmra.mrb[8].mxu1 %vm8539_vm0, %v200_v21  ;;  %4876 = vmatprep.mubr.msk.f32.mxu0 %vm8539_vm0, %v181_v22 }
  0x27   : > { %4906 = vmatprep.mubr.msk.f32.mxu1 %vm8539_vm0, %v201_v23 }
  0x29   : > { %4877 = vmatmul.mubr.msk.f32.gmra.mrb[10].mxu0 %vm8539_vm0, %v182_v24 }
  0x2a   : > { %4907 = vmatmul.mubr.msk.f32.gmra.mrb[10].mxu1 %vm8539_vm0, %v202_v25  ;;  %4879 = vmatprep.mubr.msk.f32.mxu0 %vm8539_vm0, %v183_v26 }
  0x2b   : > { %4909 = vmatprep.mubr.msk.f32.mxu1 %vm8539_vm0, %v203_v27 }
  0x2d   : > { %4880 = vmatmul.mubr.msk.f32.gmra.mrb[12].mxu0 %vm8539_vm0, %v184_v28 }
  0x2e   : > { %4910 = vmatmul.mubr.msk.f32.gmra.mrb[12].mxu1 %vm8539_vm0, %v204_v29  ;;  %4882 = vmatprep.mubr.msk.f32.mxu0 %vm8539_vm0, %v185_v30 }
  0x2f   : > { %4912 = vmatprep.mubr.msk.f32.mxu1 %vm8539_vm0, %v205_v31 }
  0x31   : > { %4883 = vmatmul.mubr.msk.f32.gmra.mrb[14].mxu0 %vm8539_vm0, %v186_v32 }
  0x32   : > { %4913 = vmatmul.mubr.msk.f32.gmra.mrb[14].mxu1 %vm8539_vm0, %v206_v33  ;;  %4885 = vmatprep.mubr.msk.f32.mxu0 %vm8539_vm0, %v187_v34 }
  0x33   : > { %4915 = vmatprep.mubr.msk.f32.mxu1 %vm8539_vm0, %v207_v35 }
  0x35   : > { %4886 = vmatmul.mubr.msk.f32.gmra.mrb[16].mxu0 %vm8539_vm0, %v188_v36 }
  0x36   : > { %4916 = vmatmul.mubr.msk.f32.gmra.mrb[16].mxu1 %vm8539_vm0, %v208_v37  ;;  %4888 = vmatprep.mubr.msk.f32.mxu0 %vm8539_vm0, %v189_v38 }
  0x39   : > { %4889 = vmatmul.mubr.msk.f32.gmra.mrb[18].mxu0 %vm8539_vm0, %v190_v39 }
  0xe8   : > { %v4863_v41 = vpop.f32.mrb[0].mxu0 }
  0xe9   : > { %v5088_v40 = vpop.f32.mrb[0].mxu1  ;;  %v399_v43 = vpop.f32.mrb[1].mxu0  ;;  %v1723_v57 = vrot.slane %v4863_v41, 7 }
  0xea   : > { %8698 = vst [vmem:[#allocation2_spill] sm:$0xff] %v5088_v40  ;;  %1632 = vrot.lane.b32.xlu1 %v5088_v40, %s4957_s23  ;;  %v5092_v42 = vpop.f32.mrb[1].mxu1  ;;  %v1275_v44 = vrot.slane %v5088_v40, 7  ;;  %v2443_v45 = vrot.slane %v5088_v40, 1 }
  0xeb   : > { %8699 = vst [vmem:[#allocation3_spill] sm:$0xff] %v5092_v42  ;;  %1630 = vrot.lane.b32.xlu0 %v5092_v42, %s4957_s23  ;;  %v8342_v46 = vrot.slane %v5092_v42, 7  ;;  %v8341_v47 = vrot.slane %v5092_v42, 1 }
  0xec   : > { %v5100_v48 = vpop.f32.mrb[2].mxu0 }
  0xed   : > { %8700 = vst [vmem:[#allocation4_spill] sm:$0xff] %v5100_v48  ;;  %v5102_v49 = vpop.f32.mrb[2].mxu1  ;;  %v5107_v50 = vsel %vm1239_vm1, %v8342_v46, %v1275_v44  ;;  %v5112_v51 = vsel %vm8540_vm2, %v8341_v47, %v2443_v45  ;;  %v1240_v52 = vrot.slane %v5100_v48, 7  ;;  %v5117_v53 = vpop.f32.mrb[3].mxu0  ;;  %v2764_v61 = vrot.slane %v5100_v48, 1 }
  0xee   : > { %8701 = vst [vmem:[#allocation5_spill] sm:$0xff] %v5102_v49  ;;  %8702 = vst [vmem:[#allocation6_spill] sm:$0xff] %v5107_v50  ;;  %1339 = vrot.lane.b32.xlu1 %v5107_v50, %s4958_s24  ;;  %v5119_v54 = vpop.f32.mrb[3].mxu1  ;;  %v1279_v55 = vrot.slane %v5102_v49, 7  ;;  %v2447_v56 = vrot.slane %v5102_v49, 1  ;;  %v1724_v58 = vrot.slane %v5117_v53, 7 }
  0xef   : > { %8703 = vst [vmem:[#allocation7_spill] sm:$0xff] %v5112_v51  ;;  %8704 = vst [vmem:[#allocation8_spill] sm:$0xff] %v5117_v53  ;;  %1594 = vrot.lane.b32.xlu0 %v5117_v53, %s4957_s23  ;;  %v1277_v59 = vrot.slane %v5119_v54, 7  ;;  %v2445_v60 = vrot.slane %v5119_v54, 1  ;;  %v2763_v62 = vrot.slane %v5117_v53, 1 }
  0xf0   : > { %8705 = vst [vmem:[#allocation9_spill] sm:$0xff] %v5119_v54  ;;  %v5130_v63 = vpop.f32.mrb[4].mxu0  ;;  %v1725_v2 = vsel %vm1239_vm1, %v1723_v57, %v1724_v58  ;;  %v5151_v7 = vsel %vm1239_vm1, %v1724_v58, %v1240_v52 }
  0xf1   : > { %8706 = vst [vmem:[#allocation10_spill] sm:$0xff] %v5130_v63  ;;  %v5132_v0 = vpop.f32.mrb[4].mxu1  ;;  %v5135_v1 = vsel %vm1239_vm1, %v1275_v44, %v1277_v59  ;;  %v5139_v3 = vsel %vm1239_vm1, %v1277_v59, %v1279_v55  ;;  %v5142_v4 = vsel %vm8540_vm2, %v2443_v45, %v2445_v60  ;;  %v5146_v5 = vpop.f32.mrb[5].mxu0  ;;  %v1243_v8 = vrot.slane %v5130_v63, 7 }
  0xf2   : > { %8707 = vst [vmem:[#allocation11_spill] sm:$0xff] %v5132_v0  ;;  %8708 = vst [vmem:[#allocation12_spill] sm:$0xff] %v5135_v1  ;;  %1596 = vrot.lane.b32.xlu1 %v5100_v48, %s4957_s23  ;;  %v5148_v6 = vpop.f32.mrb[5].mxu1  ;;  %v5155_v9 = vsel %vm8540_vm2, %v2445_v60, %v2447_v56  ;;  %v1283_v10 = vrot.slane %v5132_v0, 7  ;;  %v1241_v11 = vrot.slane %v5146_v5, 7  ;;  %v2410_v14 = vrot.slane %v5146_v5, 1 }
  0xf3   : > { %8709 = vst [vmem:[#allocation13_spill] sm:$0xff] %v5139_v3  ;;  %8710 = vst [vmem:[#allocation14_spill] sm:$0xff] %v5142_v4  ;;  %1634 = vrot.lane.b32.xlu0 %v5119_v54, %s4957_s23  ;;  %v1281_v12 = vrot.slane %v5148_v6, 7  ;;  %v2449_v13 = vrot.slane %v5148_v6, 1  ;;  %v2411_v15 = vrot.slane %v5130_v63, 1  ;;  %v2451_v16 = vrot.slane %v5132_v0, 1 }
  0xf4   : > { %8711 = vst [vmem:[#allocation15_spill] sm:$0xff] %v5146_v5  ;;  %8712 = vst [vmem:[#allocation16_spill] sm:$0xff] %v5148_v6  ;;  %v5167_v17 = vsel %vm8540_vm2, %v2763_v62, %v2764_v61  ;;  %v5169_v18 = vpop.f32.mrb[6].mxu0  ;;  %v5174_v20 = vsel %vm1239_vm1, %v1240_v52, %v1241_v11  ;;  %v5177_v21 = vsel %vm1239_vm1, %v1241_v11, %v1243_v8 }
  0xf5   : > { %8713 = vst [vmem:[#allocation17_spill] sm:$0xff] %v5155_v9  ;;  %8714 = vst [vmem:[#allocation18_spill] sm:$0xff] %v5167_v17  ;;  %v5171_v19 = vpop.f32.mrb[6].mxu1  ;;  %v5180_v22 = vsel %vm1239_vm1, %v1279_v55, %v1281_v12  ;;  %v5183_v23 = vsel %vm1239_vm1, %v1281_v12, %v1283_v10  ;;  %v5187_v24 = vpop.f32.mrb[7].mxu0  ;;  %v5192_v26 = vsel %vm8540_vm2, %v2447_v56, %v2449_v13  ;;  %v1247_v29 = vrot.slane %v5169_v18, 7 }
  0xf6   : > { %8715 = vst [vmem:[#allocation19_spill] sm:$0xff] %v5169_v18  ;;  %8716 = vst [vmem:[#allocation20_spill] sm:$0xff] %v5171_v19  ;;  %1636 = vrot.lane.b32.xlu1 %v5102_v49, %s4957_s23  ;;  %v5189_v25 = vpop.f32.mrb[7].mxu1  ;;  %v5195_v27 = vsel %vm8540_vm2, %v2410_v14, %v2411_v15  ;;  %v5198_v28 = vsel %vm8540_vm2, %v2449_v13, %v2451_v16  ;;  %v1245_v31 = vrot.slane %v5187_v24, 7  ;;  %v2413_v32 = vrot.slane %v5187_v24, 1 }
  0xf7   : > { %8717 = vst [vmem:[#allocation21_spill] sm:$0xff] %v5174_v20  ;;  %8718 = vst [vmem:[#allocation22_spill] sm:$0xff] %v5177_v21  ;;  %1341 = vrot.lane.b32.xlu0 %v5135_v1, %s4958_s24  ;;  %v1285_v30 = vrot.slane %v5189_v25, 7  ;;  %v1287_v33 = vrot.slane %v5171_v19, 7  ;;  %v2453_v34 = vrot.slane %v5189_v25, 1  ;;  %v2415_v35 = vrot.slane %v5169_v18, 1 }
  0xf8   : > { %8719 = vst [vmem:[#allocation23_spill] sm:$0xff] %v5180_v22  ;;  %8720 = vst [vmem:[#allocation24_spill] sm:$0xff] %v5183_v23  ;;  %v2455_v36 = vrot.slane %v5171_v19, 1  ;;  %v5211_v37 = vsel %vm8540_vm2, %v2764_v61, %v2410_v14  ;;  %v5213_v38 = vpop.f32.mrb[8].mxu0  ;;  %v5221_v43 = vsel %vm1239_vm1, %v1243_v8, %v1245_v31  ;;  %v5224_v44 = vsel %vm1239_vm1, %v1245_v31, %v1247_v29 }
  0xf9   : > { %8721 = vst [vmem:[#allocation25_spill] sm:$0xff] %v5187_v24  ;;  %8722 = vst [vmem:[#allocation26_spill] sm:$0xff] %v5189_v25  ;;  %v5215_v39 = vpop.f32.mrb[8].mxu1  ;;  %v5218_v41 = vsel %vm1239_vm1, %v1283_v10, %v1285_v30  ;;  %v5227_v45 = vsel %vm8540_vm2, %v2411_v15, %v2413_v32  ;;  %v5231_v52 = vpop.f32.mrb[9].mxu0  ;;  %v5236_v56 = vsel %vm1239_vm1, %v1285_v30, %v1287_v33  ;;  %v1251_v62 = vrot.slane %v5213_v38, 7 }
  0xfa   : > { %8723 = vst [vmem:[#allocation27_spill] sm:$0xff] %v5192_v26  ;;  %8724 = vst [vmem:[#allocation28_spill] sm:$0xff] %v5195_v27  ;;  %1765 = vrot.lane.b32.xlu1 %v5107_v50, %s4959_s25  ;;  %v5233_v55 = vpop.f32.mrb[9].mxu1  ;;  %v5239_v57 = vsel %vm8540_vm2, %v2451_v16, %v2453_v34  ;;  %v5242_v58 = vsel %vm8540_vm2, %v2413_v32, %v2415_v35  ;;  %v5245_v59 = vsel %vm8540_vm2, %v2453_v34, %v2455_v36 }
  0xfb   : > { %8725 = vst [vmem:[#allocation29_spill] sm:$0xff] %v5198_v28  ;;  %8726 = vst [vmem:[#allocation30_spill] sm:$0xff] %v5211_v37  ;;  %1727 = vrot.lane.b32.xlu0 %v1725_v2, %s4959_s25  ;;  %v1249_v60 = vrot.slane %v5231_v52, 7  ;;  %v1289_v61 = vrot.slane %v5233_v55, 7  ;;  %v2417_v8 = vrot.slane %v5231_v52, 1  ;;  %v1291_v10 = vrot.slane %v5215_v39, 7 }
  0xfc   : > { %8727 = vst [vmem:[#allocation31_spill] sm:$0xff] %v5213_v38  ;;  %8728 = vst [vmem:[#allocation32_spill] sm:$0xff] %v5215_v39  ;;  %v2457_v11 = vrot.slane %v5233_v55, 1  ;;  %v2419_v12 = vrot.slane %v5213_v38, 1  ;;  %v2459_v13 = vrot.slane %v5215_v39, 1  ;;  %v5256_v14 = vpop.f32.mrb[10].mxu0 }
  0xfd   : > { %8729 = vst [vmem:[#allocation33_spill] sm:$0xff] %v5218_v41  ;;  %8730 = vst [vmem:[#allocation34_spill] sm:$0xff] %v5221_v43  ;;  %v5258_v15 = vpop.f32.mrb[10].mxu1  ;;  %v5261_v2 = vsel %vm1239_vm1, %v1247_v29, %v1249_v60  ;;  %v5264_v16 = vsel %vm1239_vm1, %v1287_v33, %v1289_v61  ;;  %v5267_v30 = vsel %vm1239_vm1, %v1249_v60, %v1251_v62  ;;  %v5274_v32 = vpop.f32.mrb[11].mxu0  ;;  %v1255_v50 = vrot.slane %v5256_v14, 7 }
  0xfe   : > { %8731 = vst [vmem:[#allocation35_spill] sm:$0xff] %v5224_v44  ;;  %8732 = vst [vmem:[#allocation36_spill] sm:$0xff] %v5227_v45  ;;  %v5270_v31 = vsel %vm8540_vm2, %v2415_v35, %v2417_v8  ;;  %2507 = vrot.lane.b32.xlu1 %v5112_v51, %s4960_s26  ;;  %v5276_v34 = vpop.f32.mrb[11].mxu1  ;;  %v5279_v29 = vsel %vm1239_vm1, %v1289_v61, %v1291_v10  ;;  %v5282_v33 = vsel %vm8540_vm2, %v2455_v36, %v2457_v11 }
  0xff   : > { %8733 = vst [vmem:[#allocation37_spill] sm:$0xff] %v5231_v52  ;;  %8734 = vst [vmem:[#allocation38_spill] sm:$0xff] %v5233_v55  ;;  %v5285_v60 = vsel %vm8540_vm2, %v2417_v8, %v2419_v12  ;;  %v5288_v35 = vsel %vm8540_vm2, %v2457_v11, %v2459_v13  ;;  %1767 = vrot.lane.b32.xlu0 %v5135_v1, %s4959_s25  ;;  %v1253_v47 = vrot.slane %v5274_v32, 7  ;;  %v1293_v46 = vrot.slane %v5276_v34, 7 }
 0x100   : > { %8735 = vst [vmem:[#allocation39_spill] sm:$0xff] %v5236_v56  ;;  %8736 = vst [vmem:[#allocation40_spill] sm:$0xff] %v5239_v57  ;;  %v2421_v61 = vrot.slane %v5274_v32, 1  ;;  %v1295_v36 = vrot.slane %v5258_v15, 7  ;;  %v2461_v48 = vrot.slane %v5276_v34, 1  ;;  %v2423_v8 = vrot.slane %v5256_v14, 1 }
 0x101   : > { %8737 = vst [vmem:[#allocation41_spill] sm:$0xff] %v5242_v58  ;;  %8738 = vst [vmem:[#allocation42_spill] sm:$0xff] %v5245_v59  ;;  %v2463_v11 = vrot.slane %v5258_v15, 1  ;;  %v5300_v53 = vpop.f32.mrb[12].mxu0  ;;  %v5302_v51 = vpop.f32.mrb[12].mxu1  ;;  %v5305_v1 = vsel %vm1239_vm1, %v1251_v62, %v1253_v47  ;;  %v5308_v37 = vsel %vm1239_vm1, %v1291_v10, %v1293_v46  ;;  %v5311_v17 = vsel %vm1239_vm1, %v1253_v47, %v1255_v50 }
 0x102   : > { %8739 = vst [vmem:[#allocation43_spill] sm:$0xff] %v5256_v14  ;;  %8740 = vst [vmem:[#allocation44_spill] sm:$0xff] %v5258_v15  ;;  %v5314_v54 = vsel %vm8540_vm2, %v2419_v12, %v2421_v61  ;;  %1343 = vrot.lane.b32.xlu1 %v5139_v3, %s4958_s24  ;;  %v5318_v49 = vpop.f32.mrb[13].mxu0  ;;  %v5320_v40 = vpop.f32.mrb[13].mxu1  ;;  %v5326_v62 = vsel %vm8540_vm2, %v2459_v13, %v2461_v48  ;;  %v5329_v10 = vsel %vm8540_vm2, %v2421_v61, %v2423_v8 }
 0x103   : > { %8741 = vst [vmem:[#allocation45_spill] sm:$0xff] %v5261_v2  ;;  %8742 = vst [vmem:[#allocation46_spill] sm:$0xff] %v5264_v16  ;;  %v5332_v47 = vsel %vm8540_vm2, %v2461_v48, %v2463_v11  ;;  %2509 = vrot.lane.b32.xlu0 %v5142_v4, %s4960_s26  ;;  %v1257_v12 = vrot.slane %v5318_v49, 7  ;;  %v2465_v13 = vrot.slane %v5320_v40, 1 }
 0x104   : > { %8743 = vst [vmem:[#allocation47_spill] sm:$0xff] %v5267_v30  ;;  %8744 = vst [vmem:[#allocation48_spill] sm:$0xff] %v5270_v31  ;;  %v5342_v61 = vpop.f32.mrb[14].mxu0 }
 0x105   : > { %8745 = vst [vmem:[#allocation49_spill] sm:$0xff] %v5274_v32  ;;  %8746 = vst [vmem:[#allocation50_spill] sm:$0xff] %v5276_v34  ;;  %v5347_v48 = vsel %vm1239_vm1, %v1255_v50, %v1257_v12  ;;  %v5366_v50 = vsel %vm8540_vm2, %v2463_v11, %v2465_v13 }
 0x106   : > { %8747 = vst [vmem:[#allocation51_spill] sm:$0xff] %v5279_v29  ;;  %8748 = vst [vmem:[#allocation52_spill] sm:$0xff] %v5282_v33  ;;  %1600 = vrot.lane.b32.xlu1 %v5130_v63, %s4957_s23 }
 0x107   : > { %8749 = vst [vmem:[#allocation53_spill] sm:$0xff] %v5285_v60  ;;  %8750 = vst [vmem:[#allocation54_spill] sm:$0xff] %v5288_v35  ;;  %v5323_v35 = vsel %vm1239_vm1, %v1293_v46, %v1295_v36  ;;  %v2425_v46 = vrot.slane %v5318_v49, 1  ;;  %1598 = vrot.lane.b32.xlu0 %v5146_v5, %s4957_s23 }
 0x108   : > { %8751 = vst [vmem:[#allocation55_spill] sm:$0xff] %v5300_v53  ;;  %8752 = vst [vmem:[#allocation56_spill] sm:$0xff] %v5302_v51 }
 0x109   : > { %8753 = vst [vmem:[#allocation57_spill] sm:$0xff] %v5305_v1  ;;  %8754 = vst [vmem:[#allocation58_spill] sm:$0xff] %v5308_v37 }
 0x10a   : > { %8755 = vst [vmem:[#allocation59_spill] sm:$0xff] %v5311_v17  ;;  %8756 = vst [vmem:[#allocation60_spill] sm:$0xff] %v5314_v54  ;;  %v1297_v54 = vrot.slane %v5320_v40, 7  ;;  %v1259_v17 = vrot.slane %v5300_v53, 7  ;;  %1640 = vrot.lane.b32.xlu1 %v5132_v0, %s4957_s23  ;;  %v8784_v0 = vrot.slane %v5092_v42, 1 }
 0x10b   : > { %8757 = vst [vmem:[#allocation61_spill] sm:$0xff] %v5318_v49  ;;  %8758 = vst [vmem:[#allocation62_spill] sm:$0xff] %v5320_v40  ;;  %v5360_v40 = vpop.f32.mrb[15].mxu0  ;;  %1638 = vrot.lane.b32.xlu0 %v5148_v6, %s4957_s23 }
 0x10c   : > { %8759 = vst [vmem:[#allocation63_spill] sm:$0xff] %v5323_v35  ;;  %8760 = vst [vmem:[#allocation64_spill] sm:$0xff] %v5326_v62  ;;  %v2427_v62 = vrot.slane %v5300_v53, 1  ;;  %v5350_v4 = vsel %vm1239_vm1, %v1295_v36, %v1297_v54  ;;  %v5356_v35 = vsel %vm8540_vm2, %v2423_v8, %v2425_v46  ;;  %v1299_v53 = vrot.slane %v5302_v51, 7 }
 0x10d   : > { %8761 = vst [vmem:[#allocation65_spill] sm:$0xff] %v5329_v10  ;;  %8762 = vst [vmem:[#allocation66_spill] sm:$0xff] %v5332_v47  ;;  %v5344_v10 = vpop.f32.mrb[14].mxu1  ;;  %v5353_v47 = vsel %vm1239_vm1, %v1257_v12, %v1259_v17  ;;  %v2467_v12 = vrot.slane %v5302_v51, 1  ;;  %v1261_v8 = vrot.slane %v5360_v40, 7 }
 0x10e   : > { %8763 = vst [vmem:[#allocation67_spill] sm:$0xff] %v5342_v61  ;;  %8764 = vst [vmem:[#allocation68_spill] sm:$0xff] %v5344_v10  ;;  %v5362_v49 = vpop.f32.mrb[15].mxu1  ;;  %v5369_v36 = vsel %vm8540_vm2, %v2425_v46, %v2427_v62  ;;  %1729 = vrot.lane.b32.xlu1 %v5151_v7, %s4959_s25 }
 0x10f   : > { %8765 = vst [vmem:[#allocation69_spill] sm:$0xff] %v5347_v48  ;;  %8766 = vst [vmem:[#allocation70_spill] sm:$0xff] %v5350_v4  ;;  %v1301_v63 = vrot.slane %v5362_v49, 7  ;;  %v5381_v11 = vsel %vm8540_vm2, %v2465_v13, %v2467_v12  ;;  %v2469_v46 = vrot.slane %v5362_v49, 1  ;;  %1305 = vrot.lane.b32.xlu0 %v5174_v20, %s4958_s24 }
 0x110   : > { %8767 = vst [vmem:[#allocation71_spill] sm:$0xff] %v5353_v47  ;;  %8768 = vst [vmem:[#allocation72_spill] sm:$0xff] %v5356_v35  ;;  %v2429_v35 = vrot.slane %v5360_v40, 1  ;;  %v5378_v47 = vsel %vm1239_vm1, %v1297_v54, %v1299_v53 }
 0x111   : > { %8769 = vst [vmem:[#allocation73_spill] sm:$0xff] %v5360_v40  ;;  %8770 = vst [vmem:[#allocation74_spill] sm:$0xff] %v5362_v49  ;;  %v5390_v5 = vsel %vm1239_vm1, %v1299_v53, %v1301_v63  ;;  %v5400_v13 = vsel %vm8540_vm2, %v2467_v12, %v2469_v46 }
 0x112   : > { %8771 = vst [vmem:[#allocation75_spill] sm:$0xff] %v5366_v50  ;;  %8772 = vst [vmem:[#allocation76_spill] sm:$0xff] %v5369_v36  ;;  %v5384_v36 = vpop.f32.mrb[16].mxu0  ;;  %v5387_v50 = vsel %vm1239_vm1, %v1259_v17, %v1261_v8  ;;  %v5393_v4 = vsel %vm8540_vm2, %v2427_v62, %v2429_v35  ;;  %v8782_v62 = vrot.slane %v5092_v42, 7  ;;  %1769 = vrot.lane.b32.xlu1 %v5139_v3, %s4959_s25  ;;  %v5460_v42 = vpop.f32.mrb[16].mxu1 }
 0x113   : > { %8773 = vst [vmem:[#allocation77_spill] sm:$0xff] %v5378_v47  ;;  %8774 = vst [vmem:[#allocation78_spill] sm:$0xff] %v5381_v11  ;;  %v5397_v54 = vpop.f32.mrb[17].mxu0  ;;  %1307 = vrot.lane.b32.xlu0 %v5177_v21, %s4958_s24 }
 0x114   : > { %8775 = vst [vmem:[#allocation79_spill] sm:$0xff] %v5384_v36  ;;  %8776 = vst [vmem:[#allocation80_spill] sm:$0xff] %v5387_v50  ;;  %v5404_v49 = vpop.f32.mrb[18].mxu0  ;;  %v1265_v7 = vrot.slane %v5397_v54, 7  ;;  %v2433_v3 = vrot.slane %v5397_v54, 1 }
 0x115   : > { %8777 = vst [vmem:[#allocation81_spill] sm:$0xff] %v5390_v5  ;;  %8778 = vst [vmem:[#allocation82_spill] sm:$0xff] %v5393_v4  ;;  %v1271_v53 = vrot.slane %v5404_v49, 7  ;;  %v2439_v17 = vrot.slane %v5404_v49, 1 }
 0x116   : > { %8779 = vst [vmem:[#allocation83_spill] sm:$0xff] %v5397_v54  ;;  %8780 = vst [vmem:[#allocation84_spill] sm:$0xff] %v5400_v13  ;;  %2511 = vrot.lane.b32.xlu1 %v5155_v9, %s4960_s26 }
 0x117   : > { %8781 = vst [vmem:[#allocation85_spill] sm:$0xff] %v5404_v49  ;;  %v5415_v12 = vsel %vm1239_vm1, %v1271_v53, %v8782_v62  ;;  %v5420_v6 = vsel %vm8540_vm2, %v2439_v17, %v8784_v0  ;;  %1345 = vrot.lane.b32.xlu0 %v5180_v22, %s4958_s24  ;;  %v1263_v0 = vrot.slane %v5342_v61, 7  ;;  %v2431_v62 = vrot.slane %v5342_v61, 1  ;;  %8790 = vst [vmem:[#allocation92_spill] sm:$0xff] %v5460_v42 }
 0x118   : > { %8783 = vst [vmem:[#allocation86_spill] sm:$0xff] %v5415_v12  ;;  %8785 = vst [vmem:[#allocation87_spill] sm:$0xff] %v5420_v6 }
 0x119   : > { %v5450_v9 = vsel %vm1239_vm1, %v1263_v0, %v1265_v7 }
 0x11a   : > { %1347 = vrot.lane.b32.xlu1 %v5183_v23, %s4958_s24  ;;  %8787 = vst [vmem:[#allocation89_spill] sm:$0xff] %v5450_v9 }
 0x11b   : > { %1731 = vrot.lane.b32.xlu0 %v5174_v20, %s4959_s25  ;;  %v5447_v20 = vsel %vm1239_vm1, %v1261_v8, %v1263_v0  ;;  %v1303_v8 = vrot.slane %v5344_v10, 7  ;;  %v8403_v0 = vrot.slane %v5344_v10, 1 }
 0x11c   : > { %8786 = vst [vmem:[#allocation88_spill] sm:$0xff] %v5447_v20 }
 0x11e   : > { %1604 = vrot.lane.b32.xlu1 %v5169_v18, %s4957_s23 }
 0x11f   : > { %1771 = vrot.lane.b32.xlu0 %v5180_v22, %s4959_s25  ;;  %v5453_v22 = vsel %vm8540_vm2, %v2431_v62, %v2433_v3 }
 0x120   : > { %8788 = vst [vmem:[#allocation90_spill] sm:$0xff] %v5453_v22 }
 0x122   : > { %1644 = vrot.lane.b32.xlu1 %v5171_v19, %s4957_s23  ;;  %v5456_v19 = vsel %vm8540_vm2, %v2429_v35, %v2431_v62  ;;  %v5474_v62 = vsel %vm1239_vm1, %v1301_v63, %v1303_v8  ;;  %v5498_v63 = vpop.f32.mrb[19].mxu0 }
 0x123   : > { %2513 = vrot.lane.b32.xlu0 %v5192_v26, %s4960_s26  ;;  %8789 = vst [vmem:[#allocation91_spill] sm:$0xff] %v5456_v19  ;;  %v5464_v26 = vpop.f32.mrb[17].mxu1  ;;  %8792 = vst [vmem:[#allocation94_spill] sm:$0xff] %v5474_v62 }
 0x124   : > { %8791 = vst [vmem:[#allocation93_spill] sm:$0xff] %v5464_v26  ;;  %v8404_v35 = vrot.slane %v5464_v26, 7  ;;  %8795 = vst [vmem:[#allocation97_spill] sm:$0xff] %v5498_v63 }
 0x126   : > { %1733 = vrot.lane.b32.xlu1 %v5177_v21, %s4959_s25  ;;  %v5479_v21 = vsel %vm8540_vm2, %v2469_v46, %v8403_v0  ;;  %v1267_v46 = vrot.slane %v5384_v36, 7  ;;  %v1269_v0 = vrot.slane %v5498_v63, 7 }
 0x127   : > { %1602 = vrot.lane.b32.xlu0 %v5187_v24, %s4957_s23  ;;  %8793 = vst [vmem:[#allocation95_spill] sm:$0xff] %v5479_v21 }
 0x12a   : > { %1773 = vrot.lane.b32.xlu1 %v5183_v23, %s4959_s25  ;;  %v5486_v23 = vsel %vm1239_vm1, %v1303_v8, %v8404_v35  ;;  %v2435_v8 = vrot.slane %v5384_v36, 1  ;;  %v2437_v35 = vrot.slane %v5498_v63, 1 }
 0x12b   : > { %1642 = vrot.lane.b32.xlu0 %v5189_v25, %s4957_s23  ;;  %8794 = vst [vmem:[#allocation96_spill] sm:$0xff] %v5486_v23  ;;  %v5507_v23 = vsel %vm1239_vm1, %v1265_v7, %v1267_v46  ;;  %v8838_v25 = vld [vmem:[#allocation76_spill] sm:$0xff] }
 0x12c   : > { %8796 = vst [vmem:[#allocation98_spill] sm:$0xff] %v5507_v23  ;;  %v5538_v7 = vsel %vm8540_vm2, %v2437_v35, %v2439_v17 }
 0x12d   : > { %8801 = vst [vmem:[#allocation103_spill] sm:$0xff] %v5538_v7 }
 0x12e   : > { %2475 = vrot.lane.b32.xlu1 %v5195_v27, %s4960_s26 }
 0x12f   : > { %1349 = vrot.lane.b32.xlu0 %v5218_v41, %s4958_s24 }
 0x132   : > { %2515 = vrot.lane.b32.xlu1 %v5198_v28, %s4960_s26  ;;  %v5516_v28 = vsel %vm8540_vm2, %v2435_v8, %v2437_v35 }
 0x133   : > { %1735 = vrot.lane.b32.xlu0 %v5221_v43, %s4959_s25  ;;  %8799 = vst [vmem:[#allocation101_spill] sm:$0xff] %v5516_v28 }
 0x136   : > { %1309 = vrot.lane.b32.xlu1 %v5221_v43, %s4958_s24  ;;  %v5510_v43 = vsel %vm8540_vm2, %v2433_v3, %v2435_v8  ;;  %v5535_v3 = vsel %vm1239_vm1, %v1269_v0, %v1271_v53  ;;  %v210_v8 = vld [vmem:[%s5010_s22 + $0x138] sm:$0xff]  ;;  %v5558_v53 = vpop.permute.xlu0 %2021 }
 0x137   : > { %1775 = vrot.lane.b32.xlu0 %v5218_v41, %s4959_s25  ;;  %8797 = vst [vmem:[#allocation99_spill] sm:$0xff] %v5510_v43  ;;  %v5513_v41 = vsel %vm1239_vm1, %v1267_v46, %v1269_v0  ;;  %8800 = vst [vmem:[#allocation102_spill] sm:$0xff] %v5535_v3  ;;  %v209_v46 = vld [vmem:[%s5010_s22 + $0x130] sm:$0xff] }
 0x138   : > { %8798 = vst [vmem:[#allocation100_spill] sm:$0xff] %v5513_v41  ;;  %4918 = vmatprep.mubr.msk.f32.mxu1 %vm8539_vm0, %v209_v46  ;;  %8802 = vst [vmem:[#allocation104_spill] sm:$0xff] %v5558_v53  ;;  %v8829_v53 = vld [vmem:[#allocation66_spill] sm:$0xff] }
 0x139   : > { %4919 = vmatmul.mubr.msk.f32.gmra.mrb[18].mxu1 %vm8539_vm0, %v210_v8 }
 0x13a   : > { %1311 = vrot.lane.b32.xlu1 %v5224_v44, %s4958_s24 }
 0x13b   : > { %2477 = vrot.lane.b32.xlu0 %v5227_v45, %s4960_s26  ;;  %v8811_v45 = vld [vmem:[#allocation54_spill] sm:$0xff] }
 0x13e   : > { %1351 = vrot.lane.b32.xlu1 %v5236_v56, %s4958_s24 }
 0x13f   : > { %2517 = vrot.lane.b32.xlu0 %v5239_v57, %s4960_s26 }
 0x142   : > { %1608 = vrot.lane.b32.xlu1 %v5213_v38, %s4957_s23 }
 0x143   : > { %1606 = vrot.lane.b32.xlu0 %v5231_v52, %s4957_s23 }
 0x146   : > { %1648 = vrot.lane.b32.xlu1 %v5215_v39, %s4957_s23 }
 0x147   : > { %1646 = vrot.lane.b32.xlu0 %v5233_v55, %s4957_s23  ;;  %v8826_v55 = vld [vmem:[#allocation65_spill] sm:$0xff] }
 0x14a   : > { %1737 = vrot.lane.b32.xlu1 %v5224_v44, %s4959_s25 }
 0x14b   : > { %1313 = vrot.lane.b32.xlu0 %v5261_v2, %s4958_s24 }
 0x14e   : > { %1777 = vrot.lane.b32.xlu1 %v5236_v56, %s4959_s25 }
 0x14f   : > { %1353 = vrot.lane.b32.xlu0 %v5264_v16, %s4958_s24 }
 0x152   : > { %2479 = vrot.lane.b32.xlu1 %v5242_v58, %s4960_s26  ;;  %v8814_v58 = vld [vmem:[#allocation59_spill] sm:$0xff] }
 0x153   : > { %1739 = vrot.lane.b32.xlu0 %v5261_v2, %s4959_s25 }
 0x156   : > { %2519 = vrot.lane.b32.xlu1 %v5245_v59, %s4960_s26 }
 0x157   : > { %1779 = vrot.lane.b32.xlu0 %v5264_v16, %s4959_s25 }
 0x15a   : > { %1315 = vrot.lane.b32.xlu1 %v5267_v30, %s4958_s24 }
 0x15b   : > { %2481 = vrot.lane.b32.xlu0 %v5270_v31, %s4960_s26 }
 0x15c   : > { %v5564_v17 = vpop.permute.xlu1 %1632 }
 0x15d   : > { %8803 = vst [vmem:[#allocation105_spill] sm:$0xff] %v5564_v17  ;;  %v5566_v0 = vpop.permute.xlu0 %1630 }
 0x15e   : > { %8804 = vst [vmem:[#allocation106_spill] sm:$0xff] %v5566_v0  ;;  %1355 = vrot.lane.b32.xlu1 %v5279_v29, %s4958_s24 }
 0x15f   : > { %2521 = vrot.lane.b32.xlu0 %v5282_v33, %s4960_s26 }
 0x160   : > { %v5572_v35 = vpop.permute.xlu1 %1339 }
 0x161   : > { %v5574_v46 = vpop.permute.xlu0 %1594 }
 0x162   : > { %8805 = vst [vmem:[#allocation107_spill] sm:$0xff] %v5574_v46  ;;  %1612 = vrot.lane.b32.xlu1 %v5256_v14, %s4957_s23 }
 0x163   : > { %1610 = vrot.lane.b32.xlu0 %v5274_v32, %s4957_s23 }
 0x164   : > { %v5580_v8 = vpop.permute.xlu1 %1596 }
 0x165   : > { %8806 = vst [vmem:[#allocation108_spill] sm:$0xff] %v5580_v8  ;;  %v5582_v56 = vpop.permute.xlu0 %1634 }
 0x166   : > { %8807 = vst [vmem:[#allocation109_spill] sm:$0xff] %v5582_v56  ;;  %1652 = vrot.lane.b32.xlu1 %v5258_v15, %s4957_s23  ;;  %v8820_v15 = vld [vmem:[#allocation55_spill] sm:$0xff] }
 0x167   : > { %1650 = vrot.lane.b32.xlu0 %v5276_v34, %s4957_s23  ;;  %v8821_v34 = vld [vmem:[#allocation61_spill] sm:$0xff]  ;;  %v8831_v56 = vld [vmem:[#allocation71_spill] sm:$0xff] }
 0x168   : > { %v5588_v16 = vpop.permute.xlu1 %1636 }
 0x169   : > { %8808 = vst [vmem:[#allocation110_spill] sm:$0xff] %v5588_v16  ;;  %v5590_v44 = vpop.permute.xlu0 %1341 }
 0x16a   : > { %1741 = vrot.lane.b32.xlu1 %v5267_v30, %s4959_s25 }
 0x16b   : > { %1317 = vrot.lane.b32.xlu0 %v5305_v1, %s4958_s24 }
 0x16c   : > { %v5596_v2 = vpop.permute.xlu1 %1765 }
 0x16d   : > { %v5598_v33 = vpop.permute.xlu0 %1727 }
 0x16e   : > { %1781 = vrot.lane.b32.xlu1 %v5279_v29, %s4959_s25 }
 0x16f   : > { %1357 = vrot.lane.b32.xlu0 %v5308_v37, %s4958_s24 }
 0x170   : > { %v5604_v57 = vpop.permute.xlu1 %2507 }
 0x171   : > { %8809 = vst [vmem:[#allocation111_spill] sm:$0xff] %v5604_v57  ;;  %v5606_v59 = vpop.permute.xlu0 %1767 }
 0x172   : > { %2483 = vrot.lane.b32.xlu1 %v5285_v60, %s4960_s26  ;;  %v8815_v60 = vld [vmem:[#allocation60_spill] sm:$0xff] }
 0x173   : > { %1743 = vrot.lane.b32.xlu0 %v5305_v1, %s4959_s25 }
 0x174   : > { %v5612_v30 = vpop.permute.xlu1 %1343 }
 0x175   : > { %v5614_v31 = vpop.permute.xlu0 %2509 }
 0x176   : > { %8810 = vst [vmem:[#allocation112_spill] sm:$0xff] %v5614_v31  ;;  %2523 = vrot.lane.b32.xlu1 %v8811_v45, %s4960_s26  ;;  %v8818_v31 = vld [vmem:[#allocation63_spill] sm:$0xff]  ;;  %v8819_v45 = vld [vmem:[#allocation64_spill] sm:$0xff] }
 0x177   : > { %1783 = vrot.lane.b32.xlu0 %v5308_v37, %s4959_s25 }
 0x178   : > { %v5620_v29 = vpop.permute.xlu1 %1600 }
 0x179   : > { %8812 = vst [vmem:[#allocation113_spill] sm:$0xff] %v5620_v29  ;;  %v5622_v57 = vpop.permute.xlu0 %1598 }
 0x17a   : > { %8813 = vst [vmem:[#allocation114_spill] sm:$0xff] %v5622_v57  ;;  %1319 = vrot.lane.b32.xlu1 %v8814_v58, %s4958_s24 }
 0x17b   : > { %2485 = vrot.lane.b32.xlu0 %v8815_v60, %s4960_s26 }
 0x17c   : > { %v5628_v1 = vpop.permute.xlu1 %1640 }
 0x17d   : > { %8816 = vst [vmem:[#allocation115_spill] sm:$0xff] %v5628_v1  ;;  %v5630_v27 = vpop.permute.xlu0 %1638 }
 0x17e   : > { %8817 = vst [vmem:[#allocation116_spill] sm:$0xff] %v5630_v27  ;;  %1359 = vrot.lane.b32.xlu1 %v8818_v31, %s4958_s24  ;;  %v8822_v27 = vld [vmem:[#allocation62_spill] sm:$0xff] }
 0x17f   : > { %2525 = vrot.lane.b32.xlu0 %v8819_v45, %s4960_s26 }
 0x180   : > { %v5636_v37 = vpop.permute.xlu1 %1729 }
 0x181   : > { %v5638_v0 = vpop.permute.xlu0 %1305 }
 0x182   : > { %1616 = vrot.lane.b32.xlu1 %v8820_v15, %s4957_s23 }
 0x183   : > { %1614 = vrot.lane.b32.xlu0 %v8821_v34, %s4957_s23 }
 0x184   : > { %v5644_v60 = vpop.permute.xlu1 %1769 }
 0x185   : > { %v5646_v1 = vpop.permute.xlu0 %1307 }
 0x186   : > { %1656 = vrot.lane.b32.xlu1 %v5302_v51, %s4957_s23  ;;  %v8824_v51 = vld [vmem:[#allocation70_spill] sm:$0xff] }
 0x187   : > { %1654 = vrot.lane.b32.xlu0 %v8822_v27, %s4957_s23 }
 0x188   : > { %v5652_v45 = vpop.permute.xlu1 %2511 }
 0x189   : > { %8823 = vst [vmem:[#allocation117_spill] sm:$0xff] %v5652_v45  ;;  %v5654_v29 = vpop.permute.xlu0 %1345 }
 0x18a   : > { %1745 = vrot.lane.b32.xlu1 %v8814_v58, %s4959_s25 }
 0x18b   : > { %1321 = vrot.lane.b32.xlu0 %v5347_v48, %s4958_s24 }
 0x18c   : > { %v5660_v39 = vpop.permute.xlu1 %1347 }
 0x18d   : > { %v5662_v57 = vpop.permute.xlu0 %1731 }
 0x18e   : > { %1785 = vrot.lane.b32.xlu1 %v8818_v31, %s4959_s25 }
 0x18f   : > { %1361 = vrot.lane.b32.xlu0 %v8824_v51, %s4958_s24 }
 0x190   : > { %v5668_v27 = vpop.permute.xlu1 %1604 }
 0x191   : > { %8825 = vst [vmem:[#allocation118_spill] sm:$0xff] %v5668_v27  ;;  %v5670_v45 = vpop.permute.xlu0 %1771 }
 0x192   : > { %2487 = vrot.lane.b32.xlu1 %v8826_v55, %s4960_s26  ;;  %v8832_v55 = vld [vmem:[#allocation72_spill] sm:$0xff] }
 0x193   : > { %1747 = vrot.lane.b32.xlu0 %v5347_v48, %s4959_s25 }
 0x194   : > { %v5676_v58 = vpop.permute.xlu1 %1644 }
 0x195   : > { %8827 = vst [vmem:[#allocation119_spill] sm:$0xff] %v5676_v58  ;;  %v5678_v16 = vpop.permute.xlu0 %2513 }
 0x196   : > { %8828 = vst [vmem:[#allocation120_spill] sm:$0xff] %v5678_v16  ;;  %2527 = vrot.lane.b32.xlu1 %v8829_v53, %s4960_s26  ;;  %v8834_v16 = vld [vmem:[#allocation75_spill] sm:$0xff] }
 0x197   : > { %1787 = vrot.lane.b32.xlu0 %v8824_v51, %s4959_s25 }
 0x198   : > { %v5684_v31 = vpop.permute.xlu1 %1733 }
 0x199   : > { %v5686_v27 = vpop.permute.xlu0 %1602 }
 0x19a   : > { %8830 = vst [vmem:[#allocation121_spill] sm:$0xff] %v5686_v27  ;;  %1323 = vrot.lane.b32.xlu1 %v8831_v56, %s4958_s24 }
 0x19b   : > { %2489 = vrot.lane.b32.xlu0 %v8832_v55, %s4960_s26 }
 0x19c   : > { %v5692_v48 = vpop.permute.xlu1 %1773 }
 0x19d   : > { %v5694_v58 = vpop.permute.xlu0 %1642 }
 0x19e   : > { %8833 = vst [vmem:[#allocation122_spill] sm:$0xff] %v5694_v58  ;;  %1363 = vrot.lane.b32.xlu1 %v5378_v47, %s4958_s24 }
 0x19f   : > { %2529 = vrot.lane.b32.xlu0 %v8834_v16, %s4960_s26 }
 0x1a0   : > { %v5700_v51 = vpop.permute.xlu1 %2475 }
 0x1a1   : > { %8835 = vst [vmem:[#allocation123_spill] sm:$0xff] %v5700_v51  ;;  %v5702_v53 = vpop.permute.xlu0 %1349 }
 0x1a2   : > { %1620 = vrot.lane.b32.xlu1 %v5342_v61, %s4957_s23 }
 0x1a3   : > { %1618 = vrot.lane.b32.xlu0 %v5360_v40, %s4957_s23 }
 0x1a4   : > { %v5708_v55 = vpop.permute.xlu1 %2515 }
 0x1a5   : > { %8836 = vst [vmem:[#allocation124_spill] sm:$0xff] %v5708_v55  ;;  %v5710_v27 = vpop.permute.xlu0 %1735 }
 0x1a6   : > { %1749 = vrot.lane.b32.xlu1 %v8831_v56, %s4959_s25 }
 0x1a7   : > { %1325 = vrot.lane.b32.xlu0 %v5387_v50, %s4958_s24 }
 0x1a8   : > { %v5716_v16 = vpop.permute.xlu1 %1309 }
 0x1a9   : > { %v5718_v51 = vpop.permute.xlu0 %1775 }
 0x1aa   : > { %1789 = vrot.lane.b32.xlu1 %v5378_v47, %s4959_s25 }
 0x1ab   : > { %1365 = vrot.lane.b32.xlu0 %v5390_v5, %s4958_s24 }
 0x1ac   : > { %v5724_v58 = vpop.permute.xlu1 %1311 }
 0x1ad   : > { %v5726_v55 = vpop.permute.xlu0 %2477 }
 0x1ae   : > { %8837 = vst [vmem:[#allocation125_spill] sm:$0xff] %v5726_v55  ;;  %2491 = vrot.lane.b32.xlu1 %v8838_v25, %s4960_s26 }
 0x1af   : > { %1751 = vrot.lane.b32.xlu0 %v5387_v50, %s4959_s25 }
 0x1b0   : > { %v5732_v56 = vpop.permute.xlu1 %1351 }
 0x1b1   : > { %v5734_v8 = vpop.permute.xlu0 %2517 }
 0x1b2   : > { %8839 = vst [vmem:[#allocation126_spill] sm:$0xff] %v5734_v8  ;;  %2531 = vrot.lane.b32.xlu1 %v5381_v11, %s4960_s26 }
 0x1b3   : > { %2493 = vrot.lane.b32.xlu0 %v5393_v4, %s4960_s26 }
 0x1b4   : > { %v5740_v47 = vpop.permute.xlu1 %1608 }
 0x1b5   : > { %8840 = vst [vmem:[#allocation127_spill] sm:$0xff] %v5740_v47  ;;  %v5742_v5 = vpop.permute.xlu0 %1606 }
 0x1b6   : > { %8841 = vst [vmem:[#allocation128_spill] sm:$0xff] %v5742_v5  ;;  %1327 = vrot.lane.b32.xlu1 %v5447_v20, %s4958_s24 }
 0x1b7   : > { %1622 = vrot.lane.b32.xlu0 %v5397_v54, %s4957_s23 }
 0x1b8   : > { %v5748_v55 = vpop.permute.xlu1 %1648 }
 0x1b9   : > { %8842 = vst [vmem:[#allocation129_spill] sm:$0xff] %v5748_v55  ;;  %v5750_v50 = vpop.permute.xlu0 %1646 }
 0x1ba   : > { %8843 = vst [vmem:[#allocation130_spill] sm:$0xff] %v5750_v50  ;;  %1367 = vrot.lane.b32.xlu1 %v5474_v62, %s4958_s24 }
 0x1bb   : > { %1329 = vrot.lane.b32.xlu0 %v5450_v9, %s4958_s24 }
 0x1bc   : > { %v5756_v8 = vpop.permute.xlu1 %1737 }
 0x1bd   : > { %v5758_v11 = vpop.permute.xlu0 %1313 }
 0x1be   : > { %1624 = vrot.lane.b32.xlu1 %v5384_v36, %s4957_s23 }
 0x1bf   : > { %1755 = vrot.lane.b32.xlu0 %v5450_v9, %s4959_s25 }
 0x1c0   : > { %v5764_v4 = vpop.permute.xlu1 %1777 }
 0x1c1   : > { %v5766_v25 = vpop.permute.xlu0 %1353 }
 0x1c2   : > { %1753 = vrot.lane.b32.xlu1 %v5447_v20, %s4959_s25 }
 0x1c3   : > { %2497 = vrot.lane.b32.xlu0 %v5453_v22, %s4960_s26 }
 0x1c4   : > { %v5772_v62 = vpop.permute.xlu1 %2479 }
 0x1c5   : > { %8844 = vst [vmem:[#allocation131_spill] sm:$0xff] %v5772_v62  ;;  %v5774_v55 = vpop.permute.xlu0 %1739 }
 0x1c6   : > { %2495 = vrot.lane.b32.xlu1 %v5456_v19, %s4960_s26 }
 0x1c7   : > { %1626 = vrot.lane.b32.xlu0 %v5498_v63, %s4957_s23 }
 0x1c8   : > { %v5780_v9 = vpop.permute.xlu1 %2519 }
 0x1c9   : > { %8845 = vst [vmem:[#allocation132_spill] sm:$0xff] %v5780_v9  ;;  %v5782_v50 = vpop.permute.xlu0 %1779  ;;  %v597_v9 = vlaneseq }
 0x1ca   : > { %1331 = vrot.lane.b32.xlu1 %v5507_v23, %s4958_s24 }
 0x1cb   : > { %1337 = vrot.lane.b32.xlu0 %v5415_v12, %s4958_s24 }
 0x1cc   : > { %v5788_v20 = vpop.permute.xlu1 %1315 }
 0x1cd   : > { %v5790_v62 = vpop.permute.xlu0 %2481 }
 0x1ce   : > { %8846 = vst [vmem:[#allocation133_spill] sm:$0xff] %v5790_v62  ;;  %1628 = vrot.lane.b32.xlu1 %v5404_v49, %s4957_s23  ;;  %v5806_v62 = vshrl.u32 %v597_v9, 7 }
 0x1cf   : > { %1763 = vrot.lane.b32.xlu0 %v5415_v12, %s4959_s25 }
 0x1d0   : > { %v5796_v22 = vpop.permute.xlu1 %1355  ;;  %8849 = vst [vmem:[#allocation136_spill] sm:$0xff] %v5806_v62  ;;  %v616_v12 = vadd.s32 144, %v5806_v62 }
 0x1d1   : > { %v5798_v19 = vpop.permute.xlu0 %2521 }
 0x1d2   : > { %8847 = vst [vmem:[#allocation134_spill] sm:$0xff] %v5798_v19  ;;  %1757 = vrot.lane.b32.xlu1 %v5507_v23, %s4959_s25 }
 0x1d3   : > { %2505 = vrot.lane.b32.xlu0 %v5420_v6, %s4960_s26  ;;  %v760_v6 = vand.u32 15, %v616_v12 }
 0x1d4   : > { %v5804_v47 = vpop.permute.xlu1 %1612 }
 0x1d5   : > { %8848 = vst [vmem:[#allocation135_spill] sm:$0xff] %v5804_v47  ;;  %v5808_v5 = vpop.permute.xlu0 %1610  ;;  %vm5829_vm3 = vcmp.ge.s32.totalorder %v760_v6, 1  ;;  %v8856_v6 = vmov 0 }
 0x1d6   : > { %8850 = vst [vmem:[#allocation137_spill] sm:$0xff] %v5808_v5  ;;  %2499 = vrot.lane.b32.xlu1 %v5510_v43, %s4960_s26  ;;  %v8853_v43 = vmov 0  ;;  %v1419_v5 = vsel %vm5829_vm3, %v5590_v44, 0.0  ;;  %v8860_v44 = vmov 0 }
 0x1d7   : > { %1333 = vrot.lane.b32.xlu0 %v5513_v41, %s4958_s24  ;;  %v8854_v43 = vsel %vm5829_vm3, 4294967295, %v8853_v43 }
 0x1d8   : > { %v5815_v19 = vpop.permute.xlu1 %1652  ;;  %8855 = vst [vmem:[#allocation140_spill] sm:$0xff] %v8854_v43 }
 0x1d9   : > { %8851 = vst [vmem:[#allocation138_spill] sm:$0xff] %v5815_v19  ;;  %v5817_v23 = vpop.permute.xlu0 %1650  ;;  %v634_v19 = vand.u32 15, %v5806_v62 }
 0x1da   : > { %8852 = vst [vmem:[#allocation139_spill] sm:$0xff] %v5817_v23  ;;  %1335 = vrot.lane.b32.xlu1 %v5535_v3, %s4958_s24  ;;  %v618_v23 = vadd.s32 160, %v5806_v62 }
 0x1db   : > { %1759 = vrot.lane.b32.xlu0 %v5513_v41, %s4959_s25  ;;  %vm5846_vm4 = vcmp.ge.s32.totalorder %v634_v19, 1 }
 0x1dc   : > { %v5823_v9 = vpop.permute.xlu1 %1741  ;;  %v8857_v6 = vsel %vm5846_vm4, 4294967295, %v8856_v6  ;;  %v1823_v17 = vsel %vm5846_vm4, %v5598_v33, 0.0  ;;  %v600_v33 = vadd.s32 16, %v5806_v62 }
 0x1dd   : > { %v5825_v47 = vpop.permute.xlu0 %1317  ;;  %8858 = vst [vmem:[#allocation141_spill] sm:$0xff] %v8857_v6 }
 0x1de   : > { %1761 = vrot.lane.b32.xlu1 %v5535_v3, %s4959_s25  ;;  %v774_v3 = vand.u32 15, %v618_v23 }
 0x1df   : > { %2501 = vrot.lane.b32.xlu0 %v5516_v28, %s4960_s26 }
 0x1e0   : > { %v5837_v12 = vpop.permute.xlu1 %1781  ;;  %vm5860_vm5 = vcmp.ge.s32.totalorder %v774_v3, 1 }
 0x1e1   : > { %v5839_v41 = vpop.permute.xlu0 %1357  ;;  %v8861_v44 = vsel %vm5860_vm5, 4294967295, %v8860_v44  ;;  %v1843_v23 = vsel %vm5860_vm5, %v5606_v59, 0.0  ;;  %v620_v59 = vadd.s32 176, %v5806_v62 }
 0x1e2   : > { %2503 = vrot.lane.b32.xlu1 %v5538_v7, %s4960_s26  ;;  %8862 = vst [vmem:[#allocation143_spill] sm:$0xff] %v8861_v44 }
 0x1e3   : > { %1501 = vrot.lane.b32.xlu0 %v1419_v5, %s4956_s18 }
 0x1e4   : > { %v5851_v46 = vpop.permute.xlu1 %2483 }
 0x1e5   : > { %8859 = vst [vmem:[#allocation142_spill] sm:$0xff] %v5851_v46  ;;  %v5853_v28 = vpop.permute.xlu0 %1743 }
 0x1e6   : > { %1499 = vrot.lane.b32.xlu1 %v5572_v35, %s4956_s18 }
 0x1e7   : > { %1887 = vrot.lane.b32.xlu0 %v1823_v17, %s4956_s18  ;;  %v1401_v17 = vsel %vm5846_vm4, %v5638_v0, 0.0  ;;  %v8866_v0 = vmov 0 }
 0x1e8   : > { %v5865_v19 = vpop.permute.xlu1 %2523 }
 0x1e9   : > { %8863 = vst [vmem:[#allocation144_spill] sm:$0xff] %v5865_v19  ;;  %v5867_v5 = vpop.permute.xlu0 %1783  ;;  %v648_v19 = vand.u32 15, %v600_v33 }
 0x1ea   : > { %1925 = vrot.lane.b32.xlu1 %v5596_v2, %s4956_s18 }
 0x1eb   : > { %1927 = vrot.lane.b32.xlu0 %v1843_v23, %s4956_s18  ;;  %v1421_v23 = vsel %vm5860_vm5, %v5654_v29, 0.0  ;;  %vm5896_vm6 = vcmp.ge.s32.totalorder %v648_v19, 1 }
 0x1ec   : > { %v5876_v3 = vpop.permute.xlu1 %1319  ;;  %v8867_v0 = vsel %vm5896_vm6, 4294967295, %v8866_v0  ;;  %v1825_v6 = vsel %vm5896_vm6, %v5662_v57, 0.0  ;;  %v602_v57 = vadd.s32 32, %v5806_v62 }
 0x1ed   : > { %v5878_v35 = vpop.permute.xlu0 %2485  ;;  %8868 = vst [vmem:[#allocation147_spill] sm:$0xff] %v8867_v0 }
 0x1ee   : > { %8864 = vst [vmem:[#allocation145_spill] sm:$0xff] %v5878_v35  ;;  %1503 = vrot.lane.b32.xlu1 %v5612_v30, %s4956_s18  ;;  %v788_v30 = vand.u32 15, %v620_v59  ;;  %v8940_v35 = vld [vmem:[#allocation9_spill] sm:$0xff] }
 0x1ef   : > { %1465 = vrot.lane.b32.xlu0 %v1401_v17, %s4956_s18 }
 0x1f0   : > { %v5887_v2 = vpop.permute.xlu1 %1359  ;;  %vm5910_vm7 = vcmp.ge.s32.totalorder %v788_v30, 1  ;;  %v662_v30 = vand.u32 15, %v602_v57 }
 0x1f1   : > { %v5889_v46 = vpop.permute.xlu0 %2525  ;;  %v1845_v59 = vsel %vm5910_vm7, %v5670_v45, 0.0  ;;  %v622_v45 = vadd.s32 192, %v5806_v62 }
 0x1f2   : > { %8865 = vst [vmem:[#allocation146_spill] sm:$0xff] %v5889_v46  ;;  %1889 = vrot.lane.b32.xlu1 %v5636_v37, %s4956_s18  ;;  %v8871_v37 = vmov 0  ;;  %vm5946_vm8 = vcmp.ge.s32.totalorder %v662_v30, 1 }
 0x1f3   : > { %1505 = vrot.lane.b32.xlu0 %v1421_v23, %s4956_s18  ;;  %v8872_v37 = vsel %vm5910_vm7, 4294967295, %v8871_v37  ;;  %v1827_v0 = vsel %vm5946_vm8, %v5710_v27, 0.0  ;;  %v604_v27 = vadd.s32 48, %v5806_v62 }
 0x1f4   : > { %v5901_v33 = vpop.permute.xlu1 %1616  ;;  %8873 = vst [vmem:[#allocation150_spill] sm:$0xff] %v8872_v37 }
 0x1f5   : > { %8869 = vst [vmem:[#allocation148_spill] sm:$0xff] %v5901_v33  ;;  %v5903_v17 = vpop.permute.xlu0 %1614 }
 0x1f6   : > { %8870 = vst [vmem:[#allocation149_spill] sm:$0xff] %v5903_v17  ;;  %1929 = vrot.lane.b32.xlu1 %v5644_v60, %s4956_s18 }
 0x1f7   : > { %1891 = vrot.lane.b32.xlu0 %v1825_v6, %s4956_s18  ;;  %v1403_v6 = vsel %vm5896_vm6, %v5716_v16, 0.0  ;;  %v8876_v16 = vmov 0 }
 0x1f8   : > { %v5915_v29 = vpop.permute.xlu1 %1656  ;;  %v8877_v16 = vsel %vm5946_vm8, 4294967295, %v8876_v16 }
 0x1f9   : > { %8874 = vst [vmem:[#allocation151_spill] sm:$0xff] %v5915_v29  ;;  %v5917_v19 = vpop.permute.xlu0 %1654  ;;  %8878 = vst [vmem:[#allocation153_spill] sm:$0xff] %v8877_v16 }
 0x1fa   : > { %8875 = vst [vmem:[#allocation152_spill] sm:$0xff] %v5917_v19  ;;  %1467 = vrot.lane.b32.xlu1 %v5646_v1, %s4956_s18 }
 0x1fb   : > { %1931 = vrot.lane.b32.xlu0 %v1845_v59, %s4956_s18  ;;  %v1423_v59 = vsel %vm5910_vm7, %v5702_v53, 0.0 }
 0x1fc   : > { %v5926_v60 = vpop.permute.xlu1 %1745 }
 0x1fd   : > { %v5928_v23 = vpop.permute.xlu0 %1321 }
 0x1fe   : > { %1507 = vrot.lane.b32.xlu1 %v5660_v39, %s4956_s18  ;;  %v802_v39 = vand.u32 15, %v622_v45 }
 0x1ff   : > { %1469 = vrot.lane.b32.xlu0 %v1403_v6, %s4956_s18 }
 0x200   : > { %v5937_v1 = vpop.permute.xlu1 %1785  ;;  %vm5960_vm9 = vcmp.ge.s32.totalorder %v802_v39, 1  ;;  %v676_v39 = vand.u32 15, %v604_v27 }
 0x201   : > { %v5939_v44 = vpop.permute.xlu0 %1361  ;;  %v1847_v45 = vsel %vm5960_vm9, %v5718_v51, 0.0  ;;  %v624_v51 = vadd.s32 208, %v5806_v62 }
 0x202   : > { %1893 = vrot.lane.b32.xlu1 %v5684_v31, %s4956_s18  ;;  %v8880_v31 = vmov 0  ;;  %vm5996_vm10 = vcmp.ge.s32.totalorder %v676_v39, 1 }
 0x203   : > { %1509 = vrot.lane.b32.xlu0 %v1423_v59, %s4956_s18  ;;  %v8881_v31 = vsel %vm5960_vm9, 4294967295, %v8880_v31  ;;  %v1829_v16 = vsel %vm5996_vm10, %v5774_v55, 0.0  ;;  %v606_v55 = vadd.s32 64, %v5806_v62 }
 0x204   : > { %v5951_v57 = vpop.permute.xlu1 %2487  ;;  %8882 = vst [vmem:[#allocation155_spill] sm:$0xff] %v8881_v31 }
 0x205   : > { %8879 = vst [vmem:[#allocation154_spill] sm:$0xff] %v5951_v57  ;;  %v5953_v6 = vpop.permute.xlu0 %1747 }
 0x206   : > { %1933 = vrot.lane.b32.xlu1 %v5692_v48, %s4956_s18 }
 0x207   : > { %1895 = vrot.lane.b32.xlu0 %v1827_v0, %s4956_s18  ;;  %v1405_v0 = vsel %vm5946_vm8, %v5758_v11, 0.0  ;;  %v8886_v11 = vmov 0 }
 0x208   : > { %v5965_v53 = vpop.permute.xlu1 %2527  ;;  %v8887_v11 = vsel %vm5996_vm10, 4294967295, %v8886_v11 }
 0x209   : > { %8883 = vst [vmem:[#allocation156_spill] sm:$0xff] %v5965_v53  ;;  %v5967_v30 = vpop.permute.xlu0 %1787  ;;  %8888 = vst [vmem:[#allocation159_spill] sm:$0xff] %v8887_v11  ;;  %v628_v11 = vadd.s32 240, %v5806_v62 }
 0x20a   : > { %1471 = vrot.lane.b32.xlu1 %v5724_v58, %s4956_s18 }
 0x20b   : > { %1935 = vrot.lane.b32.xlu0 %v1847_v45, %s4956_s18  ;;  %v1425_v45 = vsel %vm5960_vm9, %v5766_v25, 0.0  ;;  %v8891_v25 = vmov 0 }
 0x20c   : > { %v5976_v48 = vpop.permute.xlu1 %1323  ;;  %v4920_v31 = vpop.f32.mrb[18].mxu1 }
 0x20d   : > { %v5978_v59 = vpop.permute.xlu0 %2489 }
 0x20e   : > { %8884 = vst [vmem:[#allocation157_spill] sm:$0xff] %v5978_v59  ;;  %1511 = vrot.lane.b32.xlu1 %v5732_v56, %s4956_s18  ;;  %v816_v56 = vand.u32 15, %v624_v51 }
 0x20f   : > { %1473 = vrot.lane.b32.xlu0 %v1405_v0, %s4956_s18 }
 0x210   : > { %v5987_v58 = vpop.permute.xlu1 %1363  ;;  %vm6010_vm11 = vcmp.ge.s32.totalorder %v816_v56, 1  ;;  %v690_v56 = vand.u32 15, %v606_v55 }
 0x211   : > { %v5989_v37 = vpop.permute.xlu0 %2529  ;;  %v8892_v25 = vsel %vm6010_vm11, 4294967295, %v8891_v25  ;;  %v1849_v51 = vsel %vm6010_vm11, %v5782_v50, 0.0  ;;  %v626_v50 = vadd.s32 224, %v5806_v62  ;;  %v1427_v53 = vsel %vm6010_vm11, %v5839_v41, 0.0 }
 0x212   : > { %8885 = vst [vmem:[#allocation158_spill] sm:$0xff] %v5989_v37  ;;  %1897 = vrot.lane.b32.xlu1 %v5756_v8, %s4956_s18  ;;  %8893 = vst [vmem:[#allocation162_spill] sm:$0xff] %v8892_v25  ;;  %v588_v37 = vpop.f32.mrb[19].mxu1  ;;  %vm6047_vm12 = vcmp.ge.s32.totalorder %v690_v56, 1  ;;  %v8903_v56 = vrot.slane %v5464_v26, 7 }
 0x213   : > { %1513 = vrot.lane.b32.xlu0 %v1425_v45, %s4956_s18  ;;  %v830_v55 = vand.u32 15, %v626_v50  ;;  %v1831_v41 = vsel %vm6047_vm12, %v5853_v28, 0.0 }
 0x214   : > { %v6001_v27 = vpop.permute.xlu1 %1620 }
 0x215   : > { %8889 = vst [vmem:[#allocation160_spill] sm:$0xff] %v6001_v27  ;;  %v6003_v0 = vpop.permute.xlu0 %1618  ;;  %vm6061_vm13 = vcmp.ge.s32.totalorder %v830_v55, 1 }
 0x216   : > { %8890 = vst [vmem:[#allocation161_spill] sm:$0xff] %v6003_v0  ;;  %1937 = vrot.lane.b32.xlu1 %v5764_v4, %s4956_s18  ;;  %v1851_v28 = vsel %vm6061_vm13, %v5867_v5, 0.0 }
 0x217   : > { %1899 = vrot.lane.b32.xlu0 %v1829_v16, %s4956_s18  ;;  %v1407_v16 = vsel %vm5996_vm10, %v5825_v47, 0.0  ;;  %v8895_v47 = vmov 0 }
 0x218   : > { %v6015_v8 = vpop.permute.xlu1 %1749  ;;  %v8896_v47 = vsel %vm6047_vm12, 4294967295, %v8895_v47 }
 0x219   : > { %v6017_v39 = vpop.permute.xlu0 %1325  ;;  %8897 = vst [vmem:[#allocation164_spill] sm:$0xff] %v8896_v47 }
 0x21a   : > { %1475 = vrot.lane.b32.xlu1 %v5788_v20, %s4956_s18 }
 0x21b   : > { %1939 = vrot.lane.b32.xlu0 %v1849_v51, %s4956_s18 }
 0x21c   : > { %v6026_v4 = vpop.permute.xlu1 %1789 }
 0x21d   : > { %v6028_v45 = vpop.permute.xlu0 %1365 }
 0x21e   : > { %1515 = vrot.lane.b32.xlu1 %v5796_v22, %s4956_s18  ;;  %v3157_v22 = vrot.slane %v5460_v42, 7 }
 0x21f   : > { %1477 = vrot.lane.b32.xlu0 %v1407_v16, %s4956_s18 }
 0x220   : > { %v6037_v20 = vpop.permute.xlu1 %2491 }
 0x221   : > { %8894 = vst [vmem:[#allocation163_spill] sm:$0xff] %v6037_v20  ;;  %v6039_v51 = vpop.permute.xlu0 %1751  ;;  %v8939_v20 = vld [vmem:[#allocation5_spill] sm:$0xff] }
 0x222   : > { %1901 = vrot.lane.b32.xlu1 %v5823_v9, %s4956_s18  ;;  %v8900_v9 = vmov 0 }
 0x223   : > { %1517 = vrot.lane.b32.xlu0 %v1427_v53, %s4956_s18  ;;  %v8901_v9 = vsel %vm6061_vm13, 4294967295, %v8900_v9  ;;  %v6069_v53 = vsel %vm1239_vm1, %v8903_v56, %v3157_v22  ;;  %v1409_v22 = vsel %vm6047_vm12, %v5928_v23, 0.0  ;;  %v8907_v23 = vmov 0 }
 0x224   : > { %v6052_v31 = vpop.permute.xlu1 %2531  ;;  %8902 = vst [vmem:[#allocation167_spill] sm:$0xff] %v8901_v9  ;;  %8904 = vst [vmem:[#allocation168_spill] sm:$0xff] %v6069_v53 }
 0x225   : > { %8898 = vst [vmem:[#allocation165_spill] sm:$0xff] %v6052_v31  ;;  %v6054_v16 = vpop.permute.xlu0 %2493 }
 0x226   : > { %8899 = vst [vmem:[#allocation166_spill] sm:$0xff] %v6054_v16  ;;  %1941 = vrot.lane.b32.xlu1 %v5837_v12, %s4956_s18  ;;  %v608_v12 = vadd.s32 80, %v5806_v62  ;;  %v8938_v16 = vld [vmem:[#allocation2_spill] sm:$0xff] }
 0x227   : > { %1903 = vrot.lane.b32.xlu0 %v1831_v41, %s4956_s18 }
 0x228   : > { %v1328_v50 = vpop.permute.xlu1 %1327  ;;  %v704_v56 = vand.u32 15, %v608_v12 }
 0x229   : > { %v6071_v25 = vpop.permute.xlu0 %1622 }
 0x22a   : > { %8905 = vst [vmem:[#allocation169_spill] sm:$0xff] %v6071_v25  ;;  %1479 = vrot.lane.b32.xlu1 %v5876_v3, %s4956_s18  ;;  %vm6094_vm14 = vcmp.ge.s32.totalorder %v704_v56, 1 }
 0x22b   : > { %1943 = vrot.lane.b32.xlu0 %v1851_v28, %s4956_s18  ;;  %v1429_v28 = vsel %vm6061_vm13, %v5939_v44, 0.0  ;;  %v8908_v23 = vsel %vm6094_vm14, 4294967295, %v8907_v23  ;;  %v8911_v44 = vmov 0 }
 0x22c   : > { %v1368_v55 = vpop.permute.xlu1 %1367  ;;  %8909 = vst [vmem:[#allocation171_spill] sm:$0xff] %v8908_v23 }
 0x22d   : > { %v1330_v41 = vpop.permute.xlu0 %1329 }
 0x22e   : > { %1519 = vrot.lane.b32.xlu1 %v5887_v2, %s4956_s18  ;;  %v844_v2 = vand.u32 15, %v628_v11  ;;  %v8538_v11 = vrot.slane %v5460_v42, 1 }
 0x22f   : > { %1481 = vrot.lane.b32.xlu0 %v1409_v22, %s4956_s18  ;;  %v1833_v22 = vsel %vm6094_vm14, %v5953_v6, 0.0 }
 0x230   : > { %v6087_v5 = vpop.permute.xlu1 %1624  ;;  %vm6106_vm15 = vcmp.ge.s32.totalorder %v844_v2, 1 }
 0x231   : > { %8906 = vst [vmem:[#allocation170_spill] sm:$0xff] %v6087_v5  ;;  %v1756_v3 = vpop.permute.xlu0 %1755  ;;  %v8912_v44 = vsel %vm6106_vm15, 4294967295, %v8911_v44  ;;  %v1853_v6 = vsel %vm6106_vm15, %v5967_v30, 0.0  ;;  %v1431_v42 = vsel %vm6106_vm15, %v6028_v45, 0.0  ;;  %vm8933_vm15 = vcmask 1046528  }
 0x232   : > { %1905 = vrot.lane.b32.xlu1 %v5926_v60, %s4956_s18  ;;  %8913 = vst [vmem:[#allocation173_spill] sm:$0xff] %v8912_v44  ;;  %v8926_v44 = vmov 0 }
 0x233   : > { %1521 = vrot.lane.b32.xlu0 %v1429_v28, %s4956_s18  ;;  %v4004_v28 = vrot.slane %v588_v37, 1  ;;  %v1411_v37 = vsel %vm6094_vm14, %v6017_v39, 0.0  ;;  %v612_v39 = vadd.s32 112, %v5806_v62 }
 0x234   : > { %v1754_v12 = vpop.permute.xlu1 %1753 }
 0x235   : > { %v6099_v47 = vpop.permute.xlu0 %2497  ;;  %v6126_v9 = vsel %vm8540_vm2, %v8538_v11, %v4004_v28  ;;  %v8918_v28 = vmov 0  ;;  %v732_v45 = vand.u32 15, %v612_v39 }
 0x236   : > { %8910 = vst [vmem:[#allocation172_spill] sm:$0xff] %v6099_v47  ;;  %1945 = vrot.lane.b32.xlu1 %v5937_v1, %s4956_s18  ;;  %v610_v1 = vadd.s32 96, %v5806_v62  ;;  %8916 = vst [vmem:[#allocation176_spill] sm:$0xff] %v6126_v9  ;;  %v8923_v9 = vmov 0 }
 0x237   : > { %1907 = vrot.lane.b32.xlu0 %v1833_v22, %s4956_s18  ;;  %vm6161_vm0 = vcmp.ge.s32.totalorder %v732_v45, 1 }
 0x238   : > { %v6111_v60 = vpop.permute.xlu1 %2495  ;;  %v718_v30 = vand.u32 15, %v610_v1  ;;  %v8924_v9 = vsel %vm6161_vm0, 4294967295, %v8923_v9 }
 0x239   : > { %8914 = vst [vmem:[#allocation174_spill] sm:$0xff] %v6111_v60  ;;  %v6114_v56 = vpop.permute.xlu0 %1626  ;;  %8925 = vst [vmem:[#allocation181_spill] sm:$0xff] %v8924_v9  ;;  %v8937_v60 = vld [vmem:[#allocation3_spill] sm:$0xff] }
 0x23a   : > { %8915 = vst [vmem:[#allocation175_spill] sm:$0xff] %v6114_v56  ;;  %1483 = vrot.lane.b32.xlu1 %v5976_v48, %s4956_s18  ;;  %vm6141_vm1 = vcmp.ge.s32.totalorder %v718_v30, 1  ;;  %v8942_v56 = vld [vmem:[#allocation16_spill] sm:$0xff] }
 0x23b   : > { %1947 = vrot.lane.b32.xlu0 %v1853_v6, %s4956_s18  ;;  %v8919_v28 = vsel %vm6141_vm1, 4294967295, %v8918_v28 }
 0x23c   : > { %v1332_v2 = vpop.permute.xlu1 %1331  ;;  %8920 = vst [vmem:[#allocation178_spill] sm:$0xff] %v8919_v28 }
 0x23d   : > { %v1338_v22 = vpop.permute.xlu0 %1337 }
 0x23e   : > { %1523 = vrot.lane.b32.xlu1 %v5987_v58, %s4956_s18 }
 0x23f   : > { %1485 = vrot.lane.b32.xlu0 %v1411_v37, %s4956_s18  ;;  %v1835_v37 = vsel %vm6141_vm1, %v6039_v51, 0.0 }
 0x240   : > { %v6134_v48 = vpop.permute.xlu1 %1628 }
 0x241   : > { %8917 = vst [vmem:[#allocation177_spill] sm:$0xff] %v6134_v48  ;;  %v1764_v6 = vpop.permute.xlu0 %1763  ;;  %v8941_v48 = vld [vmem:[#allocation105_spill] sm:$0xff] }
 0x242   : > { %1909 = vrot.lane.b32.xlu1 %v6015_v8, %s4956_s18  ;;  %v614_v8 = vadd.s32 128, %v5806_v62 }
 0x243   : > { %1525 = vrot.lane.b32.xlu0 %v1431_v42, %s4956_s18  ;;  %v1413_v42 = vsel %vm6141_vm1, %v1330_v41, 0.0 }
 0x244   : > { %v1758_v58 = vpop.permute.xlu1 %1757  ;;  %v746_v51 = vand.u32 15, %v614_v8 }
 0x245   : > { %v6147_v1 = vpop.permute.xlu0 %2505 }
 0x246   : > { %8921 = vst [vmem:[#allocation179_spill] sm:$0xff] %v6147_v1  ;;  %1949 = vrot.lane.b32.xlu1 %v6026_v4, %s4956_s18  ;;  %vm6169_vm2 = vcmp.ge.s32.totalorder %v746_v51, 1 }
 0x247   : > { %1911 = vrot.lane.b32.xlu0 %v1835_v37, %s4956_s18  ;;  %v1837_v37 = vsel %vm6161_vm0, %v1756_v3, 0.0  ;;  %v8927_v44 = vsel %vm6169_vm2, 4294967295, %v8926_v44  ;;  %v1417_v45 = vsel %vm6169_vm2, %v1338_v22, 0.0 }
 0x248   : > { %v6156_v30 = vpop.permute.xlu1 %2499  ;;  %8928 = vst [vmem:[#allocation182_spill] sm:$0xff] %v8927_v44 }
 0x249   : > { %8922 = vst [vmem:[#allocation180_spill] sm:$0xff] %v6156_v30  ;;  %v1334_v11 = vpop.permute.xlu0 %1333 }
 0x24a   : > { %1487 = vrot.lane.b32.xlu1 %v1328_v50, %s4956_s18 }
 0x24b   : > { %1489 = vrot.lane.b32.xlu0 %v1413_v42, %s4956_s18 }
 0x24c   : > { %v1336_v4 = vpop.permute.xlu1 %1335 }
 0x24d   : > { %v1760_v39 = vpop.permute.xlu0 %1759 }
 0x24e   : > { %1527 = vrot.lane.b32.xlu1 %v1368_v55, %s4956_s18  ;;  %v1841_v55 = vsel %vm5829_vm3, %v1764_v6, 0.0 }
 0x24f   : > { %1915 = vrot.lane.b32.xlu0 %v1837_v37, %s4956_s18 }
 0x250   : > { %v1762_v50 = vpop.permute.xlu1 %1761 }
 0x251   : > { %v6174_v41 = vpop.permute.xlu0 %2501 }
 0x252   : > { %8929 = vst [vmem:[#allocation183_spill] sm:$0xff] %v6174_v41  ;;  %1913 = vrot.lane.b32.xlu1 %v1754_v12, %s4956_s18  ;;  %v1415_v12 = vsel %vm6161_vm0, %v1334_v11, 0.0 }
 0x253   : > { %1497 = vrot.lane.b32.xlu0 %v1417_v45, %s4956_s18 }
 0x254   : > { %v6180_v8 = vpop.permute.xlu1 %2503 }
 0x255   : > { %8930 = vst [vmem:[#allocation184_spill] sm:$0xff] %v6180_v8  ;;  %v6182_v3 = vpop.permute.xlu0 %1501 }
 0x256   : > { %1491 = vrot.lane.b32.xlu1 %v1332_v2, %s4956_s18  ;;  %v1839_v2 = vsel %vm6169_vm2, %v1760_v39, 0.0 }
 0x257   : > { %1923 = vrot.lane.b32.xlu0 %v1841_v55, %s4956_s18  ;;  %v8551_v55 = vrot.slane %v5464_v26, 1 }
 0x258   : > { %v6188_v42 = vpop.permute.xlu1 %1499 }
 0x259   : > { %8931 = vst [vmem:[#allocation185_spill] sm:$0xff] %v6188_v42  ;;  %v6190_v51 = vpop.permute.xlu0 %1887 }
 0x25a   : > { %1917 = vrot.lane.b32.xlu1 %v1758_v58, %s4956_s18 }
 0x25b   : > { %1493 = vrot.lane.b32.xlu0 %v1415_v12, %s4956_s18 }
 0x25c   : > { %v6196_v22 = vpop.permute.xlu1 %1925 }
 0x25d   : > { %v6198_v37 = vpop.permute.xlu0 %1927 }
 0x25e   : > { %1495 = vrot.lane.b32.xlu1 %v1336_v4, %s4956_s18  ;;  %v8932_v4 = vrot.slane %v5344_v10, 1 }
 0x25f   : > { %1919 = vrot.lane.b32.xlu0 %v1839_v2, %s4956_s18  ;;  %v8935_v2 = vld [vmem:[#allocation15_spill] sm:$0xff] }
 0x260   : > { %v1504_v6 = vpop.permute.xlu1 %1503  ;;  %v6217_v39 = vsel %vm8933_vm15, %v8932_v4, %v8551_v55  ;;  %vm9011_vm15 = vcmask 64512  }
 0x261   : > { %v1466_v45 = vpop.permute.xlu0 %1465  ;;  %8934 = vst [vmem:[#allocation186_spill] sm:$0xff] %v6217_v39  ;;  %v1580_v59 = vadd.f32 %v8939_v20, %v1504_v6  ;;  %v8943_v6 = vld [vmem:[#allocation107_spill] sm:$0xff]  ;;  %vm9014_vm13 = vmmov %vm9011_vm15 }
 0x262   : > { %1921 = vrot.lane.b32.xlu1 %v1762_v50, %s4956_s18  ;;  %v1561_v62 = vadd.f32 %v1466_v45, %v8935_v2  ;;  %vm9015_vm11 = vmmov %vm9014_vm13 }
 0x263   : > { %2533 = vrot.lane.b32.xlu0 %v5400_v13, %s4960_s26  ;;  %v1709_v5 = vadd.f32 %v8941_v48, %v1580_v59  ;;  %vm9019_vm9 = vmmov %vm9015_vm11 }
 0x264   : > { %v6208_v11 = vpop.permute.xlu1 %1889  ;;  %v1690_v25 = vadd.f32 %v8943_v6, %v1561_v62 }
 0x265   : > { %v1506_v58 = vpop.permute.xlu0 %1505 }
 0x266   : > { %2535 = vrot.lane.b32.xlu1 %v5479_v21, %s4960_s26  ;;  %v8936_v21 = vld [vmem:[#allocation10_spill] sm:$0xff]  ;;  %v1581_v45 = vadd.f32 %v1506_v58, %v8942_v56  ;;  %v1983_v62 = vadd.f32 %v6190_v51, %v1690_v25  ;;  %v8948_v58 = vld [vmem:[#allocation109_spill] sm:$0xff] }
 0x267   : > { %2537 = vrot.lane.b32.xlu0 %v6217_v39, %s4960_s26  ;;  %v8951_v25 = vld [vmem:[#allocation38_spill] sm:$0xff] }
 0x268   : > { %v6221_v50 = vpop.permute.xlu1 %1929 }
 0x269   : > { %v6223_v12 = vpop.permute.xlu0 %1891 }
 0x26a   : > { %2635 = vrot.lane.b32.xlu1 %v8935_v2, %s4961_s27  ;;  %v8945_v2 = vld [vmem:[#allocation108_spill] sm:$0xff] }
 0x26b   : > { %2637 = vrot.lane.b32.xlu0 %v8936_v21, %s4961_s27 }
 0x26c   : > { %v1468_v26 = vpop.permute.xlu1 %1467 }
 0x26d   : > { %v6229_v43 = vpop.permute.xlu0 %1931  ;;  %v1562_v13 = vadd.f32 %v8936_v21, %v1468_v26  ;;  %v2002_v26 = vadd.f32 %v6196_v22, %v1709_v5  ;;  %v8946_v21 = vld [vmem:[#allocation26_spill] sm:$0xff]  ;;  %v8949_v5 = vld [vmem:[#allocation104_spill] sm:$0xff] }
 0x26e   : > { %2639 = vrot.lane.b32.xlu1 %v5187_v24, %s4961_s27  ;;  %v2024_v51 = vadd.f32 %v8949_v5, %v1983_v62 }
 0x26f   : > { %2641 = vrot.lane.b32.xlu0 %v5169_v18, %s4961_s27  ;;  %v1691_v42 = vadd.f32 %v8945_v2, %v1562_v13  ;;  %v1710_v13 = vadd.f32 %v8948_v58, %v1581_v45  ;;  %v2043_v22 = vadd.f32 %v8949_v5, %v2002_v26  ;;  %v8953_v45 = vld [vmem:[#allocation32_spill] sm:$0xff] }
 0x270   : > { %v1508_v4 = vpop.permute.xlu1 %1507 }
 0x271   : > { %v1470_v55 = vpop.permute.xlu0 %1469  ;;  %v1984_v2 = vadd.f32 %v6208_v11, %v1691_v42  ;;  %v2003_v42 = vadd.f32 %v6198_v37, %v1710_v13  ;;  %v2075_v62 = vmax.f32 %v2043_v22, 0.0  ;;  %v2056_v37 = vmax.f32 %v2024_v51, 0.0  ;;  %v8956_v13 = vld [vmem:[#allocation116_spill] sm:$0xff] }
 0x272   : > { %2643 = vrot.lane.b32.xlu1 %v5231_v52, %s4961_s27  ;;  %v1563_v6 = vadd.f32 %v1470_v55, %v5187_v24  ;;  %v8952_v55 = vld [vmem:[#allocation114_spill] sm:$0xff] }
 0x273   : > { %2645 = vrot.lane.b32.xlu0 %v5213_v38, %s4961_s27  ;;  %v2025_v11 = vadd.f32 %v8949_v5, %v1984_v2 }
 0x274   : > { %v6239_v39 = vpop.permute.xlu1 %1893  ;;  %v1692_v24 = vadd.f32 %v8952_v55, %v1563_v6  ;;  %v8955_v6 = vld [vmem:[#allocation50_spill] sm:$0xff] }
 0x275   : > { %v1510_v44 = vpop.permute.xlu0 %1509 }
 0x276   : > { %2647 = vrot.lane.b32.xlu1 %v5274_v32, %s4961_s27  ;;  %v1583_v26 = vadd.f32 %v1510_v44, %v8946_v21  ;;  %v1985_v55 = vadd.f32 %v6223_v12, %v1692_v24  ;;  %v2044_v44 = vadd.f32 %v8949_v5, %v2003_v42 }
 0x277   : > { %2649 = vrot.lane.b32.xlu0 %v5256_v14, %s4961_s27 }
 0x278   : > { %v6245_v9 = vpop.permute.xlu1 %1933  ;;  %v2026_v51 = vadd.f32 %v8949_v5, %v1985_v55 }
 0x279   : > { %v6247_v28 = vpop.permute.xlu0 %1895 }
 0x27a   : > { %2651 = vrot.lane.b32.xlu1 %v8821_v34, %s4961_s27 }
 0x27b   : > { %2653 = vrot.lane.b32.xlu0 %v8820_v15, %s4961_s27 }
 0x27c   : > { %v1472_v23 = vpop.permute.xlu1 %1471 }
 0x27d   : > { %v6253_v31 = vpop.permute.xlu0 %1935 }
 0x27e   : > { %2655 = vrot.lane.b32.xlu1 %v5360_v40, %s4961_s27 }
 0x27f   : > { %2657 = vrot.lane.b32.xlu0 %v5342_v61, %s4961_s27 }
 0x280   : > { %v1512_v46 = vpop.permute.xlu1 %1511 }
 0x281   : > { %v1474_v1 = vpop.permute.xlu0 %1473 }
 0x282   : > { %2659 = vrot.lane.b32.xlu1 %v5397_v54, %s4961_s27 }
 0x283   : > { %2661 = vrot.lane.b32.xlu0 %v5384_v36, %s4961_s27 }
 0x284   : > { %v6263_v8 = vpop.permute.xlu1 %1897 }
 0x285   : > { %v6265_v41 = vpop.permute.xlu0 %1513 }
 0x286   : > { %2663 = vrot.lane.b32.xlu1 %v5498_v63, %s4961_s27  ;;  %v8947_v63 = vld [vmem:[#allocation20_spill] sm:$0xff]  ;;  %v1585_v42 = vadd.f32 %v6265_v41, %v8951_v25  ;;  %v8960_v41 = vld [vmem:[#allocation122_spill] sm:$0xff] }
 0x287   : > { %2665 = vrot.lane.b32.xlu0 %v5404_v49, %s4961_s27 }
 0x288   : > { %v6271_v30 = vpop.permute.xlu1 %1937 }
 0x289   : > { %v6273_v47 = vpop.permute.xlu0 %1899 }
 0x28a   : > { %2667 = vrot.lane.b32.xlu1 %v8937_v60, %s4961_s27  ;;  %v1564_v60 = vadd.f32 %v5169_v18, %v1472_v23  ;;  %v1584_v18 = vadd.f32 %v8947_v63, %v1512_v46  ;;  %v2057_v46 = vmax.f32 %v2025_v11, 0.0  ;;  %v8958_v11 = vld [vmem:[#allocation121_spill] sm:$0xff] }
 0x28b   : > { %2669 = vrot.lane.b32.xlu0 %v8938_v16, %s4961_s27  ;;  %v8944_v16 = vld [vmem:[#allocation11_spill] sm:$0xff] }
 0x28c   : > { %v1476_v53 = vpop.permute.xlu1 %1475  ;;  %v1582_v59 = vadd.f32 %v8944_v16, %v1508_v4  ;;  %v8950_v4 = vld [vmem:[#allocation110_spill] sm:$0xff] }
 0x28d   : > { %v6280_v57 = vpop.permute.xlu0 %1939  ;;  %v1566_v24 = vadd.f32 %v5213_v38, %v1476_v53 }
 0x28e   : > { %2671 = vrot.lane.b32.xlu1 %v8940_v35, %s4961_s27 }
 0x28f   : > { %2673 = vrot.lane.b32.xlu0 %v8939_v20, %s4961_s27 }
 0x290   : > { %v1516_v7 = vpop.permute.xlu1 %1515 }
 0x291   : > { %v6289_v49 = vpop.permute.xlu0 %1477 }
 0x292   : > { %2675 = vrot.lane.b32.xlu1 %v8942_v56, %s4961_s27 }
 0x293   : > { %2677 = vrot.lane.b32.xlu0 %v8944_v16, %s4961_s27  ;;  %v1711_v16 = vadd.f32 %v8950_v4, %v1582_v59  ;;  %v8954_v4 = vld [vmem:[#allocation113_spill] sm:$0xff] }
 0x294   : > { %v6298_v20 = vpop.permute.xlu1 %1901  ;;  %v1693_v58 = vadd.f32 %v8954_v4, %v1564_v60  ;;  %v1565_v60 = vadd.f32 %v1474_v1, %v5231_v52  ;;  %v8957_v4 = vld [vmem:[#allocation115_spill] sm:$0xff] }
 0x295   : > { %v6302_v48 = vpop.permute.xlu0 %1517  ;;  %v2004_v23 = vadd.f32 %v6221_v50, %v1711_v16  ;;  %v1712_v16 = vadd.f32 %v8956_v13, %v1583_v26 }
 0x296   : > { %2679 = vrot.lane.b32.xlu1 %v8946_v21, %s4961_s27  ;;  %v1986_v22 = vadd.f32 %v6239_v39, %v1693_v58  ;;  %v1694_v26 = vadd.f32 %v8958_v11, %v1565_v60  ;;  %v1586_v39 = vadd.f32 %v8953_v45, %v1516_v7 }
 0x297   : > { %2681 = vrot.lane.b32.xlu0 %v8947_v63, %s4961_s27  ;;  %v2045_v2 = vadd.f32 %v8949_v5, %v2004_v23  ;;  %v1713_v63 = vadd.f32 %v8957_v4, %v1584_v18  ;;  %v2005_v1 = vadd.f32 %v6229_v43, %v1712_v16  ;;  %v2076_v18 = vmax.f32 %v2044_v44, 0.0  ;;  %v8961_v44 = vld [vmem:[#allocation119_spill] sm:$0xff] }
 0x298   : > { %v6312_v56 = vpop.permute.xlu1 %1941  ;;  %v2027_v53 = vadd.f32 %v8949_v5, %v1986_v22  ;;  %v2058_v43 = vmax.f32 %v2026_v51, 0.0  ;;  %v1987_v16 = vadd.f32 %v6247_v28, %v1694_v26  ;;  %v1715_v60 = vadd.f32 %v8961_v44, %v1586_v39  ;;  %v8962_v26 = vld [vmem:[#allocation128_spill] sm:$0xff] }
 0x299   : > { %v6317_v27 = vpop.permute.xlu0 %1903  ;;  %v2006_v23 = vadd.f32 %v6245_v9, %v1713_v63  ;;  %v2077_v4 = vmax.f32 %v2045_v2, 0.0  ;;  %v2046_v7 = vadd.f32 %v8949_v5, %v2005_v1  ;;  %v1567_v63 = vadd.f32 %v6289_v49, %v5274_v32 }
 0x29a   : > { %2683 = vrot.lane.b32.xlu1 %v8951_v25, %s4961_s27  ;;  %v1587_v51 = vadd.f32 %v6302_v48, %v8955_v6  ;;  %v2028_v49 = vadd.f32 %v8949_v5, %v1987_v16  ;;  %v2008_v1 = vadd.f32 %v6271_v30, %v1715_v60  ;;  %v8965_v16 = vld [vmem:[#allocation130_spill] sm:$0xff] }
 0x29b   : > { %2685 = vrot.lane.b32.xlu0 %v8953_v45, %s4961_s27  ;;  %v2047_v2 = vadd.f32 %v8949_v5, %v2006_v23 }
 0x29c   : > { %v1480_v59 = vpop.permute.xlu1 %1479  ;;  %v2049_v30 = vadd.f32 %v8949_v5, %v2008_v1 }
 0x29d   : > { %v6331_v36 = vpop.permute.xlu0 %1943 }
 0x29e   : > { %2687 = vrot.lane.b32.xlu1 %v8955_v6, %s4961_s27 }
 0x29f   : > { %2158 = vrot.lane.b32.xlu0 %v2075_v62, %s4962_s28  ;;  %v8959_v62 = vld [vmem:[#allocation118_spill] sm:$0xff] }
 0x2a0   : > { %v1520_v50 = vpop.permute.xlu1 %1519  ;;  %v1695_v55 = vadd.f32 %v8959_v62, %v1566_v24  ;;  %v1568_v24 = vadd.f32 %v5256_v14, %v1480_v59  ;;  %v2078_v59 = vmax.f32 %v2046_v7, 0.0  ;;  %v9070_v62 = vld [vmem:[#allocation59_spill] sm:$0xff] }
 0x2a1   : > { %v1482_v12 = vpop.permute.xlu0 %1481 }
 0x2a2   : > { %2120 = vrot.lane.b32.xlu1 %v2056_v37, %s4962_s28  ;;  %v1988_v22 = vadd.f32 %v6263_v8, %v1695_v55  ;;  %v1696_v8 = vadd.f32 %v8962_v26, %v1567_v63  ;;  %v8964_v55 = vld [vmem:[#allocation44_spill] sm:$0xff]  ;;  %v1569_v60 = vadd.f32 %v1482_v12, %v8821_v34  ;;  %v8967_v12 = vld [vmem:[#allocation137_spill] sm:$0xff]  ;;  %v9068_v26 = vld [vmem:[#allocation47_spill] sm:$0xff] }
 0x2a3   : > { %2122 = vrot.lane.b32.xlu0 %v2057_v46, %s4962_s28  ;;  %v1714_v46 = vadd.f32 %v8960_v41, %v1585_v42  ;;  %v8996_v41 = vld [vmem:[#allocation65_spill] sm:$0xff] }
 0x2a4   : > { %v6352_v58 = vpop.permute.xlu1 %1905  ;;  %v1989_v7 = vadd.f32 %v6273_v47, %v1696_v8  ;;  %v1698_v8 = vadd.f32 %v8967_v12, %v1569_v60 }
 0x2a5   : > { %v1522_v37 = vpop.permute.xlu0 %1521  ;;  %v2007_v28 = vadd.f32 %v6253_v31, %v1714_v46  ;;  %v2079_v46 = vmax.f32 %v2047_v2, 0.0 }
 0x2a6   : > { %2160 = vrot.lane.b32.xlu1 %v2076_v18, %s4962_s28  ;;  %v2029_v18 = vadd.f32 %v8949_v5, %v1988_v22  ;;  %v2060_v22 = vmax.f32 %v2028_v49, 0.0  ;;  %v2030_v47 = vadd.f32 %v8949_v5, %v1989_v7  ;;  %v8968_v49 = vld [vmem:[#allocation62_spill] sm:$0xff] }
 0x2a7   : > { %2162 = vrot.lane.b32.xlu0 %v2077_v4, %s4962_s28  ;;  %v2059_v4 = vmax.f32 %v2027_v53, 0.0  ;;  %v8963_v53 = vld [vmem:[#allocation127_spill] sm:$0xff]  ;;  %v2048_v48 = vadd.f32 %v8949_v5, %v2007_v28 }
 0x2a8   : > { %v6365_v9 = vpop.permute.xlu1 %1945  ;;  %v1697_v23 = vadd.f32 %v8963_v53, %v1568_v24  ;;  %v8966_v24 = vld [vmem:[#allocation129_spill] sm:$0xff]  ;;  %v2061_v28 = vmax.f32 %v2029_v18, 0.0  ;;  %v8969_v18 = vld [vmem:[#allocation135_spill] sm:$0xff] }
 0x2a9   : > { %v6370_v42 = vpop.permute.xlu0 %1907  ;;  %v2080_v1 = vmax.f32 %v2048_v48, 0.0 }
 0x2aa   : > { %2124 = vrot.lane.b32.xlu1 %v2058_v43, %s4962_s28  ;;  %v1588_v43 = vadd.f32 %v8964_v55, %v1520_v50  ;;  %v1990_v50 = vadd.f32 %v6298_v20, %v1697_v23  ;;  %v2081_v23 = vmax.f32 %v2049_v30, 0.0 }
 0x2ab   : > { %2126 = vrot.lane.b32.xlu0 %v2059_v4, %s4962_s28  ;;  %v1716_v4 = vadd.f32 %v8965_v16, %v1587_v51 }
 0x2ac   : > { %v1484_v39 = vpop.permute.xlu1 %1483  ;;  %v1717_v2 = vadd.f32 %v8966_v24, %v1588_v43  ;;  %v2031_v43 = vadd.f32 %v8949_v5, %v1990_v50  ;;  %v2062_v50 = vmax.f32 %v2030_v47, 0.0  ;;  %v8973_v47 = vld [vmem:[#allocation74_spill] sm:$0xff] }
 0x2ad   : > { %v6383_v31 = vpop.permute.xlu0 %1947  ;;  %v2009_v51 = vadd.f32 %v6280_v57, %v1716_v4  ;;  %v1991_v4 = vadd.f32 %v6317_v27, %v1698_v8 }
 0x2ae   : > { %2164 = vrot.lane.b32.xlu1 %v2078_v59, %s4962_s28  ;;  %v1570_v59 = vadd.f32 %v8820_v15, %v1484_v39  ;;  %v2010_v39 = vadd.f32 %v6312_v56, %v1717_v2 }
 0x2af   : > { %2166 = vrot.lane.b32.xlu0 %v2079_v46, %s4962_s28  ;;  %v1589_v46 = vadd.f32 %v1522_v37, %v8968_v49  ;;  %v2050_v48 = vadd.f32 %v8949_v5, %v2009_v51  ;;  %v8971_v37 = vld [vmem:[#allocation139_spill] sm:$0xff]  ;;  %v2032_v27 = vadd.f32 %v8949_v5, %v1991_v4 }
 0x2b0   : > { %v1524_v63 = vpop.permute.xlu1 %1523  ;;  %v1699_v24 = vadd.f32 %v8969_v18, %v1570_v59  ;;  %v2051_v56 = vadd.f32 %v8949_v5, %v2010_v39 }
 0x2b1   : > { %v1486_v44 = vpop.permute.xlu0 %1485  ;;  %v1718_v7 = vadd.f32 %v8971_v37, %v1589_v46  ;;  %v2082_v51 = vmax.f32 %v2050_v48, 0.0 }
 0x2b2   : > { %2128 = vrot.lane.b32.xlu1 %v2060_v22, %s4962_s28  ;;  %v8970_v22 = vld [vmem:[#allocation56_spill] sm:$0xff]  ;;  %v1571_v30 = vadd.f32 %v1486_v44, %v5360_v40  ;;  %v1992_v2 = vadd.f32 %v6352_v58, %v1699_v24  ;;  %v2083_v39 = vmax.f32 %v2051_v56, 0.0 }
 0x2b3   : > { %2130 = vrot.lane.b32.xlu0 %v2061_v28, %s4962_s28  ;;  %v1590_v16 = vadd.f32 %v8970_v22, %v1524_v63  ;;  %v8972_v63 = vld [vmem:[#allocation138_spill] sm:$0xff]  ;;  %v2011_v8 = vadd.f32 %v6331_v36, %v1718_v7 }
 0x2b4   : > { %v1910_v20 = vpop.permute.xlu1 %1909  ;;  %v1700_v44 = vadd.f32 %v5903_v17, %v1571_v30  ;;  %v2033_v58 = vadd.f32 %v8949_v5, %v1992_v2  ;;  %v2064_v30 = vmax.f32 %v2032_v27, 0.0  ;;  %v9013_v17 = vld [vmem:[#allocation14_spill] sm:$0xff] }
 0x2b5   : > { %v1526_v57 = vpop.permute.xlu0 %1525  ;;  %v1719_v59 = vadd.f32 %v8972_v63, %v1590_v16  ;;  %v2052_v36 = vadd.f32 %v8949_v5, %v2011_v8 }
 0x2b6   : > { %2168 = vrot.lane.b32.xlu1 %v2080_v1, %s4962_s28  ;;  %v2063_v1 = vmax.f32 %v2031_v43, 0.0  ;;  %v1591_v46 = vadd.f32 %v1526_v57, %v8973_v47  ;;  %v1993_v4 = vadd.f32 %v6370_v42, %v1700_v44 }
 0x2b7   : > { %2170 = vrot.lane.b32.xlu0 %v2081_v23, %s4962_s28  ;;  %v2012_v16 = vadd.f32 %v6365_v9, %v1719_v59  ;;  %v2065_v59 = vmax.f32 %v2033_v58, 0.0  ;;  %v2084_v44 = vmax.f32 %v2052_v36, 0.0  ;;  %v8975_v36 = vld [vmem:[#allocation79_spill] sm:$0xff] }
 0x2b8   : > { %v1950_v60 = vpop.permute.xlu1 %1949  ;;  %v1720_v57 = vadd.f32 %v5917_v19, %v1591_v46  ;;  %v2034_v42 = vadd.f32 %v8949_v5, %v1993_v4 }
 0x2b9   : > { %v1912_v28 = vpop.permute.xlu0 %1911  ;;  %v2053_v9 = vadd.f32 %v8949_v5, %v2012_v16 }
 0x2ba   : > { %2132 = vrot.lane.b32.xlu1 %v2062_v50, %s4962_s28  ;;  %v2013_v27 = vadd.f32 %v6383_v31, %v1720_v57  ;;  %v2066_v4 = vmax.f32 %v2034_v42, 0.0 }
 0x2bb   : > { %2134 = vrot.lane.b32.xlu0 %v2063_v1, %s4962_s28  ;;  %v1579_v1 = vadd.f32 %v6182_v3, %v8940_v35  ;;  %v2085_v16 = vmax.f32 %v2053_v9, 0.0  ;;  %v8976_v9 = vld [vmem:[#allocation160_spill] sm:$0xff] }
 0x2bc   : > { %v1488_v23 = vpop.permute.xlu1 %1487  ;;  %v2054_v3 = vadd.f32 %v8949_v5, %v2013_v27 }
 0x2bd   : > { %v1572_v24 = vadd.f32 %v5342_v61, %v1488_v23  ;;  %v1490_v43 = vpop.permute.xlu0 %1489 }
 0x2be   : > { %2172 = vrot.lane.b32.xlu1 %v2082_v51, %s4962_s28  ;;  %v1573_v8 = vadd.f32 %v1490_v43, %v5397_v54  ;;  %v2086_v42 = vmax.f32 %v2054_v3, 0.0 }
 0x2bf   : > { %v1701_v48 = vadd.f32 %v5901_v33, %v1572_v24  ;;  %2174 = vrot.lane.b32.xlu0 %v2083_v39, %s4962_s28 }
 0x2c0   : > { %v1528_v7 = vpop.permute.xlu1 %1527  ;;  %v1702_v24 = vadd.f32 %v6003_v0, %v1573_v8  ;;  %v9005_v0 = vld [vmem:[#allocation103_spill] sm:$0xff] }
 0x2c1   : > { %v1994_v50 = vadd.f32 %v1910_v20, %v1701_v48  ;;  %v1592_v2 = vadd.f32 %v5344_v10, %v1528_v7  ;;  %v1916_v56 = vpop.permute.xlu0 %1915  ;;  %v8974_v48 = vld [vmem:[#allocation106_spill] sm:$0xff] }
 0x2c2   : > { %2136 = vrot.lane.b32.xlu1 %v2064_v30, %s4962_s28  ;;  %v1708_v31 = vadd.f32 %v8974_v48, %v1579_v1 }
 0x2c3   : > { %v1721_v51 = vadd.f32 %v5915_v29, %v1592_v2  ;;  %2138 = vrot.lane.b32.xlu0 %v2065_v59, %s4962_s28  ;;  %v2035_v46 = vadd.f32 %v8949_v5, %v1994_v50  ;;  %v1995_v2 = vadd.f32 %v1912_v28, %v1702_v24  ;;  %v8977_v59 = vld [vmem:[#allocation3_spill] sm:$0xff]  ;;  %v8981_v24 = vld [vmem:[#allocation169_spill] sm:$0xff] }
 0x2c4   : > { %v1914_v20 = vpop.permute.xlu1 %1913 }
 0x2c5   : > { %v2014_v23 = vadd.f32 %v1950_v60, %v1721_v51  ;;  %v1498_v58 = vpop.permute.xlu0 %1497  ;;  %v2067_v60 = vmax.f32 %v2035_v46, 0.0  ;;  %v8979_v46 = vld [vmem:[#allocation185_spill] sm:$0xff]  ;;  %v2036_v28 = vadd.f32 %v8949_v5, %v1995_v2 }
 0x2c6   : > { %2176 = vrot.lane.b32.xlu1 %v2084_v44, %s4962_s28  ;;  %v1577_v51 = vadd.f32 %v1498_v58, %v8977_v59 }
 0x2c7   : > { %2178 = vrot.lane.b32.xlu0 %v2085_v16, %s4962_s28  ;;  %v2055_v43 = vadd.f32 %v8949_v5, %v2014_v23  ;;  %v8978_v16 = vld [vmem:[#allocation97_spill] sm:$0xff]  ;;  %v2068_v19 = vmax.f32 %v2036_v28, 0.0 }
 0x2c8   : > { %v1492_v39 = vpop.permute.xlu1 %1491 }
 0x2c9   : > { %v1574_v57 = vadd.f32 %v8975_v36, %v1492_v39  ;;  %v1924_v7 = vpop.permute.xlu0 %1923  ;;  %v2087_v23 = vmax.f32 %v2055_v43, 0.0  ;;  %v8983_v43 = vld [vmem:[#allocation85_spill] sm:$0xff] }
 0x2ca   : > { %v2001_v30 = vadd.f32 %v1924_v7, %v1708_v31  ;;  %2140 = vrot.lane.b32.xlu1 %v2066_v4, %s4962_s28  ;;  %v8980_v31 = vld [vmem:[#allocation2_spill] sm:$0xff] }
 0x2cb   : > { %v1703_v50 = vadd.f32 %v8976_v9, %v1574_v57  ;;  %2142 = vrot.lane.b32.xlu0 %v2067_v60, %s4962_s28  ;;  %v1578_v4 = vadd.f32 %v8980_v31, %v8979_v46  ;;  %v8984_v46 = vld [vmem:[#allocation170_spill] sm:$0xff] }
 0x2cc   : > { %v2042_v27 = vadd.f32 %v8949_v5, %v2001_v30  ;;  %v1918_v1 = vpop.permute.xlu1 %1917 }
 0x2cd   : > { %v1996_v8 = vadd.f32 %v1914_v20, %v1703_v50  ;;  %v1494_v44 = vpop.permute.xlu0 %1493  ;;  %v8982_v20 = vld [vmem:[#allocation175_spill] sm:$0xff] }
 0x2ce   : > { %v1575_v39 = vadd.f32 %v1494_v44, %v8978_v16  ;;  %2180 = vrot.lane.b32.xlu1 %v2086_v42, %s4962_s28  ;;  %v2074_v58 = vmax.f32 %v2042_v27, 0.0  ;;  %v1706_v60 = vadd.f32 %v8982_v20, %v1577_v51 }
 0x2cf   : > { %v2037_v57 = vadd.f32 %v8949_v5, %v1996_v8  ;;  %2182 = vrot.lane.b32.xlu0 %v2087_v23, %s4962_s28  ;;  %v8985_v8 = vld [vmem:[#allocation177_spill] sm:$0xff] }
 0x2d0   : > { %v1704_v7 = vadd.f32 %v8981_v24, %v1575_v39  ;;  %v1496_v3 = vpop.permute.xlu1 %1495  ;;  %v1707_v23 = vadd.f32 %v8985_v8, %v1578_v4  ;;  %v9002_v24 = vld [vmem:[#allocation99_spill] sm:$0xff] }
 0x2d1   : > { %v1576_v30 = vadd.f32 %v8983_v43, %v1496_v3  ;;  %v1920_v50 = vpop.permute.xlu0 %1919  ;;  %v2069_v44 = vmax.f32 %v2037_v57, 0.0 }
 0x2d2   : > { %v1999_v42 = vadd.f32 %v1920_v50, %v1706_v60  ;;  %2156 = vrot.lane.b32.xlu1 %v2074_v58, %s4962_s28  ;;  %v1997_v2 = vadd.f32 %v1916_v56, %v1704_v7 }
 0x2d3   : > { %v1705_v29 = vadd.f32 %v8984_v46, %v1576_v30  ;;  %2146 = vrot.lane.b32.xlu0 %v2069_v44, %s4962_s28 }
 0x2d4   : > { %v2040_v27 = vadd.f32 %v8949_v5, %v1999_v42  ;;  %v1922_v39 = vpop.permute.xlu1 %1921  ;;  %v2038_v58 = vadd.f32 %v8949_v5, %v1997_v2 }
 0x2d5   : > { %v1998_v63 = vadd.f32 %v1918_v1, %v1705_v29  ;;  %v2000_v51 = vadd.f32 %v1922_v39, %v1707_v23  ;;  %v6467_v37 = vpop.permute.xlu0 %2533  ;;  %v8989_v23 = vld [vmem:[#allocation18_spill] sm:$0xff]  ;;  %v8990_v39 = vld [vmem:[#allocation28_spill] sm:$0xff] }
 0x2d6   : > { %8986 = vst [vmem:[#allocation107_spill] sm:$0xff] %v6467_v37  ;;  %2144 = vrot.lane.b32.xlu1 %v2068_v19, %s4962_s28  ;;  %v2072_v3 = vmax.f32 %v2040_v27, 0.0  ;;  %v2070_v1 = vmax.f32 %v2038_v58, 0.0 }
 0x2d7   : > { %v2041_v57 = vadd.f32 %v8949_v5, %v2000_v51  ;;  %v2039_v4 = vadd.f32 %v8949_v5, %v1998_v63  ;;  %v8991_v51 = vld [vmem:[#allocation30_spill] sm:$0xff] }
 0x2d8   : > { %v6472_v60 = vpop.permute.xlu1 %2535 }
 0x2d9   : > { %8987 = vst [vmem:[#allocation108_spill] sm:$0xff] %v6472_v60  ;;  %v2073_v56 = vmax.f32 %v2041_v57, 0.0  ;;  %v6475_v7 = vpop.permute.xlu0 %2537  ;;  %v2071_v28 = vmax.f32 %v2039_v4, 0.0  ;;  %v8993_v4 = vld [vmem:[#allocation36_spill] sm:$0xff] }
 0x2da   : > { %8988 = vst [vmem:[#allocation104_spill] sm:$0xff] %v6475_v7  ;;  %2152 = vrot.lane.b32.xlu1 %v2072_v3, %s4962_s28  ;;  %v8992_v3 = vld [vmem:[#allocation41_spill] sm:$0xff] }
 0x2db   : > { %2154 = vrot.lane.b32.xlu0 %v2073_v56, %s4962_s28 }
 0x2dc   : > { %v6479_v29 = vpop.permute.xlu1 %2635 }
 0x2dd   : > { %v6481_v19 = vpop.permute.xlu0 %2637 }
 0x2de   : > { %2148 = vrot.lane.b32.xlu1 %v2070_v1, %s4962_s28 }
 0x2df   : > { %2150 = vrot.lane.b32.xlu0 %v2071_v28, %s4962_s28  ;;  %v8994_v28 = vld [vmem:[#allocation53_spill] sm:$0xff] }
 0x2e0   : > { %v6485_v30 = vpop.permute.xlu1 %2639 }
 0x2e1   : > { %v6487_v5 = vpop.permute.xlu0 %2641 }
 0x2e2   : > { %2691 = vrot.lane.b32.xlu1 %v8968_v49, %s4961_s27 }
 0x2e3   : > { %2689 = vrot.lane.b32.xlu0 %v8964_v55, %s4961_s27 }
 0x2e4   : > { %v6493_v63 = vpop.permute.xlu1 %2643 }
 0x2e5   : > { %v6495_v50 = vpop.permute.xlu0 %2645 }
 0x2e6   : > { %2695 = vrot.lane.b32.xlu1 %v8973_v47, %s4961_s27 }
 0x2e7   : > { %2693 = vrot.lane.b32.xlu0 %v8970_v22, %s4961_s27 }
 0x2e8   : > { %v6501_v44 = vpop.permute.xlu1 %2647 }
 0x2e9   : > { %v6503_v42 = vpop.permute.xlu0 %2649 }
 0x2ea   : > { %2767 = vrot.lane.b32.xlu1 %v8989_v23, %s4963_s29  ;;  %v8995_v23 = vld [vmem:[#allocation48_spill] sm:$0xff] }
 0x2eb   : > { %2697 = vrot.lane.b32.xlu0 %v5344_v10, %s4961_s27  ;;  %v9079_v10 = vld [vmem:[#allocation12_spill] sm:$0xff] }
 0x2ec   : > { %v6509_v2 = vpop.permute.xlu1 %2651 }
 0x2ed   : > { %v6511_v27 = vpop.permute.xlu0 %2653 }
 0x2ee   : > { %2771 = vrot.lane.b32.xlu1 %v8990_v39, %s4963_s29 }
 0x2ef   : > { %2769 = vrot.lane.b32.xlu0 %v8991_v51, %s4963_s29 }
 0x2f0   : > { %v6517_v57 = vpop.permute.xlu1 %2655 }
 0x2f1   : > { %v6519_v58 = vpop.permute.xlu0 %2657 }
 0x2f2   : > { %2775 = vrot.lane.b32.xlu1 %v8992_v3, %s4963_s29  ;;  %v8997_v3 = vld [vmem:[#allocation60_spill] sm:$0xff] }
 0x2f3   : > { %2773 = vrot.lane.b32.xlu0 %v8993_v4, %s4963_s29 }
 0x2f4   : > { %v6525_v56 = vpop.permute.xlu1 %2659 }
 0x2f5   : > { %v6527_v1 = vpop.permute.xlu0 %2661 }
 0x2f6   : > { %2779 = vrot.lane.b32.xlu1 %v8994_v28, %s4963_s29  ;;  %v8998_v28 = vld [vmem:[#allocation76_spill] sm:$0xff] }
 0x2f7   : > { %2777 = vrot.lane.b32.xlu0 %v8995_v23, %s4963_s29  ;;  %v8999_v23 = vld [vmem:[#allocation72_spill] sm:$0xff] }
 0x2f8   : > { %v6533_v51 = vpop.permute.xlu1 %2663 }
 0x2f9   : > { %v6535_v39 = vpop.permute.xlu0 %2665 }
 0x2fa   : > { %2783 = vrot.lane.b32.xlu1 %v8996_v41, %s4963_s29  ;;  %v9000_v41 = vld [vmem:[#allocation91_spill] sm:$0xff] }
 0x2fb   : > { %2781 = vrot.lane.b32.xlu0 %v8997_v3, %s4963_s29  ;;  %v9001_v3 = vld [vmem:[#allocation82_spill] sm:$0xff] }
 0x2fc   : > { %v6541_v4 = vpop.permute.xlu1 %2667 }
 0x2fd   : > { %v6543_v13 = vpop.permute.xlu0 %2669 }
 0x2fe   : > { %2787 = vrot.lane.b32.xlu1 %v8998_v28, %s4963_s29  ;;  %v9003_v28 = vld [vmem:[#allocation90_spill] sm:$0xff] }
 0x2ff   : > { %2785 = vrot.lane.b32.xlu0 %v8999_v23, %s4963_s29 }
 0x300   : > { %v6549_v48 = vpop.permute.xlu1 %2671 }
 0x301   : > { %v6551_v8 = vpop.permute.xlu0 %2673 }
 0x302   : > { %2791 = vrot.lane.b32.xlu1 %v9000_v41, %s4963_s29  ;;  %v9006_v41 = vld [vmem:[#allocation101_spill] sm:$0xff] }
 0x303   : > { %2789 = vrot.lane.b32.xlu0 %v9001_v3, %s4963_s29 }
 0x304   : > { %v6557_v20 = vpop.permute.xlu1 %2675 }
 0x305   : > { %v6559_v46 = vpop.permute.xlu0 %2677 }
 0x306   : > { %2795 = vrot.lane.b32.xlu1 %v9002_v24, %s4963_s29  ;;  %v9008_v24 = vld [vmem:[#allocation7_spill] sm:$0xff] }
 0x307   : > { %2793 = vrot.lane.b32.xlu0 %v9003_v28, %s4963_s29  ;;  %v9009_v28 = vld [vmem:[#allocation87_spill] sm:$0xff] }
 0x308   : > { %v6565_v23 = vpop.permute.xlu1 %2679 }
 0x309   : > { %v6567_v9 = vpop.permute.xlu0 %2681 }
 0x30a   : > { %9004 = vst [vmem:[#allocation185_spill] sm:$0xff] %v6567_v9  ;;  %2799 = vrot.lane.b32.xlu1 %v9005_v0, %s4963_s29 }
 0x30b   : > { %2797 = vrot.lane.b32.xlu0 %v9006_v41, %s4963_s29 }
 0x30c   : > { %v6574_v3 = vpop.permute.xlu1 %2683 }
 0x30d   : > { %v6576_v33 = vpop.permute.xlu0 %2685 }
 0x30e   : > { %9007 = vst [vmem:[#allocation18_spill] sm:$0xff] %v6576_v33  ;;  %2803 = vrot.lane.b32.xlu1 %v9008_v24, %s4963_s29  ;;  %v9012_v24 = vld [vmem:[#allocation17_spill] sm:$0xff] }
 0x30f   : > { %2801 = vrot.lane.b32.xlu0 %v9009_v28, %s4963_s29  ;;  %v9016_v28 = vld [vmem:[#allocation29_spill] sm:$0xff] }
 0x310   : > { %v6587_v0 = vpop.permute.xlu1 %2687 }
 0x311   : > { %9010 = vst [vmem:[#allocation30_spill] sm:$0xff] %v6587_v0  ;;  %v2159_v41 = vpop.permute.xlu0 %2158  ;;  %v9098_v0 = vld [vmem:[#allocation51_spill] sm:$0xff] }
 0x312   : > { %2235 = vst.msk [vmem:[%s6583_s6 + $0x98] sm:$0xff] %vm9011_vm15, %v2159_v41  ;;  %2807 = vrot.lane.b32.xlu1 %v9012_v24, %s4963_s29  ;;  %v9017_v41 = vld [vmem:[#allocation27_spill] sm:$0xff]  ;;  %vm9018_vm15 = vmmov %vm9015_vm11 }
 0x313   : > { %2805 = vrot.lane.b32.xlu0 %v9013_v17, %s4963_s29  ;;  %v9020_v17 = vld [vmem:[#allocation42_spill] sm:$0xff] }
 0x314   : > { %v2121_v18 = vpop.permute.xlu1 %2120 }
 0x315   : > { %2216 = vst.msk [vmem:[%s6583_s6] sm:$0xff] %vm9014_vm13, %v2121_v18  ;;  %v2123_v12 = vpop.permute.xlu0 %2122  ;;  %vm9023_vm13 = vmmov %vm9019_vm9 }
 0x316   : > { %2217 = vst.msk [vmem:[%s6583_s6 + $0x8] sm:$0xff] %vm9015_vm11, %v2123_v12  ;;  %2811 = vrot.lane.b32.xlu1 %v9016_v28, %s4963_s29  ;;  %v9021_v12 = vld [vmem:[#allocation40_spill] sm:$0xff]  ;;  %vm9022_vm11 = vmmov %vm9019_vm9 }
 0x317   : > { %2809 = vrot.lane.b32.xlu0 %v9017_v41, %s4963_s29  ;;  %v9024_v41 = vld [vmem:[#allocation54_spill] sm:$0xff] }
 0x318   : > { %v2161_v53 = vpop.permute.xlu1 %2160 }
 0x319   : > { %2236 = vst.msk [vmem:[%s6583_s6 + $0xa0] sm:$0xff] %vm9018_vm15, %v2161_v53  ;;  %v2163_v24 = vpop.permute.xlu0 %2162  ;;  %v9025_v53 = vld [vmem:[#allocation52_spill] sm:$0xff]  ;;  %vm9026_vm15 = vmmov %vm9019_vm9 }
 0x31a   : > { %2237 = vst.msk [vmem:[%s6583_s6 + $0xa8] sm:$0xff] %vm9019_vm9, %v2163_v24  ;;  %2815 = vrot.lane.b32.xlu1 %v9020_v17, %s4963_s29 }
 0x31b   : > { %2813 = vrot.lane.b32.xlu0 %v9021_v12, %s4963_s29  ;;  %v9027_v12 = vld [vmem:[#allocation66_spill] sm:$0xff] }
 0x31c   : > { %v2125_v18 = vpop.permute.xlu1 %2124 }
 0x31d   : > { %2218 = vst.msk [vmem:[%s6583_s6 + $0x10] sm:$0xff] %vm9022_vm11, %v2125_v18  ;;  %v2127_v28 = vpop.permute.xlu0 %2126  ;;  %v9028_v18 = vld [vmem:[#allocation64_spill] sm:$0xff]  ;;  %vm9029_vm11 = vmmov %vm9019_vm9 }
 0x31e   : > { %2219 = vst.msk [vmem:[%s6583_s6 + $0x18] sm:$0xff] %vm9023_vm13, %v2127_v28  ;;  %2819 = vrot.lane.b32.xlu1 %v9024_v41, %s4963_s29  ;;  %vm9030_vm13 = vmmov %vm9019_vm9 }
 0x31f   : > { %2817 = vrot.lane.b32.xlu0 %v9025_v53, %s4963_s29  ;;  %v9031_v53 = vld [vmem:[#allocation78_spill] sm:$0xff] }
 0x320   : > { %v2165_v24 = vpop.permute.xlu1 %2164 }
 0x321   : > { %2238 = vst.msk [vmem:[%s6583_s6 + $0xb0] sm:$0xff] %vm9019_vm9, %v2165_v24  ;;  %v2167_v17 = vpop.permute.xlu0 %2166  ;;  %v9032_v24 = vld [vmem:[#allocation75_spill] sm:$0xff] }
 0x322   : > { %2239 = vst.msk [vmem:[%s6583_s6 + $0xb8] sm:$0xff] %vm9026_vm15, %v2167_v17  ;;  %2823 = vrot.lane.b32.xlu1 %v9027_v12, %s4963_s29  ;;  %vm9033_vm15 = vmmov %vm9019_vm9 }
 0x323   : > { %2821 = vrot.lane.b32.xlu0 %v9028_v18, %s4963_s29 }
 0x324   : > { %v2129_v28 = vpop.permute.xlu1 %2128 }
 0x325   : > { %2220 = vst.msk [vmem:[%s6583_s6 + $0x20] sm:$0xff] %vm9029_vm11, %v2129_v28  ;;  %v2131_v41 = vpop.permute.xlu0 %2130  ;;  %v9034_v28 = vld [vmem:[#allocation8_spill] sm:$0xff]  ;;  %vm9036_vm11 = vmmov %vm9019_vm9 }
 0x326   : > { %2221 = vst.msk [vmem:[%s6583_s6 + $0x28] sm:$0xff] %vm9030_vm13, %v2131_v41  ;;  %2827 = vrot.lane.b32.xlu1 %v9031_v53, %s4963_s29  ;;  %v9035_v41 = vld [vmem:[#allocation84_spill] sm:$0xff]  ;;  %vm9037_vm13 = vmmov %vm9019_vm9 }
 0x327   : > { %2825 = vrot.lane.b32.xlu0 %v9032_v24, %s4963_s29 }
 0x328   : > { %v2169_v17 = vpop.permute.xlu1 %2168 }
 0x329   : > { %2240 = vst.msk [vmem:[%s6583_s6 + $0xc0] sm:$0xff] %vm9019_vm9, %v2169_v17  ;;  %v2171_v12 = vpop.permute.xlu0 %2170  ;;  %v9038_v17 = vld [vmem:[#allocation15_spill] sm:$0xff] }
 0x32a   : > { %2241 = vst.msk [vmem:[%s6583_s6 + $0xc8] sm:$0xff] %vm9033_vm15, %v2171_v12  ;;  %2927 = vrot.lane.b32.xlu1 %v9034_v28, %s4964_s7  ;;  %v9039_v12 = vld [vmem:[#allocation4_spill] sm:$0xff]  ;;  %vm9040_vm15 = vmmov %vm9019_vm9 }
 0x32b   : > { %2829 = vrot.lane.b32.xlu0 %v9035_v41, %s4963_s29  ;;  %v9041_v41 = vld [vmem:[#allocation25_spill] sm:$0xff] }
 0x32c   : > { %v2133_v53 = vpop.permute.xlu1 %2132 }
 0x32d   : > { %2222 = vst.msk [vmem:[%s6583_s6 + $0x30] sm:$0xff] %vm9036_vm11, %v2133_v53  ;;  %v2135_v24 = vpop.permute.xlu0 %2134  ;;  %v9042_v53 = vld [vmem:[#allocation10_spill] sm:$0xff]  ;;  %vm9043_vm11 = vmmov %vm9019_vm9 }
 0x32e   : > { %2223 = vst.msk [vmem:[%s6583_s6 + $0x38] sm:$0xff] %vm9037_vm13, %v2135_v24  ;;  %2931 = vrot.lane.b32.xlu1 %v9038_v17, %s4964_s7  ;;  %vm9044_vm13 = vmmov %vm9019_vm9 }
 0x32f   : > { %2929 = vrot.lane.b32.xlu0 %v9039_v12, %s4964_s7 }
 0x330   : > { %v2173_v18 = vpop.permute.xlu1 %2172 }
 0x331   : > { %2242 = vst.msk [vmem:[%s6583_s6 + $0xd0] sm:$0xff] %vm9019_vm9, %v2173_v18  ;;  %v2175_v28 = vpop.permute.xlu0 %2174  ;;  %v9045_v18 = vld [vmem:[#allocation19_spill] sm:$0xff] }
 0x332   : > { %2243 = vst.msk [vmem:[%s6583_s6 + $0xd8] sm:$0xff] %vm9040_vm15, %v2175_v28  ;;  %2935 = vrot.lane.b32.xlu1 %v9041_v41, %s4964_s7  ;;  %vm9046_vm15 = vmmov %vm9019_vm9  ;;  %v9073_v41 = vld [vmem:[#allocation89_spill] sm:$0xff] }
 0x333   : > { %2933 = vrot.lane.b32.xlu0 %v9042_v53, %s4964_s7  ;;  %v9057_v53 = vld [vmem:[#allocation16_spill] sm:$0xff] }
 0x334   : > { %v2137_v24 = vpop.permute.xlu1 %2136 }
 0x335   : > { %2224 = vst.msk [vmem:[%s6583_s6 + $0x40] sm:$0xff] %vm9043_vm11, %v2137_v24  ;;  %v2139_v17 = vpop.permute.xlu0 %2138  ;;  %vm9047_vm11 = vmmov %vm9019_vm9 }
 0x336   : > { %2225 = vst.msk [vmem:[%s6583_s6 + $0x48] sm:$0xff] %vm9044_vm13, %v2139_v17  ;;  %2939 = vrot.lane.b32.xlu1 %v5231_v52, %s4964_s7  ;;  %vm9048_vm13 = vmmov %vm9019_vm9 }
 0x337   : > { %2937 = vrot.lane.b32.xlu0 %v9045_v18, %s4964_s7 }
 0x338   : > { %v2177_v12 = vpop.permute.xlu1 %2176 }
 0x339   : > { %2244 = vst.msk [vmem:[%s6583_s6 + $0xe0] sm:$0xff] %vm9019_vm9, %v2177_v12  ;;  %v2179_v28 = vpop.permute.xlu0 %2178 }
 0x33a   : > { %2245 = vst.msk [vmem:[%s6583_s6 + $0xe8] sm:$0xff] %vm9046_vm15, %v2179_v28  ;;  %2943 = vrot.lane.b32.xlu1 %v5274_v32, %s4964_s7  ;;  %vm9049_vm15 = vmmov %vm9019_vm9  ;;  %v9071_v32 = vld [vmem:[#allocation80_spill] sm:$0xff] }
 0x33b   : > { %2941 = vrot.lane.b32.xlu0 %v5213_v38, %s4964_s7  ;;  %v9072_v38 = vld [vmem:[#allocation71_spill] sm:$0xff] }
 0x33c   : > { %v2141_v17 = vpop.permute.xlu1 %2140 }
 0x33d   : > { %2226 = vst.msk [vmem:[%s6583_s6 + $0x50] sm:$0xff] %vm9047_vm11, %v2141_v17  ;;  %v2143_v24 = vpop.permute.xlu0 %2142  ;;  %vm9050_vm11 = vmmov %vm9019_vm9 }
 0x33e   : > { %2227 = vst.msk [vmem:[%s6583_s6 + $0x58] sm:$0xff] %vm9048_vm13, %v2143_v24  ;;  %2947 = vrot.lane.b32.xlu1 %v8821_v34, %s4964_s7  ;;  %vm9051_vm13 = vmmov %vm9019_vm9  ;;  %v9069_v34 = vld [vmem:[#allocation69_spill] sm:$0xff] }
 0x33f   : > { %2945 = vrot.lane.b32.xlu0 %v5256_v14, %s4964_s7 }
 0x340   : > { %v2181_v12 = vpop.permute.xlu1 %2180 }
 0x341   : > { %2246 = vst.msk [vmem:[%s6583_s6 + $0xf0] sm:$0xff] %vm9019_vm9, %v2181_v12  ;;  %v2183_v28 = vpop.permute.xlu0 %2182 }
 0x342   : > { %2247 = vst.msk [vmem:[%s6583_s6 + $0xf8] sm:$0xff] %vm9049_vm15, %v2183_v28  ;;  %2951 = vrot.lane.b32.xlu1 %v5360_v40, %s4964_s7  ;;  %vm9052_vm15 = vmmov %vm9019_vm9  ;;  %v9067_v40 = vld [vmem:[#allocation57_spill] sm:$0xff] }
 0x343   : > { %2949 = vrot.lane.b32.xlu0 %v8820_v15, %s4964_s7 }
 0x344   : > { %v2157_v17 = vpop.permute.xlu1 %2156 }
 0x345   : > { %2234 = vst.msk [vmem:[%s6583_s6 + $0x90] sm:$0xff] %vm9050_vm11, %v2157_v17  ;;  %v2147_v24 = vpop.permute.xlu0 %2146  ;;  %vm9053_vm11 = vmmov %vm9019_vm9 }
 0x346   : > { %2229 = vst.msk [vmem:[%s6583_s6 + $0x68] sm:$0xff] %vm9051_vm13, %v2147_v24  ;;  %2955 = vrot.lane.b32.xlu1 %v5397_v54, %s4964_s7  ;;  %vm9054_vm13 = vmmov %vm9019_vm9 }
 0x347   : > { %2953 = vrot.lane.b32.xlu0 %v5342_v61, %s4964_s7 }
 0x348   : > { %v2145_v12 = vpop.permute.xlu1 %2144 }
 0x349   : > { %2228 = vst.msk [vmem:[%s6583_s6 + $0x60] sm:$0xff] %vm9019_vm9, %v2145_v12 }
 0x34a   : > { %2959 = vrot.lane.b32.xlu1 %v8978_v16, %s4964_s7 }
 0x34b   : > { %2957 = vrot.lane.b32.xlu0 %v8975_v36, %s4964_s7 }
 0x34c   : > { %v2153_v28 = vpop.permute.xlu1 %2152 }
 0x34d   : > { %2232 = vst.msk [vmem:[%s6583_s6 + $0x80] sm:$0xff] %vm9052_vm15, %v2153_v28  ;;  %v2155_v17 = vpop.permute.xlu0 %2154 }
 0x34e   : > { %2233 = vst.msk [vmem:[%s6583_s6 + $0x88] sm:$0xff] %vm9053_vm11, %v2155_v17  ;;  %2963 = vrot.lane.b32.xlu1 %v8977_v59, %s4964_s7  ;;  %v9058_v59 = vld [vmem:[#allocation5_spill] sm:$0xff] }
 0x34f   : > { %2961 = vrot.lane.b32.xlu0 %v8983_v43, %s4964_s7 }
 0x350   : > { %v2149_v24 = vpop.permute.xlu1 %2148 }
 0x351   : > { %2230 = vst.msk [vmem:[%s6583_s6 + $0x70] sm:$0xff] %vm9054_vm13, %v2149_v24  ;;  %v2151_v12 = vpop.permute.xlu0 %2150 }
 0x352   : > { %2231 = vst.msk [vmem:[%s6583_s6 + $0x78] sm:$0xff] %vm9019_vm9, %v2151_v12  ;;  %2967 = vrot.lane.b32.xlu1 %v8940_v35, %s4964_s7  ;;  %v9061_v12 = vld [vmem:[#allocation11_spill] sm:$0xff] }
 0x353   : > { %2965 = vrot.lane.b32.xlu0 %v8980_v31, %s4964_s7 }
 0x354   : > { %v6721_v28 = vpop.permute.xlu1 %2691 }
 0x355   : > { %9055 = vst [vmem:[#allocation8_spill] sm:$0xff] %v6721_v28  ;;  %v6723_v17 = vpop.permute.xlu0 %2689 }
 0x356   : > { %9056 = vst [vmem:[#allocation4_spill] sm:$0xff] %v6723_v17  ;;  %2971 = vrot.lane.b32.xlu1 %v9057_v53, %s4964_s7  ;;  %v9063_v53 = vld [vmem:[#allocation20_spill] sm:$0xff]  ;;  %v9093_v17 = vld [vmem:[#allocation39_spill] sm:$0xff] }
 0x357   : > { %2969 = vrot.lane.b32.xlu0 %v9058_v59, %s4964_s7 }
 0x358   : > { %v6729_v24 = vpop.permute.xlu1 %2695 }
 0x359   : > { %9059 = vst [vmem:[#allocation187_spill] sm:$0xff] %v6729_v24  ;;  %v6731_v43 = vpop.permute.xlu0 %2693 }
 0x35a   : > { %9060 = vst [vmem:[#allocation188_spill] sm:$0xff] %v6731_v43  ;;  %2975 = vrot.lane.b32.xlu1 %v8946_v21, %s4964_s7  ;;  %v9087_v43 = vld [vmem:[#allocation33_spill] sm:$0xff] }
 0x35b   : > { %2973 = vrot.lane.b32.xlu0 %v9061_v12, %s4964_s7 }
 0x35c   : > { %v6737_v35 = vpop.permute.xlu1 %2767 }
 0x35d   : > { %v6739_v31 = vpop.permute.xlu0 %2697 }
 0x35e   : > { %9062 = vst [vmem:[#allocation189_spill] sm:$0xff] %v6739_v31  ;;  %2979 = vrot.lane.b32.xlu1 %v8951_v25, %s4964_s7  ;;  %v9083_v31 = vld [vmem:[#allocation23_spill] sm:$0xff] }
 0x35f   : > { %2977 = vrot.lane.b32.xlu0 %v9063_v53, %s4964_s7 }
 0x360   : > { %v6745_v59 = vpop.permute.xlu1 %2771 }
 0x361   : > { %v6747_v16 = vpop.permute.xlu0 %2769 }
 0x362   : > { %2983 = vrot.lane.b32.xlu1 %v8955_v6, %s4964_s7  ;;  %v9064_v6 = vld [vmem:[#allocation34_spill] sm:$0xff] }
 0x363   : > { %2981 = vrot.lane.b32.xlu0 %v8953_v45, %s4964_s7 }
 0x364   : > { %v6753_v21 = vpop.permute.xlu1 %2775 }
 0x365   : > { %v6755_v12 = vpop.permute.xlu0 %2773 }
 0x366   : > { %2987 = vrot.lane.b32.xlu1 %v8968_v49, %s4964_s7  ;;  %v9065_v49 = vld [vmem:[#allocation45_spill] sm:$0xff] }
 0x367   : > { %2985 = vrot.lane.b32.xlu0 %v8964_v55, %s4964_s7  ;;  %v9066_v55 = vld [vmem:[#allocation35_spill] sm:$0xff] }
 0x368   : > { %v6761_v25 = vpop.permute.xlu1 %2779 }
 0x369   : > { %v6763_v53 = vpop.permute.xlu0 %2777 }
 0x36a   : > { %3159 = vrot.lane.b32.xlu1 %v9064_v6, %s4965_s8 }
 0x36b   : > { %2989 = vrot.lane.b32.xlu0 %v8970_v22, %s4964_s7 }
 0x36c   : > { %v6769_v45 = vpop.permute.xlu1 %2783 }
 0x36d   : > { %v6771_v36 = vpop.permute.xlu0 %2781 }
 0x36e   : > { %3163 = vrot.lane.b32.xlu1 %v9065_v49, %s4965_s8  ;;  %v9077_v49 = vld [vmem:[#allocation86_spill] sm:$0xff] }
 0x36f   : > { %3161 = vrot.lane.b32.xlu0 %v9066_v55, %s4965_s8 }
 0x370   : > { %v6777_v54 = vpop.permute.xlu1 %2787 }
 0x371   : > { %v6779_v61 = vpop.permute.xlu0 %2785 }
 0x372   : > { %3167 = vrot.lane.b32.xlu1 %v9067_v40, %s4965_s8  ;;  %v9075_v40 = vld [vmem:[#allocation100_spill] sm:$0xff] }
 0x373   : > { %3165 = vrot.lane.b32.xlu0 %v9068_v26, %s4965_s8 }
 0x374   : > { %v6785_v22 = vpop.permute.xlu1 %2791 }
 0x375   : > { %v6787_v15 = vpop.permute.xlu0 %2789 }
 0x376   : > { %3171 = vrot.lane.b32.xlu1 %v9069_v34, %s4965_s8  ;;  %v9074_v34 = vld [vmem:[#allocation88_spill] sm:$0xff] }
 0x377   : > { %3169 = vrot.lane.b32.xlu0 %v9070_v62, %s4965_s8 }
 0x378   : > { %v6793_v11 = vpop.permute.xlu1 %2795 }
 0x379   : > { %v6795_v14 = vpop.permute.xlu0 %2793 }
 0x37a   : > { %3175 = vrot.lane.b32.xlu1 %v9071_v32, %s4965_s8  ;;  %v9076_v32 = vld [vmem:[#allocation98_spill] sm:$0xff] }
 0x37b   : > { %3173 = vrot.lane.b32.xlu0 %v9072_v38, %s4965_s8 }
 0x37c   : > { %v6801_v52 = vpop.permute.xlu1 %2799 }
 0x37d   : > { %v6803_v18 = vpop.permute.xlu0 %2797 }
 0x37e   : > { %3179 = vrot.lane.b32.xlu1 %v9073_v41, %s4965_s8  ;;  %v9078_v41 = vld [vmem:[#allocation102_spill] sm:$0xff] }
 0x37f   : > { %3177 = vrot.lane.b32.xlu0 %v9074_v34, %s4965_s8 }
 0x380   : > { %v6809_v62 = vpop.permute.xlu1 %2803 }
 0x381   : > { %v6811_v26 = vpop.permute.xlu0 %2801 }
 0x382   : > { %3183 = vrot.lane.b32.xlu1 %v9075_v40, %s4965_s8  ;;  %v9080_v40 = vld [vmem:[#allocation6_spill] sm:$0xff] }
 0x383   : > { %3181 = vrot.lane.b32.xlu0 %v9076_v32, %s4965_s8 }
 0x384   : > { %v6817_v38 = vpop.permute.xlu1 %2807 }
 0x385   : > { %v6819_v55 = vpop.permute.xlu0 %2805 }
 0x386   : > { %3187 = vrot.lane.b32.xlu1 %v9077_v49, %s4965_s8  ;;  %v9084_v49 = vld [vmem:[#allocation13_spill] sm:$0xff] }
 0x387   : > { %3185 = vrot.lane.b32.xlu0 %v9078_v41, %s4965_s8 }
 0x388   : > { %v6825_v34 = vpop.permute.xlu1 %2811 }
 0x389   : > { %v6827_v6 = vpop.permute.xlu0 %2809 }
 0x38a   : > { %3191 = vrot.lane.b32.xlu1 %v9079_v10, %s4965_s8  ;;  %v9088_v10 = vld [vmem:[#allocation24_spill] sm:$0xff] }
 0x38b   : > { %3189 = vrot.lane.b32.xlu0 %v9080_v40, %s4965_s8  ;;  %v9089_v40 = vld [vmem:[#allocation136_spill] sm:$0xff] }
 0x38c   : > { %v6833_v32 = vpop.permute.xlu1 %2815  ;;  %v599_v24 = vadd.s32 8, %v9089_v40 }
 0x38d   : > { %9081 = vst [vmem:[#allocation190_spill] sm:$0xff] %v6833_v32  ;;  %v6835_v47 = vpop.permute.xlu0 %2813  ;;  %v9106_v32 = vmov 0 }
 0x38e   : > { %9082 = vst [vmem:[#allocation191_spill] sm:$0xff] %v6835_v47  ;;  %3195 = vrot.lane.b32.xlu1 %v9083_v31, %s4965_s8  ;;  %v9092_v31 = vld [vmem:[#allocation46_spill] sm:$0xff]  ;;  %v641_v28 = vand.u32 15, %v599_v24  ;;  %v9099_v24 = vmov 0  ;;  %v9112_v47 = vld [vmem:[#allocation81_spill] sm:$0xff] }
 0x38f   : > { %3193 = vrot.lane.b32.xlu0 %v9084_v49, %s4965_s8  ;;  %v601_v49 = vadd.s32 24, %v9089_v40 }
 0x390   : > { %v6841_v41 = vpop.permute.xlu1 %2819  ;;  %vm6871_vm15 = vcmp.lt.s32.totalorder %v641_v28, 15  ;;  %v605_v28 = vadd.s32 56, %v9089_v40 }
 0x391   : > { %9085 = vst [vmem:[#allocation192_spill] sm:$0xff] %v6841_v41  ;;  %v6843_v7 = vpop.permute.xlu0 %2817  ;;  %v9100_v24 = vsel %vm6871_vm15, 4294967295, %v9099_v24 }
 0x392   : > { %9086 = vst [vmem:[#allocation193_spill] sm:$0xff] %v6843_v7  ;;  %3199 = vrot.lane.b32.xlu1 %v9087_v43, %s4965_s8  ;;  %v9095_v43 = vld [vmem:[#allocation123_spill] sm:$0xff]  ;;  %v603_v7 = vadd.s32 40, %v9089_v40  ;;  %9101 = vst [vmem:[#allocation196_spill] sm:$0xff] %v9100_v24 }
 0x393   : > { %3197 = vrot.lane.b32.xlu0 %v9088_v10, %s4965_s8  ;;  %v2731_v10 = vadd.f32 %v6479_v29, %v9095_v43  ;;  %v9103_v29 = vld [vmem:[#allocation131_spill] sm:$0xff] }
 0x394   : > { %v6850_v60 = vpop.permute.xlu1 %2823 }
 0x395   : > { %9090 = vst [vmem:[#allocation136_spill] sm:$0xff] %v6850_v60  ;;  %v6852_v37 = vpop.permute.xlu0 %2821  ;;  %v9097_v60 = vld [vmem:[#allocation58_spill] sm:$0xff] }
 0x396   : > { %9091 = vst [vmem:[#allocation194_spill] sm:$0xff] %v6852_v37  ;;  %3203 = vrot.lane.b32.xlu1 %v9092_v31, %s4965_s8  ;;  %v655_v37 = vand.u32 15, %v601_v49  ;;  %v2895_v31 = vadd.f32 %v6737_v35, %v2731_v10  ;;  %v2864_v49 = vsel %vm6871_vm15, %v6747_v16, 0.0  ;;  %v6897_v16 = vld [vmem:[%s8339_s2] ss:$0 sm:$0xff] }
 0x397   : > { %3201 = vrot.lane.b32.xlu0 %v9093_v17, %s4965_s8 }
 0x398   : > { %v6859_v41 = vpop.permute.xlu1 %2827  ;;  %vm6889_vm11 = vcmp.lt.s32.totalorder %v655_v37, 15 }
 0x399   : > { %9094 = vst [vmem:[#allocation195_spill] sm:$0xff] %v6859_v41  ;;  %v6863_v33 = vpop.permute.xlu0 %2825  ;;  %v9102_v41 = vld [vmem:[#allocation125_spill] sm:$0xff]  ;;  %v9107_v32 = vsel %vm6889_vm11, 4294967295, %v9106_v32 }
 0x39a   : > { %9096 = vst [vmem:[#allocation123_spill] sm:$0xff] %v6863_v33  ;;  %3207 = vrot.lane.b32.xlu1 %v9097_v60, %s4965_s8  ;;  %v2572_v43 = vsel %vm6871_vm15, %v9102_v41, 0.0  ;;  %v2733_v60 = vadd.f32 %v6485_v30, %v9103_v29  ;;  %v9105_v33 = vld [vmem:[#allocation70_spill] sm:$0xff]  ;;  %9108 = vst [vmem:[#allocation131_spill] sm:$0xff] %v9107_v32  ;;  %v669_v41 = vand.u32 15, %v603_v7 }
 0x39b   : > { %3205 = vrot.lane.b32.xlu0 %v9098_v0, %s4965_s8  ;;  %v2732_v0 = vadd.f32 %v6481_v19, %v2572_v43  ;;  %v9110_v19 = vld [vmem:[#allocation133_spill] sm:$0xff]  ;;  %v9111_v7 = vld [vmem:[#allocation142_spill] sm:$0xff] }
 0x39c   : > { %v2928_v17 = vpop.permute.xlu1 %2927  ;;  %v2897_v30 = vadd.f32 %v6745_v59, %v2733_v60  ;;  %v2574_v37 = vsel %vm6889_vm11, %v9110_v19, 0.0  ;;  %v2735_v59 = vadd.f32 %v6493_v63, %v9111_v7  ;;  %v2866_v60 = vsel %vm6889_vm11, %v6755_v12, 0.0 }
 0x39d   : > { %v3023_v10 = vadd.f32 %v2928_v17, %v2895_v31  ;;  %v6883_v35 = vpop.permute.xlu0 %2829  ;;  %v9109_v17 = vld [vmem:[#allocation63_spill] sm:$0xff]  ;;  %v2896_v43 = vadd.f32 %v2864_v49, %v2732_v0  ;;  %vm6913_vm13 = vcmp.lt.s32.totalorder %v669_v41, 15  ;;  %v9113_v0 = vmov 0 }
 0x39e   : > { %9104 = vst [vmem:[#allocation125_spill] sm:$0xff] %v6883_v35  ;;  %3211 = vrot.lane.b32.xlu1 %v9105_v33, %s4965_s8  ;;  %v683_v35 = vand.u32 15, %v605_v28  ;;  %v9114_v0 = vsel %vm6913_vm13, 4294967295, %v9113_v0  ;;  %v607_v63 = vadd.s32 72, %v9089_v40  ;;  %v2899_v49 = vadd.f32 %v6753_v21, %v2735_v59  ;;  %v9116_v28 = vld [vmem:[#allocation77_spill] sm:$0xff] }
 0x39f   : > { %v3055_v31 = vadd.f32 %v6897_v16, %v3023_v10  ;;  %3209 = vrot.lane.b32.xlu0 %v9109_v17, %s4965_s8  ;;  %v2734_v17 = vadd.f32 %v6487_v5, %v2574_v37  ;;  %9115 = vst [vmem:[#allocation133_spill] sm:$0xff] %v9114_v0  ;;  %v9117_v5 = vld [vmem:[#allocation145_spill] sm:$0xff]  ;;  %v9118_v37 = vld [vmem:[#allocation154_spill] sm:$0xff]  ;;  %v2868_v21 = vsel %vm6913_vm13, %v6763_v53, 0.0  ;;  %v9119_v7 = vmov 0 }
 0x3a0   : > { %v2932_v29 = vpop.permute.xlu1 %2931  ;;  %v9283_v0 = vld [vmem:[#allocation37_spill] sm:$0xff] }
 0x3a1   : > { %v3087_v24 = vmax.f32 %v3055_v31, 0.0  ;;  %v3025_v33 = vadd.f32 %v2932_v29, %v2897_v30  ;;  %v2930_v10 = vpop.permute.xlu0 %2929  ;;  %v2576_v30 = vsel %vm6913_vm13, %v9117_v5, 0.0  ;;  %v2898_v31 = vadd.f32 %v2866_v60, %v2734_v17  ;;  %v9122_v60 = vld [vmem:[#allocation96_spill] sm:$0xff] }
 0x3a2   : > { %v3024_v9 = vadd.f32 %v2930_v10, %v2896_v43  ;;  %3215 = vrot.lane.b32.xlu1 %v9112_v47, %s4965_s8  ;;  %v2737_v43 = vadd.f32 %v6501_v44, %v9118_v37  ;;  %v2736_v17 = vadd.f32 %v6495_v50, %v2576_v30  ;;  %v697_v44 = vand.u32 15, %v607_v63 }
 0x3a3   : > { %4719 = vst.msk [vmem:[%s6583_s6 + $0x100] sm:$0xff] %vm9019_vm9, %v3087_v24  ;;  %v3057_v12 = vadd.f32 %v6897_v16, %v3025_v33  ;;  %3213 = vrot.lane.b32.xlu0 %v9116_v28, %s4965_s8  ;;  %vm6933_vm9 = vcmp.lt.s32.totalorder %v683_v35, 15  ;;  %v609_v10 = vadd.s32 88, %v9089_v40  ;;  %vm9123_vm13 = vcmask 64512   ;;  %v9124_v35 = vld [vmem:[#allocation94_spill] sm:$0xff] }
 0x3a4   : > { %v3056_v41 = vadd.f32 %v6897_v16, %v3024_v9  ;;  %v2936_v19 = vpop.permute.xlu1 %2935  ;;  %v9120_v7 = vsel %vm6933_vm9, 4294967295, %v9119_v7  ;;  %v2901_v53 = vadd.f32 %v6761_v25, %v2737_v43  ;;  %v2900_v5 = vadd.f32 %v2868_v21, %v2736_v17  ;;  %vm9126_vm11 = vmmov %vm9123_vm13 }
 0x3a5   : > { %v3089_v33 = vmax.f32 %v3057_v12, 0.0  ;;  %v3027_v24 = vadd.f32 %v2936_v19, %v2899_v49  ;;  %v2934_v29 = vpop.permute.xlu0 %2933  ;;  %9121 = vst [vmem:[#allocation142_spill] sm:$0xff] %v9120_v7  ;;  %v9125_v12 = vld [vmem:[#allocation157_spill] sm:$0xff]  ;;  %v9128_v17 = vmov 0  ;;  %v9282_v7 = vld [vmem:[#allocation19_spill] sm:$0xff] }
 0x3a6   : > { %v3088_v59 = vmax.f32 %v3056_v41, 0.0  ;;  %v3026_v9 = vadd.f32 %v2934_v29, %v2898_v31  ;;  %3219 = vrot.lane.b32.xlu1 %v9122_v60, %s4965_s8  ;;  %v2578_v50 = vsel %vm6933_vm9, %v9125_v12, 0.0  ;;  %v9127_v31 = vld [vmem:[#allocation163_spill] sm:$0xff]  ;;  %v2870_v41 = vsel %vm6933_vm9, %v6771_v36, 0.0  ;;  %v9132_v60 = vld [vmem:[#allocation166_spill] sm:$0xff]  ;;  %vm9133_vm9 = vmmov %vm9123_vm13 }
 0x3a7   : > { %4721 = vst.msk [vmem:[%s6583_s6 + $0x110] sm:$0xff] %vm9123_vm13, %v3089_v33  ;;  %v3059_v49 = vadd.f32 %v6897_v16, %v3027_v24  ;;  %3217 = vrot.lane.b32.xlu0 %v9124_v35, %s4965_s8  ;;  %v2739_v25 = vadd.f32 %v6509_v2, %v9127_v31  ;;  %v611_v33 = vadd.s32 104, %v9089_v40  ;;  %v2738_v21 = vadd.f32 %v6503_v42, %v2578_v50 }
 0x3a8   : > { %4720 = vst.msk [vmem:[%s6583_s6 + $0x108] sm:$0xff] %vm9126_vm11, %v3088_v59  ;;  %v3058_v63 = vadd.f32 %v6897_v16, %v3026_v9  ;;  %v2940_v30 = vpop.permute.xlu1 %2939  ;;  %vm6960_vm11 = vcmp.lt.s32.totalorder %v697_v44, 15  ;;  %v711_v59 = vand.u32 15, %v609_v10  ;;  %v9131_v9 = vld [vmem:[#allocation168_spill] sm:$0xff] }
 0x3a9   : > { %v3091_v19 = vmax.f32 %v3059_v49, 0.0  ;;  %v3029_v37 = vadd.f32 %v2940_v30, %v2901_v53  ;;  %v2938_v43 = vpop.permute.xlu0 %2937  ;;  %v9129_v17 = vsel %vm6960_vm11, 4294967295, %v9128_v17  ;;  %v2903_v2 = vadd.f32 %v6769_v45, %v2739_v25  ;;  %v9134_v49 = vld [vmem:[#allocation174_spill] sm:$0xff] }
 0x3aa   : > { %v3090_v24 = vmax.f32 %v3058_v63, 0.0  ;;  %v3028_v29 = vadd.f32 %v2938_v43, %v2900_v5  ;;  %9130 = vst [vmem:[#allocation81_spill] sm:$0xff] %v9129_v17  ;;  %v2580_v42 = vsel %vm6960_vm11, %v9132_v60, 0.0  ;;  %v2902_v53 = vadd.f32 %v2870_v41, %v2738_v21  ;;  %v9138_v43 = vld [vmem:[#allocation172_spill] sm:$0xff] }
 0x3ab   : > { %4723 = vst.msk [vmem:[%s6583_s6 + $0x120] sm:$0xff] %vm9123_vm13, %v3091_v19  ;;  %v3061_v36 = vadd.f32 %v6897_v16, %v3029_v37  ;;  %3221 = vrot.lane.b32.xlu0 %v9131_v9, %s4965_s8  ;;  %v2741_v45 = vadd.f32 %v6517_v57, %v9134_v49  ;;  %v2872_v12 = vsel %vm6960_vm11, %v6779_v61, 0.0  ;;  %v613_v30 = vadd.s32 120, %v9089_v40  ;;  %vm9139_vm11 = vmmov %vm9123_vm13 }
 0x3ac   : > { %4722 = vst.msk [vmem:[%s6583_s6 + $0x118] sm:$0xff] %vm9133_vm9, %v3090_v24  ;;  %v3060_v44 = vadd.f32 %v6897_v16, %v3028_v29  ;;  %v2944_v10 = vpop.permute.xlu1 %2943  ;;  %v2740_v31 = vadd.f32 %v6511_v27, %v2580_v42  ;;  %vm6983_vm9 = vcmp.lt.s32.totalorder %v711_v59, 15  ;;  %v9135_v19 = vmov 0  ;;  %v9140_v59 = vld [vmem:[#allocation180_spill] sm:$0xff] }
 0x3ad   : > { %v3093_v50 = vmax.f32 %v3061_v36, 0.0  ;;  %v3031_v5 = vadd.f32 %v2944_v10, %v2903_v2  ;;  %v2942_v63 = vpop.permute.xlu0 %2941  ;;  %v9136_v19 = vsel %vm6983_vm9, 4294967295, %v9135_v19  ;;  %v725_v37 = vand.u32 15, %v611_v33 }
 0x3ae   : > { %v3092_v25 = vmax.f32 %v3060_v44, 0.0  ;;  %v3030_v41 = vadd.f32 %v2942_v63, %v2902_v53  ;;  %9137 = vst [vmem:[#allocation77_spill] sm:$0xff] %v9136_v19  ;;  %v2905_v57 = vadd.f32 %v6777_v54, %v2741_v45  ;;  %v2582_v21 = vsel %vm6983_vm9, %v9138_v43, 0.0  ;;  %v9144_v45 = vld [vmem:[#allocation183_spill] sm:$0xff]  ;;  %v9146_v63 = vld [vmem:[#allocation184_spill] sm:$0xff] }
 0x3af   : > { %4725 = vst.msk [vmem:[%s6583_s6 + $0x130] sm:$0xff] %vm9123_vm13, %v3093_v50  ;;  %v3063_v61 = vadd.f32 %v6897_v16, %v3031_v5  ;;  %v2904_v24 = vadd.f32 %v2872_v12, %v2740_v31  ;;  %v2743_v33 = vadd.f32 %v6525_v56, %v9140_v59  ;;  %v2874_v54 = vsel %vm6983_vm9, %v6787_v15, 0.0  ;;  %vm9145_vm9 = vmmov %vm9123_vm13 }
 0x3b0   : > { %4724 = vst.msk [vmem:[%s6583_s6 + $0x128] sm:$0xff] %vm9139_vm11, %v3092_v25  ;;  %v3062_v27 = vadd.f32 %v6897_v16, %v3030_v41  ;;  %v2948_v29 = vpop.permute.xlu1 %2947  ;;  %v739_v60 = vand.u32 15, %v613_v30  ;;  %v2742_v42 = vadd.f32 %v6519_v58, %v2582_v21  ;;  %v615_v10 = vadd.s32 136, %v9089_v40 }
 0x3b1   : > { %v3095_v2 = vmax.f32 %v3063_v61, 0.0  ;;  %v3033_v36 = vadd.f32 %v2948_v29, %v2905_v57  ;;  %v2946_v9 = vpop.permute.xlu0 %2945  ;;  %vm7004_vm11 = vcmp.lt.s32.totalorder %v725_v37, 15  ;;  %v9141_v49 = vmov 0 }
 0x3b2   : > { %v3094_v53 = vmax.f32 %v3062_v27, 0.0  ;;  %v3032_v44 = vadd.f32 %v2946_v9, %v2904_v24  ;;  %v9142_v49 = vsel %vm7004_vm11, 4294967295, %v9141_v49  ;;  %v2907_v56 = vadd.f32 %v6785_v22, %v2743_v33  ;;  %v9150_v27 = vld [vmem:[#allocation179_spill] sm:$0xff] }
 0x3b3   : > { %9143 = vst [vmem:[#allocation145_spill] sm:$0xff] %v9142_v49  ;;  %4727 = vst.msk [vmem:[%s6583_s6 + $0x140] sm:$0xff] %vm9123_vm13, %v3095_v2  ;;  %v3065_v15 = vadd.f32 %v6897_v16, %v3033_v36  ;;  %v2584_v12 = vsel %vm7004_vm11, %v9144_v45, 0.0  ;;  %v2906_v50 = vadd.f32 %v2874_v54, %v2742_v42  ;;  %v2745_v30 = vadd.f32 %v6533_v51, %v9146_v63  ;;  %v9152_v54 = vld [vmem:[#allocation111_spill] sm:$0xff]  ;;  %v9156_v45 = vld [vmem:[#allocation112_spill] sm:$0xff] }
 0x3b4   : > { %4726 = vst.msk [vmem:[%s6583_s6 + $0x138] sm:$0xff] %vm9145_vm9, %v3094_v53  ;;  %v3064_v58 = vadd.f32 %v6897_v16, %v3032_v44  ;;  %v2952_v5 = vpop.permute.xlu1 %2951  ;;  %v2876_v22 = vsel %vm7004_vm11, %v6795_v14, 0.0  ;;  %v617_v37 = vadd.s32 152, %v9089_v40  ;;  %v2744_v57 = vadd.f32 %v6527_v1, %v2584_v12  ;;  %vm9151_vm11 = vmmov %vm9123_vm13 }
 0x3b5   : > { %v3097_v31 = vmax.f32 %v3065_v15, 0.0  ;;  %v3035_v25 = vadd.f32 %v2952_v5, %v2907_v56  ;;  %v2950_v41 = vpop.permute.xlu0 %2949  ;;  %v753_v21 = vand.u32 15, %v615_v10  ;;  %vm7025_vm9 = vcmp.lt.s32.totalorder %v739_v60, 15  ;;  %v9158_v5 = vld [vmem:[#allocation117_spill] sm:$0xff] }
 0x3b6   : > { %v3096_v61 = vmax.f32 %v3064_v58, 0.0  ;;  %v3034_v43 = vadd.f32 %v2950_v41, %v2906_v50  ;;  %v9147_v24 = vmov 0  ;;  %v2909_v51 = vadd.f32 %v6793_v11, %v2745_v30 }
 0x3b7   : > { %v9148_v24 = vsel %vm7025_vm9, 4294967295, %v9147_v24  ;;  %4729 = vst.msk [vmem:[%s6583_s6 + $0x150] sm:$0xff] %vm9123_vm13, %v3097_v31  ;;  %v3067_v14 = vadd.f32 %v6897_v16, %v3035_v25  ;;  %v2586_v29 = vsel %vm7025_vm9, %v9150_v27, 0.0  ;;  %v2908_v59 = vadd.f32 %v2876_v22, %v2744_v57 }
 0x3b8   : > { %9149 = vst [vmem:[#allocation154_spill] sm:$0xff] %v9148_v24  ;;  %4728 = vst.msk [vmem:[%s6583_s6 + $0x148] sm:$0xff] %vm9151_vm11, %v3096_v61  ;;  %v3066_v1 = vadd.f32 %v6897_v16, %v3034_v43  ;;  %v2956_v33 = vpop.permute.xlu1 %2955  ;;  %v2747_v2 = vadd.f32 %v6541_v4, %v9152_v54  ;;  %v2878_v11 = vsel %vm7025_vm9, %v6803_v18, 0.0  ;;  %v767_v42 = vand.u32 15, %v617_v37 }
 0x3b9   : > { %v3099_v36 = vmax.f32 %v3067_v14, 0.0  ;;  %v3037_v9 = vadd.f32 %v2956_v33, %v2909_v51  ;;  %v2954_v60 = vpop.permute.xlu0 %2953  ;;  %v2746_v53 = vadd.f32 %v6535_v39, %v2586_v29  ;;  %vm7045_vm11 = vcmp.lt.s32.totalorder %v753_v21, 15  ;;  %vm9157_vm9 = vmmov %vm9123_vm13  ;;  %v9162_v21 = vld [vmem:[#allocation120_spill] sm:$0xff] }
 0x3ba   : > { %v3098_v44 = vmax.f32 %v3066_v1, 0.0  ;;  %v3036_v10 = vadd.f32 %v2954_v60, %v2908_v59  ;;  %v9153_v56 = vmov 0  ;;  %v619_v15 = vadd.s32 168, %v9089_v40  ;;  %v9164_v29 = vld [vmem:[#allocation124_spill] sm:$0xff] }
 0x3bb   : > { %v9154_v56 = vsel %vm7045_vm11, 4294967295, %v9153_v56  ;;  %v2911_v4 = vadd.f32 %v6801_v52, %v2747_v2  ;;  %4731 = vst.msk [vmem:[%s6583_s6 + $0x160] sm:$0xff] %vm9123_vm13, %v3099_v36  ;;  %v3069_v18 = vadd.f32 %v6897_v16, %v3037_v9  ;;  %v2588_v12 = vsel %vm7045_vm11, %v9156_v45, 0.0 }
 0x3bc   : > { %9155 = vst [vmem:[#allocation96_spill] sm:$0xff] %v9154_v56  ;;  %v2910_v50 = vadd.f32 %v2878_v11, %v2746_v53  ;;  %4730 = vst.msk [vmem:[%s6583_s6 + $0x158] sm:$0xff] %vm9157_vm9, %v3098_v44  ;;  %v3068_v39 = vadd.f32 %v6897_v16, %v3036_v10  ;;  %v2960_v58 = vpop.permute.xlu1 %2959  ;;  %v2749_v63 = vadd.f32 %v6549_v48, %v9158_v5  ;;  %v2880_v52 = vsel %vm7045_vm11, %v6811_v26, 0.0  ;;  %v9168_v53 = vld [vmem:[#allocation126_spill] sm:$0xff] }
 0x3bd   : > { %v3101_v30 = vmax.f32 %v3069_v18, 0.0  ;;  %v3039_v22 = vadd.f32 %v2960_v58, %v2911_v4  ;;  %v2958_v31 = vpop.permute.xlu0 %2957  ;;  %vm7065_vm13 = vcmp.lt.s32.totalorder %v767_v42, 15  ;;  %v9159_v25 = vmov 0  ;;  %vm9163_vm11 = vmmov %vm9157_vm9  ;;  %v9170_v4 = vld [vmem:[#allocation132_spill] sm:$0xff] }
 0x3be   : > { %v9160_v25 = vsel %vm7065_vm13, 4294967295, %v9159_v25  ;;  %v2748_v41 = vadd.f32 %v6543_v13, %v2588_v12  ;;  %v3100_v37 = vmax.f32 %v3068_v39, 0.0  ;;  %v3038_v57 = vadd.f32 %v2958_v31, %v2910_v50 }
 0x3bf   : > { %9161 = vst [vmem:[#allocation94_spill] sm:$0xff] %v9160_v25  ;;  %v781_v61 = vand.u32 15, %v619_v15  ;;  %v621_v43 = vadd.s32 184, %v9089_v40  ;;  %v2913_v48 = vadd.f32 %v6809_v62, %v2749_v63  ;;  %4733 = vst.msk [vmem:[%s6583_s6 + $0x170] sm:$0xff] %vm9157_vm9, %v3101_v30  ;;  %v3071_v26 = vadd.f32 %v6897_v16, %v3039_v22  ;;  %v9174_v22 = vld [vmem:[#allocation134_spill] sm:$0xff] }
 0x3c0   : > { %v2590_v51 = vsel %vm7065_vm13, %v9162_v21, 0.0  ;;  %v2912_v14 = vadd.f32 %v2880_v52, %v2748_v41  ;;  %4732 = vst.msk [vmem:[%s6583_s6 + $0x168] sm:$0xff] %vm9163_vm11, %v3100_v37  ;;  %v3070_v13 = vadd.f32 %v6897_v16, %v3038_v57  ;;  %v2964_v27 = vpop.permute.xlu1 %2963  ;;  %v2751_v59 = vadd.f32 %v6557_v20, %v9164_v29  ;;  %v9176_v57 = vld [vmem:[#allocation144_spill] sm:$0xff] }
 0x3c1   : > { %v2882_v62 = vsel %vm7065_vm13, %v6819_v55, 0.0  ;;  %v3103_v1 = vmax.f32 %v3071_v26, 0.0  ;;  %v3041_v33 = vadd.f32 %v2964_v27, %v2913_v48  ;;  %v2962_v54 = vpop.permute.xlu0 %2961  ;;  %v623_v2 = vadd.s32 200, %v9089_v40  ;;  %vm9169_vm13 = vmmov %vm9157_vm9 }
 0x3c2   : > { %v2750_v11 = vadd.f32 %v6551_v8, %v2590_v51  ;;  %v3102_v36 = vmax.f32 %v3070_v13, 0.0  ;;  %v3040_v9 = vadd.f32 %v2962_v54, %v2912_v14  ;;  %vm7088_vm11 = vcmp.lt.s32.totalorder %v781_v61, 15  ;;  %v9181_v14 = vld [vmem:[#allocation185_spill] sm:$0xff]  ;;  %v9183_v54 = vld [vmem:[#allocation146_spill] sm:$0xff] }
 0x3c3   : > { %v9165_v60 = vmov 0  ;;  %v795_v42 = vand.u32 15, %v621_v43  ;;  %v2915_v20 = vadd.f32 %v6817_v38, %v2751_v59  ;;  %4735 = vst.msk [vmem:[%s6583_s6 + $0x180] sm:$0xff] %vm9157_vm9, %v3103_v1  ;;  %v3073_v55 = vadd.f32 %v6897_v16, %v3041_v33  ;;  %v9177_v43 = vld [vmem:[#allocation191_spill] sm:$0xff] }
 0x3c4   : > { %v9166_v60 = vsel %vm7088_vm11, 4294967295, %v9165_v60  ;;  %v2592_v44 = vsel %vm7088_vm11, %v9168_v53, 0.0  ;;  %v2914_v10 = vadd.f32 %v2882_v62, %v2750_v11  ;;  %4734 = vst.msk [vmem:[%s6583_s6 + $0x178] sm:$0xff] %vm9169_vm13, %v3102_v36  ;;  %v3072_v8 = vadd.f32 %v6897_v16, %v3040_v9  ;;  %v2968_v15 = vpop.permute.xlu1 %2967  ;;  %v9187_v53 = vld [vmem:[#allocation193_spill] sm:$0xff] }
 0x3c5   : > { %9167 = vst [vmem:[#allocation157_spill] sm:$0xff] %v9166_v60  ;;  %v2753_v18 = vadd.f32 %v6565_v23, %v9170_v4  ;;  %v2884_v38 = vsel %vm7088_vm11, %v6827_v6, 0.0  ;;  %v3105_v45 = vmax.f32 %v3073_v55, 0.0  ;;  %v3043_v12 = vadd.f32 %v2968_v15, %v2915_v20  ;;  %v2966_v50 = vpop.permute.xlu0 %2965  ;;  %vm9175_vm11 = vmmov %vm9157_vm9  ;;  %v9186_v20 = vld [vmem:[#allocation30_spill] sm:$0xff] }
 0x3c6   : > { %v809_v39 = vand.u32 15, %v623_v2  ;;  %v2752_v58 = vadd.f32 %v6559_v46, %v2592_v44  ;;  %v3104_v5 = vmax.f32 %v3072_v8, 0.0  ;;  %v3042_v63 = vadd.f32 %v2966_v50, %v2914_v10  ;;  %v9188_v4 = vld [vmem:[#allocation18_spill] sm:$0xff] }
 0x3c7   : > { %vm7108_vm13 = vcmp.lt.s32.totalorder %v795_v42, 15  ;;  %v9171_v52 = vmov 0  ;;  %v625_v30 = vadd.s32 216, %v9089_v40  ;;  %v2917_v23 = vadd.f32 %v6825_v34, %v2753_v18  ;;  %4737 = vst.msk [vmem:[%s6583_s6 + $0x190] sm:$0xff] %vm9157_vm9, %v3105_v45  ;;  %v9185_v42 = vld [vmem:[#allocation156_spill] sm:$0xff] }
 0x3c8   : > { %v9172_v52 = vsel %vm7108_vm13, 4294967295, %v9171_v52  ;;  %v3075_v6 = vadd.f32 %v6897_v16, %v3043_v12  ;;  %v2594_v31 = vsel %vm7108_vm13, %v9174_v22, 0.0  ;;  %v2916_v41 = vadd.f32 %v2884_v38, %v2752_v58  ;;  %4736 = vst.msk [vmem:[%s6583_s6 + $0x188] sm:$0xff] %vm9175_vm11, %v3104_v5  ;;  %v2972_v37 = vpop.permute.xlu1 %2971 }
 0x3c9   : > { %9173 = vst [vmem:[#allocation163_spill] sm:$0xff] %v9172_v52  ;;  %v3074_v46 = vadd.f32 %v6897_v16, %v3042_v63  ;;  %v2755_v61 = vadd.f32 %v6574_v3, %v9176_v57  ;;  %v2886_v34 = vsel %vm7108_vm13, %v9177_v43, 0.0  ;;  %v3045_v26 = vadd.f32 %v2972_v37, %v2917_v23  ;;  %v2970_v21 = vpop.permute.xlu0 %2969  ;;  %v9182_v3 = vld [vmem:[#allocation190_spill] sm:$0xff]  ;;  %vm9184_vm13 = vmmov %vm9175_vm11 }
 0x3ca   : > { %v3107_v48 = vmax.f32 %v3075_v6, 0.0  ;;  %vm7128_vm9 = vcmp.lt.s32.totalorder %v809_v39, 15  ;;  %v9178_v51 = vmov 0  ;;  %v2754_v13 = vadd.f32 %v9181_v14, %v2594_v31  ;;  %v9192_v39 = vld [vmem:[#allocation192_spill] sm:$0xff]  ;;  %v9193_v63 = vld [vmem:[#allocation158_spill] sm:$0xff] }
 0x3cb   : > { %v9179_v51 = vsel %vm7128_vm9, 4294967295, %v9178_v51  ;;  %v3106_v27 = vmax.f32 %v3074_v46, 0.0  ;;  %v3044_v29 = vadd.f32 %v2970_v21, %v2916_v41  ;;  %v823_v59 = vand.u32 15, %v625_v30  ;;  %v9195_v41 = vld [vmem:[#allocation165_spill] sm:$0xff]  ;;  %v9196_v46 = vld [vmem:[#allocation8_spill] sm:$0xff]  ;;  %v9197_v57 = vld [vmem:[#allocation194_spill] sm:$0xff] }
 0x3cc   : > { %9180 = vst [vmem:[#allocation168_spill] sm:$0xff] %v9179_v51  ;;  %v627_v62 = vadd.s32 232, %v9089_v40  ;;  %v2919_v1 = vadd.f32 %v9182_v3, %v2755_v61  ;;  %4739 = vst.msk [vmem:[%s6583_s6 + $0x1a0] sm:$0xff] %vm9175_vm11, %v3107_v48  ;;  %v3077_v33 = vadd.f32 %v6897_v16, %v3045_v26  ;;  %v2596_v2 = vsel %vm7128_vm9, %v9183_v54, 0.0  ;;  %v2976_v9 = vpop.permute.xlu1 %2975  ;;  %v9198_v26 = vld [vmem:[#allocation4_spill] sm:$0xff] }
 0x3cd   : > { %v2918_v11 = vadd.f32 %v2886_v34, %v2754_v13  ;;  %4738 = vst.msk [vmem:[%s6583_s6 + $0x198] sm:$0xff] %vm9184_vm13, %v3106_v27  ;;  %v3076_v36 = vadd.f32 %v6897_v16, %v3044_v29  ;;  %v2757_v55 = vadd.f32 %v9186_v20, %v9185_v42  ;;  %v2888_v44 = vsel %vm7128_vm9, %v9187_v53, 0.0  ;;  %v2974_v15 = vpop.permute.xlu0 %2973  ;;  %vm9194_vm9 = vmmov %vm9184_vm13  ;;  %v9202_v27 = vld [vmem:[#allocation136_spill] sm:$0xff]  ;;  %v9207_v42 = vld [vmem:[#allocation123_spill] sm:$0xff] }
 0x3ce   : > { %v3109_v10 = vmax.f32 %v3077_v33, 0.0  ;;  %v3047_v8 = vadd.f32 %v2976_v9, %v2919_v1  ;;  %v2756_v18 = vadd.f32 %v9188_v4, %v2596_v2  ;;  %vm7150_vm11 = vcmp.lt.s32.totalorder %v823_v59, 15 }
 0x3cf   : > { %v3108_v38 = vmax.f32 %v3076_v36, 0.0  ;;  %v3046_v45 = vadd.f32 %v2974_v15, %v2918_v11  ;;  %v9189_v12 = vmov 0  ;;  %v837_v50 = vand.u32 15, %v627_v62  ;;  %v9203_v62 = vld [vmem:[#allocation107_spill] sm:$0xff]  ;;  %v9205_v11 = vld [vmem:[#allocation108_spill] sm:$0xff] }
 0x3d0   : > { %v9190_v12 = vsel %vm7150_vm11, 4294967295, %v9189_v12  ;;  %v2921_v58 = vadd.f32 %v9192_v39, %v2757_v55  ;;  %4741 = vst.msk [vmem:[%s6583_s6 + $0x1b0] sm:$0xff] %vm9184_vm13, %v3109_v10  ;;  %v3079_v5 = vadd.f32 %v6897_v16, %v3047_v8  ;;  %v2598_v30 = vsel %vm7150_vm11, %v9193_v63, 0.0  ;;  %v2980_v31 = vpop.permute.xlu1 %2979  ;;  %v9206_v36 = vld [vmem:[#allocation187_spill] sm:$0xff]  ;;  %v9208_v10 = vld [vmem:[#allocation188_spill] sm:$0xff] }
 0x3d1   : > { %9191 = vst [vmem:[#allocation166_spill] sm:$0xff] %v9190_v12  ;;  %v629_v23 = vadd.s32 248, %v9089_v40  ;;  %v2920_v6 = vadd.f32 %v2888_v44, %v2756_v18  ;;  %4740 = vst.msk [vmem:[%s6583_s6 + $0x1a8] sm:$0xff] %vm9194_vm9, %v3108_v38  ;;  %v3078_v22 = vadd.f32 %v6897_v16, %v3046_v45  ;;  %v2759_v37 = vadd.f32 %v9196_v46, %v9195_v41  ;;  %v2978_v48 = vpop.permute.xlu0 %2977  ;;  %v9209_v18 = vld [vmem:[#allocation195_spill] sm:$0xff]  ;;  %v9215_v63 = vld [vmem:[#allocation104_spill] sm:$0xff] }
 0x3d2   : > { %v2890_v61 = vsel %vm7150_vm11, %v9197_v57, 0.0  ;;  %v3111_v43 = vmax.f32 %v3079_v5, 0.0  ;;  %v3049_v34 = vadd.f32 %v2980_v31, %v2921_v58  ;;  %v2758_v21 = vadd.f32 %v9198_v26, %v2598_v30  ;;  %vm9204_vm11 = vmmov %vm9194_vm9  ;;  %v9217_v46 = vld [vmem:[#allocation189_spill] sm:$0xff] }
 0x3d3   : > { %v3110_v40 = vmax.f32 %v3078_v22, 0.0  ;;  %v3048_v14 = vadd.f32 %v2978_v48, %v2920_v6  ;;  %vm7171_vm13 = vcmp.lt.s32.totalorder %v837_v50, 15  ;;  %v9199_v13 = vmov 0 }
 0x3d4   : > { %v9200_v13 = vsel %vm7171_vm13, 4294967295, %v9199_v13  ;;  %v2923_v29 = vadd.f32 %v9202_v27, %v2759_v37  ;;  %4743 = vst.msk [vmem:[%s6583_s6 + $0x1c0] sm:$0xff] %vm9194_vm9, %v3111_v43  ;;  %v3081_v59 = vadd.f32 %v6897_v16, %v3049_v34  ;;  %v2600_v3 = vsel %vm7171_vm13, %v9203_v62, 0.0  ;;  %v2984_v2 = vpop.permute.xlu1 %2983 }
 0x3d5   : > { %9201 = vst [vmem:[#allocation174_spill] sm:$0xff] %v9200_v13  ;;  %v851_v1 = vand.u32 15, %v629_v23  ;;  %v2922_v33 = vadd.f32 %v2890_v61, %v2758_v21  ;;  %4742 = vst.msk [vmem:[%s6583_s6 + $0x1b8] sm:$0xff] %vm9204_vm11, %v3110_v40  ;;  %v3080_v54 = vadd.f32 %v6897_v16, %v3048_v14  ;;  %v2761_v9 = vadd.f32 %v9206_v36, %v9205_v11  ;;  %v2982_v44 = vpop.permute.xlu0 %2981  ;;  %v9216_v23 = vld [vmem:[#allocation125_spill] sm:$0xff] }
 0x3d6   : > { %v2892_v20 = vsel %vm7171_vm13, %v9207_v42, 0.0  ;;  %v3113_v55 = vmax.f32 %v3081_v59, 0.0  ;;  %v3051_v53 = vadd.f32 %v2984_v2, %v2923_v29  ;;  %v2760_v8 = vadd.f32 %v9208_v10, %v2600_v3  ;;  %vm9210_vm11 = vmmov %vm9194_vm9 }
 0x3d7   : > { %v3112_v15 = vmax.f32 %v3080_v54, 0.0  ;;  %v3050_v4 = vadd.f32 %v2982_v44, %v2922_v33  ;;  %v2925_v38 = vadd.f32 %v9209_v18, %v2761_v9  ;;  %vm7195_vm9 = vcmp.lt.s32.totalorder %v851_v1, 15  ;;  %vm9214_vm13 = vmmov %vm9210_vm11 }
 0x3d8   : > { %4745 = vst.msk [vmem:[%s6583_s6 + $0x1d0] sm:$0xff] %vm9210_vm11, %v3113_v55  ;;  %v3083_v45 = vadd.f32 %v6897_v16, %v3051_v53  ;;  %v9211_v50 = vmov 0  ;;  %v2924_v39 = vadd.f32 %v2892_v20, %v2760_v8  ;;  %v2988_v5 = vpop.permute.xlu1 %2987  ;;  %v2602_v30 = vsel %vm7195_vm9, %v9215_v63, 0.0  ;;  %vm9220_vm15 = vmmov %vm9210_vm11 }
 0x3d9   : > { %v9212_v50 = vsel %vm7195_vm9, 4294967295, %v9211_v50  ;;  %4744 = vst.msk [vmem:[%s6583_s6 + $0x1c8] sm:$0xff] %vm9214_vm13, %v3112_v15  ;;  %v3082_v58 = vadd.f32 %v6897_v16, %v3050_v4  ;;  %v2894_v6 = vsel %vm7195_vm9, %v9216_v23, 0.0  ;;  %v3053_v31 = vadd.f32 %v2988_v5, %v2925_v38  ;;  %v2986_v41 = vpop.permute.xlu0 %2985  ;;  %vm9218_vm13 = vmmov %vm9210_vm11 }
 0x3da   : > { %9213 = vst [vmem:[#allocation172_spill] sm:$0xff] %v9212_v50  ;;  %v3115_v22 = vmax.f32 %v3083_v45, 0.0  ;;  %v2762_v37 = vadd.f32 %v9217_v46, %v2602_v30  ;;  %v3052_v61 = vadd.f32 %v2986_v41, %v2924_v39  ;;  %v9284_v50 = vld [vmem:[#allocation31_spill] sm:$0xff] }
 0x3db   : > { %v3114_v57 = vmax.f32 %v3082_v58, 0.0  ;;  %v3085_v43 = vadd.f32 %v6897_v16, %v3053_v31 }
 0x3dc   : > { %4747 = vst.msk [vmem:[%s6583_s6 + $0x1e0] sm:$0xff] %vm9218_vm13, %v3115_v22  ;;  %v2926_v34 = vadd.f32 %v2894_v6, %v2762_v37  ;;  %v3084_v48 = vadd.f32 %v6897_v16, %v3052_v61  ;;  %v3160_v26 = vpop.permute.xlu1 %3159  ;;  %vm9221_vm13 = vmmov %vm9210_vm11 }
 0x3dd   : > { %4746 = vst.msk [vmem:[%s6583_s6 + $0x1d8] sm:$0xff] %vm9210_vm11, %v3114_v57  ;;  %v3117_v21 = vmax.f32 %v3085_v43, 0.0  ;;  %v3255_v14 = vsel %vm5846_vm4, %v3160_v26, 0.0  ;;  %v2990_v27 = vpop.permute.xlu0 %2989 }
 0x3de   : > { %v3116_v29 = vmax.f32 %v3084_v48, 0.0  ;;  %v3054_v59 = vadd.f32 %v2990_v27, %v2926_v34  ;;  %3319 = vrot.lane.b32.xlu1 %v3255_v14, %s4959_s25 }
 0x3df   : > { %4749 = vst.msk [vmem:[%s6583_s6 + $0x1f0] sm:$0xff] %vm9220_vm15, %v3117_v21 }
 0x3e0   : > { %4748 = vst.msk [vmem:[%s6583_s6 + $0x1e8] sm:$0xff] %vm9221_vm13, %v3116_v29  ;;  %v3086_v62 = vadd.f32 %v6897_v16, %v3054_v59  ;;  %v3164_v3 = vpop.permute.xlu1 %3163 }
 0x3e1   : > { %v3257_v33 = vsel %vm5896_vm6, %v3164_v3, 0.0  ;;  %v3162_v54 = vpop.permute.xlu0 %3161 }
 0x3e2   : > { %v3118_v2 = vmax.f32 %v3086_v62, 0.0  ;;  %3323 = vrot.lane.b32.xlu1 %v3257_v33, %s4959_s25  ;;  %3321 = vrot.lane.b32.xlu0 %v3162_v54, %s4959_s25  ;;  %v9233_v33 = vld [vmem:[#allocation155_spill] sm:$0xff] }
 0x3e3   : > { %vm9234_vm15 = vnez %v9233_v33 }
 0x3e4   : > { %4750 = vst.msk [vmem:[%s6583_s6 + $0x1f8] sm:$0xff] %vm9210_vm11, %v3118_v2  ;;  %v3168_v11 = vpop.permute.xlu1 %3167 }
 0x3e5   : > { %v3259_v9 = vsel %vm5946_vm8, %v3168_v11, 0.0  ;;  %v3166_v42 = vpop.permute.xlu0 %3165 }
 0x3e6   : > { %3327 = vrot.lane.b32.xlu1 %v3259_v9, %s4959_s25  ;;  %3325 = vrot.lane.b32.xlu0 %v3166_v42, %s4959_s25  ;;  %v9235_v9 = vld [vmem:[#allocation162_spill] sm:$0xff] }
 0x3e7   : > { %vm9236_vm13 = vnez %v9235_v9 }
 0x3e8   : > { %v3172_v16 = vpop.permute.xlu1 %3171 }
 0x3e9   : > { %v3261_v55 = vsel %vm5996_vm10, %v3172_v16, 0.0  ;;  %v3170_v53 = vpop.permute.xlu0 %3169 }
 0x3ea   : > { %3331 = vrot.lane.b32.xlu1 %v3261_v55, %s4959_s25  ;;  %3329 = vrot.lane.b32.xlu0 %v3170_v53, %s4959_s25  ;;  %v9237_v53 = vld [vmem:[#allocation167_spill] sm:$0xff] }
 0x3eb   : > { %vm9238_vm11 = vnez %v9237_v53  ;;  %v7489_v53 = vld [vmem:[%s8339_s2] ss:$0 sm:$0xff] }
 0x3ec   : > { %v3176_v44 = vpop.permute.xlu1 %3175  ;;  %9278 = vst [vmem:[#allocation117_spill] sm:$0xff] %v7489_v53 }
 0x3ed   : > { %v3263_v8 = vsel %vm6047_vm12, %v3176_v44, 0.0  ;;  %v3174_v15 = vpop.permute.xlu0 %3173 }
 0x3ee   : > { %3335 = vrot.lane.b32.xlu1 %v3263_v8, %s4959_s25  ;;  %3333 = vrot.lane.b32.xlu0 %v3174_v15, %s4959_s25 }
 0x3f0   : > { %v3180_v4 = vpop.permute.xlu1 %3179 }
 0x3f1   : > { %v3265_v38 = vsel %vm6094_vm14, %v3180_v4, 0.0  ;;  %v3178_v45 = vpop.permute.xlu0 %3177  ;;  %v9239_v4 = vld [vmem:[#allocation173_spill] sm:$0xff] }
 0x3f2   : > { %3339 = vrot.lane.b32.xlu1 %v3265_v38, %s4959_s25  ;;  %3337 = vrot.lane.b32.xlu0 %v3178_v45, %s4959_s25  ;;  %vm9240_vm9 = vnez %v9239_v4 }
 0x3f4   : > { %v3184_v39 = vpop.permute.xlu1 %3183 }
 0x3f5   : > { %v3267_v5 = vsel %vm6141_vm1, %v3184_v39, 0.0  ;;  %v3182_v63 = vpop.permute.xlu0 %3181 }
 0x3f6   : > { %3343 = vrot.lane.b32.xlu1 %v3267_v5, %s4959_s25  ;;  %3341 = vrot.lane.b32.xlu0 %v3182_v63, %s4959_s25  ;;  %v9241_v5 = vld [vmem:[#allocation74_spill] sm:$0xff]  ;;  %v9242_v63 = vld [vmem:[#allocation21_spill] sm:$0xff] }
 0x3f8   : > { %v3188_v30 = vpop.permute.xlu1 %3187 }
 0x3f9   : > { %v3269_v6 = vsel %vm6161_vm0, %v3188_v30, 0.0  ;;  %v3186_v22 = vpop.permute.xlu0 %3185  ;;  %v9243_v30 = vld [vmem:[#allocation68_spill] sm:$0xff] }
 0x3fa   : > { %3347 = vrot.lane.b32.xlu1 %v3269_v6, %s4959_s25  ;;  %3345 = vrot.lane.b32.xlu0 %v3186_v22, %s4959_s25  ;;  %v9244_v6 = vld [vmem:[#allocation34_spill] sm:$0xff] }
 0x3fb   : > { %v9245_v22 = vld [vmem:[#allocation22_spill] sm:$0xff] }
 0x3fc   : > { %v3192_v31 = vpop.permute.xlu1 %3191 }
 0x3fd   : > { %v3271_v46 = vsel %vm6169_vm2, %v3192_v31, 0.0  ;;  %v3190_v37 = vpop.permute.xlu0 %3189  ;;  %v9246_v31 = vld [vmem:[#allocation45_spill] sm:$0xff] }
 0x3fe   : > { %3351 = vrot.lane.b32.xlu1 %v3271_v46, %s4959_s25  ;;  %3349 = vrot.lane.b32.xlu0 %v3190_v37, %s4959_s25  ;;  %v9247_v46 = vld [vmem:[#allocation35_spill] sm:$0xff]  ;;  %v9248_v37 = vld [vmem:[#allocation57_spill] sm:$0xff] }
 0x400   : > { %v3196_v57 = vpop.permute.xlu1 %3195 }
 0x401   : > { %v3273_v43 = vsel %vm5829_vm3, %v3196_v57, 0.0  ;;  %v3194_v34 = vpop.permute.xlu0 %3193  ;;  %v9249_v57 = vld [vmem:[#allocation47_spill] sm:$0xff] }
 0x402   : > { %3355 = vrot.lane.b32.xlu1 %v3273_v43, %s4959_s25  ;;  %3353 = vrot.lane.b32.xlu0 %v3194_v34, %s4959_s25  ;;  %v9250_v43 = vld [vmem:[#allocation69_spill] sm:$0xff]  ;;  %v9251_v34 = vld [vmem:[#allocation59_spill] sm:$0xff] }
 0x404   : > { %v3200_v48 = vpop.permute.xlu1 %3199 }
 0x405   : > { %v3275_v21 = vsel %vm5860_vm5, %v3200_v48, 0.0  ;;  %v3198_v14 = vpop.permute.xlu0 %3197  ;;  %v9252_v48 = vld [vmem:[#allocation80_spill] sm:$0xff] }
 0x406   : > { %3359 = vrot.lane.b32.xlu1 %v3275_v21, %s4959_s25  ;;  %3357 = vrot.lane.b32.xlu0 %v3198_v14, %s4959_s25  ;;  %v9253_v21 = vld [vmem:[#allocation71_spill] sm:$0xff]  ;;  %v9254_v14 = vld [vmem:[#allocation89_spill] sm:$0xff] }
 0x408   : > { %v3204_v27 = vpop.permute.xlu1 %3203 }
 0x409   : > { %v3277_v59 = vsel %vm5910_vm7, %v3204_v27, 0.0  ;;  %v3202_v62 = vpop.permute.xlu0 %3201  ;;  %v9255_v27 = vld [vmem:[#allocation88_spill] sm:$0xff] }
 0x40a   : > { %3363 = vrot.lane.b32.xlu1 %v3277_v59, %s4959_s25  ;;  %3361 = vrot.lane.b32.xlu0 %v3202_v62, %s4959_s25  ;;  %v9256_v59 = vld [vmem:[#allocation100_spill] sm:$0xff]  ;;  %v9257_v62 = vld [vmem:[#allocation98_spill] sm:$0xff] }
 0x40c   : > { %v3208_v3 = vpop.permute.xlu1 %3207 }
 0x40d   : > { %v3279_v54 = vsel %vm9234_vm15, %v3208_v3, 0.0  ;;  %v3206_v2 = vpop.permute.xlu0 %3205  ;;  %v9258_v3 = vld [vmem:[#allocation86_spill] sm:$0xff] }
 0x40e   : > { %3367 = vrot.lane.b32.xlu1 %v3279_v54, %s4959_s25  ;;  %3365 = vrot.lane.b32.xlu0 %v3206_v2, %s4959_s25  ;;  %v9259_v54 = vld [vmem:[#allocation102_spill] sm:$0xff]  ;;  %v9260_v2 = vld [vmem:[#allocation12_spill] sm:$0xff] }
 0x410   : > { %v3212_v11 = vpop.permute.xlu1 %3211 }
 0x411   : > { %v3281_v42 = vsel %vm9236_vm13, %v3212_v11, 0.0  ;;  %v3210_v16 = vpop.permute.xlu0 %3209  ;;  %v9261_v11 = vld [vmem:[#allocation6_spill] sm:$0xff] }
 0x412   : > { %3371 = vrot.lane.b32.xlu1 %v3281_v42, %s4959_s25  ;;  %3369 = vrot.lane.b32.xlu0 %v3210_v16, %s4959_s25  ;;  %v9262_v42 = vld [vmem:[#allocation23_spill] sm:$0xff]  ;;  %v9263_v16 = vld [vmem:[#allocation13_spill] sm:$0xff] }
 0x414   : > { %v3216_v55 = vpop.permute.xlu1 %3215 }
 0x415   : > { %v3283_v44 = vsel %vm9238_vm11, %v3216_v55, 0.0  ;;  %v3214_v8 = vpop.permute.xlu0 %3213  ;;  %v9264_v55 = vld [vmem:[#allocation33_spill] sm:$0xff] }
 0x416   : > { %3375 = vrot.lane.b32.xlu1 %v3283_v44, %s4959_s25  ;;  %3373 = vrot.lane.b32.xlu0 %v3214_v8, %s4959_s25  ;;  %v9265_v44 = vld [vmem:[#allocation24_spill] sm:$0xff] }
 0x418   : > { %v3220_v15 = vpop.permute.xlu1 %3219 }
 0x419   : > { %v3285_v38 = vsel %vm9240_vm9, %v3220_v15, 0.0  ;;  %v3218_v45 = vpop.permute.xlu0 %3217  ;;  %v9266_v15 = vld [vmem:[#allocation46_spill] sm:$0xff] }
 0x41a   : > { %3379 = vrot.lane.b32.xlu1 %v3285_v38, %s4959_s25  ;;  %3377 = vrot.lane.b32.xlu0 %v3218_v45, %s4959_s25  ;;  %v9267_v38 = vld [vmem:[#allocation39_spill] sm:$0xff] }
 0x41d   : > { %v3222_v39 = vpop.permute.xlu0 %3221 }
 0x41e   : > { %3447 = vrot.lane.b32.xlu1 %v9241_v5, %s4957_s23  ;;  %3381 = vrot.lane.b32.xlu0 %v3222_v39, %s4959_s25  ;;  %v9291_v5 = vld [vmem:[#allocation118_spill] sm:$0xff] }
 0x422   : > { %3485 = vrot.lane.b32.xlu1 %v9242_v63, %s4956_s18  ;;  %3449 = vrot.lane.b32.xlu0 %v9243_v30, %s4957_s23  ;;  %v9268_v63 = vld [vmem:[#allocation58_spill] sm:$0xff] }
 0x426   : > { %3489 = vrot.lane.b32.xlu1 %v9244_v6, %s4956_s18  ;;  %3487 = vrot.lane.b32.xlu0 %v9245_v22, %s4956_s18  ;;  %v9269_v6 = vld [vmem:[#allocation51_spill] sm:$0xff] }
 0x42a   : > { %3493 = vrot.lane.b32.xlu1 %v9246_v31, %s4956_s18  ;;  %3491 = vrot.lane.b32.xlu0 %v9247_v46, %s4956_s18  ;;  %v9270_v46 = vld [vmem:[#allocation70_spill] sm:$0xff] }
 0x42e   : > { %3497 = vrot.lane.b32.xlu1 %v9248_v37, %s4956_s18  ;;  %3495 = vrot.lane.b32.xlu0 %v9249_v57, %s4956_s18  ;;  %v9271_v37 = vld [vmem:[#allocation63_spill] sm:$0xff] }
 0x432   : > { %3501 = vrot.lane.b32.xlu1 %v9250_v43, %s4956_s18  ;;  %3499 = vrot.lane.b32.xlu0 %v9251_v34, %s4956_s18 }
 0x436   : > { %3505 = vrot.lane.b32.xlu1 %v9252_v48, %s4956_s18  ;;  %3503 = vrot.lane.b32.xlu0 %v9253_v21, %s4956_s18 }
 0x43a   : > { %3509 = vrot.lane.b32.xlu1 %v9254_v14, %s4956_s18  ;;  %3507 = vrot.lane.b32.xlu0 %v9255_v27, %s4956_s18 }
 0x43e   : > { %3513 = vrot.lane.b32.xlu1 %v9256_v59, %s4956_s18  ;;  %3511 = vrot.lane.b32.xlu0 %v9257_v62, %s4956_s18 }
 0x442   : > { %3517 = vrot.lane.b32.xlu1 %v9258_v3, %s4956_s18  ;;  %3515 = vrot.lane.b32.xlu0 %v9259_v54, %s4956_s18 }
 0x446   : > { %3521 = vrot.lane.b32.xlu1 %v9260_v2, %s4956_s18  ;;  %3519 = vrot.lane.b32.xlu0 %v9261_v11, %s4956_s18 }
 0x44a   : > { %3525 = vrot.lane.b32.xlu1 %v9262_v42, %s4956_s18  ;;  %3523 = vrot.lane.b32.xlu0 %v9263_v16, %s4956_s18 }
 0x44e   : > { %3529 = vrot.lane.b32.xlu1 %v9264_v55, %s4956_s18  ;;  %3527 = vrot.lane.b32.xlu0 %v9265_v44, %s4956_s18 }
 0x450   : > { %v7336_v8 = vpop.permute.xlu1 %3319 }
 0x452   : > { %3533 = vrot.lane.b32.xlu1 %v9266_v15, %s4956_s18  ;;  %3531 = vrot.lane.b32.xlu0 %v9267_v38, %s4956_s18 }
 0x454   : > { %v7342_v45 = vpop.permute.xlu1 %3323  ;;  %v7344_v39 = vpop.permute.xlu0 %3321 }
 0x455   : > { %v3417_v32 = vadd.f32 %v7342_v45, %v9283_v0  ;;  %v9290_v45 = vld [vmem:[#allocation121_spill] sm:$0xff] }
 0x456   : > { %3537 = vrot.lane.b32.xlu1 %v9268_v63, %s4956_s18  ;;  %3535 = vrot.lane.b32.xlu0 %v9269_v6, %s4956_s18 }
 0x457   : > { %v3455_v0 = vadd.f32 %v3417_v32, %v9290_v45 }
 0x458   : > { %v7350_v22 = vpop.permute.xlu1 %3327  ;;  %v7352_v31 = vpop.permute.xlu0 %3325 }
 0x45a   : > { %3541 = vrot.lane.b32.xlu1 %v9270_v46, %s4956_s18  ;;  %3539 = vrot.lane.b32.xlu0 %v9271_v37, %s4956_s18 }
 0x45c   : > { %v7358_v57 = vpop.permute.xlu1 %3331  ;;  %v7360_v43 = vpop.permute.xlu0 %3329 }
 0x45e   : > { %3545 = vrot.lane.b32.xlu1 %v9112_v47, %s4956_s18  ;;  %3543 = vrot.lane.b32.xlu0 %v9116_v28, %s4956_s18 }
 0x460   : > { %v7366_v34 = vpop.permute.xlu1 %3335  ;;  %v7368_v48 = vpop.permute.xlu0 %3333 }
 0x462   : > { %3547 = vrot.lane.b32.xlu0 %v9124_v35, %s4956_s18 }
 0x464   : > { %v7372_v21 = vpop.permute.xlu1 %3339  ;;  %v7374_v14 = vpop.permute.xlu0 %3337 }
 0x468   : > { %v7376_v27 = vpop.permute.xlu1 %3343  ;;  %v7378_v59 = vpop.permute.xlu0 %3341 }
 0x46c   : > { %v7380_v62 = vpop.permute.xlu1 %3347  ;;  %v7382_v47 = vpop.permute.xlu0 %3345 }
 0x470   : > { %v7384_v28 = vpop.permute.xlu1 %3351  ;;  %v7386_v3 = vpop.permute.xlu0 %3349 }
 0x474   : > { %v7388_v54 = vpop.permute.xlu1 %3355  ;;  %v7390_v2 = vpop.permute.xlu0 %3353 }
 0x478   : > { %v7392_v35 = vpop.permute.xlu1 %3359  ;;  %v7394_v11 = vpop.permute.xlu0 %3357 }
 0x47c   : > { %v7396_v42 = vpop.permute.xlu1 %3363  ;;  %v7398_v16 = vpop.permute.xlu0 %3361 }
 0x480   : > { %v7400_v55 = vpop.permute.xlu1 %3367  ;;  %v7402_v44 = vpop.permute.xlu0 %3365 }
 0x484   : > { %v7404_v15 = vpop.permute.xlu1 %3371  ;;  %v7406_v38 = vpop.permute.xlu0 %3369 }
 0x488   : > { %v7408_v63 = vpop.permute.xlu1 %3375  ;;  %v7410_v6 = vpop.permute.xlu0 %3373 }
 0x489   : > { %9272 = vst [vmem:[#allocation180_spill] sm:$0xff] %v7408_v63 }
 0x48c   : > { %v7412_v46 = vpop.permute.xlu1 %3379  ;;  %v7414_v37 = vpop.permute.xlu0 %3377 }
 0x48d   : > { %9273 = vst [vmem:[#allocation183_spill] sm:$0xff] %v7412_v46  ;;  %9274 = vst [vmem:[#allocation184_spill] sm:$0xff] %v7414_v37  ;;  %v9286_v46 = vld [vmem:[#allocation114_spill] sm:$0xff] }
 0x490   : > { %v7416_v13 = vpop.permute.xlu1 %3447  ;;  %v7418_v12 = vpop.permute.xlu0 %3381 }
 0x491   : > { %9275 = vst [vmem:[#allocation179_spill] sm:$0xff] %v7416_v13  ;;  %9276 = vst [vmem:[#allocation111_spill] sm:$0xff] %v7418_v12  ;;  %v3418_v13 = vadd.f32 %v9284_v50, %v7352_v31 }
 0x493   : > { %v3456_v31 = vadd.f32 %v3418_v13, %v9291_v5 }
 0x494   : > { %v3486_v51 = vpop.permute.xlu1 %3485  ;;  %v7420_v52 = vpop.permute.xlu0 %3449 }
 0x495   : > { %9277 = vst [vmem:[#allocation112_spill] sm:$0xff] %v7420_v52  ;;  %v3581_v60 = vsel %vm5846_vm4, %v3486_v51, 0.0 }
 0x496   : > { %3645 = vrot.lane.b32.xlu1 %v3581_v60, %s4959_s25 }
 0x498   : > { %v3490_v25 = vpop.permute.xlu1 %3489  ;;  %v3488_v56 = vpop.permute.xlu0 %3487 }
 0x499   : > { %v3583_v24 = vsel %vm5896_vm6, %v3490_v25, 0.0  ;;  %3647 = vrot.lane.b32.xlu0 %v3488_v56, %s4959_s25 }
 0x49a   : > { %3649 = vrot.lane.b32.xlu1 %v3583_v24, %s4959_s25 }
 0x49c   : > { %v3494_v49 = vpop.permute.xlu1 %3493  ;;  %v3492_v19 = vpop.permute.xlu0 %3491 }
 0x49d   : > { %v3585_v17 = vsel %vm5946_vm8, %v3494_v49, 0.0  ;;  %3651 = vrot.lane.b32.xlu0 %v3492_v19, %s4959_s25 }
 0x49e   : > { %3653 = vrot.lane.b32.xlu1 %v3585_v17, %s4959_s25 }
 0x4a0   : > { %v3498_v51 = vpop.permute.xlu1 %3497  ;;  %v3496_v60 = vpop.permute.xlu0 %3495 }
 0x4a1   : > { %v3587_v40 = vsel %vm5996_vm10, %v3498_v51, 0.0  ;;  %3655 = vrot.lane.b32.xlu0 %v3496_v60, %s4959_s25 }
 0x4a2   : > { %3657 = vrot.lane.b32.xlu1 %v3587_v40, %s4959_s25 }
 0x4a4   : > { %v3502_v56 = vpop.permute.xlu1 %3501  ;;  %v3500_v24 = vpop.permute.xlu0 %3499 }
 0x4a5   : > { %v3589_v25 = vsel %vm6047_vm12, %v3502_v56, 0.0  ;;  %3659 = vrot.lane.b32.xlu0 %v3500_v24, %s4959_s25 }
 0x4a6   : > { %3661 = vrot.lane.b32.xlu1 %v3589_v25, %s4959_s25 }
 0x4a8   : > { %v3506_v19 = vpop.permute.xlu1 %3505  ;;  %v3504_v17 = vpop.permute.xlu0 %3503 }
 0x4a9   : > { %v3591_v49 = vsel %vm6094_vm14, %v3506_v19, 0.0  ;;  %3663 = vrot.lane.b32.xlu0 %v3504_v17, %s4959_s25 }
 0x4aa   : > { %3665 = vrot.lane.b32.xlu1 %v3591_v49, %s4959_s25 }
 0x4ac   : > { %v3510_v1 = vpop.permute.xlu1 %3509  ;;  %v3508_v36 = vpop.permute.xlu0 %3507 }
 0x4ad   : > { %v3593_v20 = vsel %vm6141_vm1, %v3510_v1, 0.0  ;;  %3667 = vrot.lane.b32.xlu0 %v3508_v36, %s4959_s25 }
 0x4ae   : > { %3669 = vrot.lane.b32.xlu1 %v3593_v20, %s4959_s25 }
 0x4b0   : > { %v3514_v10 = vpop.permute.xlu1 %3513  ;;  %v3512_v51 = vpop.permute.xlu0 %3511 }
 0x4b1   : > { %v3595_v60 = vsel %vm6161_vm0, %v3514_v10, 0.0  ;;  %3671 = vrot.lane.b32.xlu0 %v3512_v51, %s4959_s25  ;;  %vm9358_vm0 = vcmask 64512  }
 0x4b2   : > { %3673 = vrot.lane.b32.xlu1 %v3595_v60, %s4959_s25  ;;  %vm9361_vm4 = vmmov %vm9358_vm0 }
 0x4b3   : > { %vm9363_vm6 = vmmov %vm9358_vm0 }
 0x4b4   : > { %v3518_v18 = vpop.permute.xlu1 %3517  ;;  %v3516_v40 = vpop.permute.xlu0 %3515  ;;  %vm9365_vm8 = vmmov %vm9358_vm0 }
 0x4b5   : > { %v3597_v56 = vsel %vm6169_vm2, %v3518_v18, 0.0  ;;  %3675 = vrot.lane.b32.xlu0 %v3516_v40, %s4959_s25  ;;  %vm9359_vm2 = vmmov %vm9358_vm0 }
 0x4b6   : > { %3677 = vrot.lane.b32.xlu1 %v3597_v56, %s4959_s25  ;;  %vm9368_vm10 = vmmov %vm9358_vm0 }
 0x4b7   : > { %vm9369_vm12 = vmmov %vm9358_vm0 }
 0x4b8   : > { %v3522_v58 = vpop.permute.xlu1 %3521  ;;  %v3520_v24 = vpop.permute.xlu0 %3519  ;;  %vm9372_vm14 = vmmov %vm9358_vm0 }
 0x4b9   : > { %v3599_v25 = vsel %vm5829_vm3, %v3522_v58, 0.0  ;;  %3679 = vrot.lane.b32.xlu0 %v3520_v24, %s4959_s25  ;;  %vm9360_vm3 = vmmov %vm9358_vm0 }
 0x4ba   : > { %3681 = vrot.lane.b32.xlu1 %v3599_v25, %s4959_s25  ;;  %vm9373_vm1 = vmmov %vm9358_vm0 }
 0x4bc   : > { %v3526_v23 = vpop.permute.xlu1 %3525  ;;  %v3524_v19 = vpop.permute.xlu0 %3523 }
 0x4bd   : > { %v3601_v17 = vsel %vm5860_vm5, %v3526_v23, 0.0  ;;  %3683 = vrot.lane.b32.xlu0 %v3524_v19, %s4959_s25  ;;  %vm9362_vm5 = vmmov %vm9358_vm0 }
 0x4be   : > { %3685 = vrot.lane.b32.xlu1 %v3601_v17, %s4959_s25 }
 0x4c0   : > { %v3530_v41 = vpop.permute.xlu1 %3529  ;;  %v3528_v49 = vpop.permute.xlu0 %3527 }
 0x4c1   : > { %v3603_v1 = vsel %vm5910_vm7, %v3530_v41, 0.0  ;;  %3687 = vrot.lane.b32.xlu0 %v3528_v49, %s4959_s25  ;;  %vm9364_vm7 = vmmov %vm9358_vm0 }
 0x4c2   : > { %3689 = vrot.lane.b32.xlu1 %v3603_v1, %s4959_s25 }
 0x4c4   : > { %v3534_v61 = vpop.permute.xlu1 %3533  ;;  %v3532_v36 = vpop.permute.xlu0 %3531 }
 0x4c5   : > { %v3605_v20 = vsel %vm9234_vm15, %v3534_v61, 0.0  ;;  %3691 = vrot.lane.b32.xlu0 %v3532_v36, %s4959_s25  ;;  %vm9377_vm15 = vmmov %vm9358_vm0 }
 0x4c6   : > { %3693 = vrot.lane.b32.xlu1 %v3605_v20, %s4959_s25 }
 0x4c8   : > { %v3538_v26 = vpop.permute.xlu1 %3537  ;;  %v3536_v10 = vpop.permute.xlu0 %3535 }
 0x4c9   : > { %v3607_v51 = vsel %vm9236_vm13, %v3538_v26, 0.0  ;;  %3695 = vrot.lane.b32.xlu0 %v3536_v10, %s4959_s25  ;;  %vm9380_vm13 = vmmov %vm9358_vm0 }
 0x4ca   : > { %3697 = vrot.lane.b32.xlu1 %v3607_v51, %s4959_s25 }
 0x4cc   : > { %v3542_v29 = vpop.permute.xlu1 %3541  ;;  %v3540_v60 = vpop.permute.xlu0 %3539 }
 0x4cd   : > { %v3609_v18 = vsel %vm9238_vm11, %v3542_v29, 0.0  ;;  %3699 = vrot.lane.b32.xlu0 %v3540_v60, %s4959_s25  ;;  %vm9381_vm11 = vmmov %vm9358_vm0 }
 0x4ce   : > { %3701 = vrot.lane.b32.xlu1 %v3609_v18, %s4959_s25 }
 0x4d0   : > { %v3546_v33 = vpop.permute.xlu1 %3545  ;;  %v3544_v40 = vpop.permute.xlu0 %3543 }
 0x4d1   : > { %v3611_v56 = vsel %vm9240_vm9, %v3546_v33, 0.0  ;;  %3703 = vrot.lane.b32.xlu0 %v3544_v40, %s4959_s25  ;;  %vm9376_vm9 = vmmov %vm9358_vm0 }
 0x4d2   : > { %3705 = vrot.lane.b32.xlu1 %v3611_v56, %s4959_s25  ;;  %v9281_v56 = vld [vmem:[#allocation25_spill] sm:$0xff] }
 0x4d4   : > { %v3548_v9 = vpop.permute.xlu0 %3547 }
 0x4d5   : > { %3707 = vrot.lane.b32.xlu0 %v3548_v9, %s4959_s25  ;;  %v3415_v9 = vadd.f32 %v7336_v8, %v9281_v56  ;;  %v9289_v56 = vld [vmem:[#allocation43_spill] sm:$0xff] }
 0x4d6   : > { %3773 = vrot.lane.b32.xlu1 %v7489_v53, %s4959_s25  ;;  %v3416_v53 = vadd.f32 %v9282_v7, %v7344_v39  ;;  %v3420_v39 = vadd.f32 %v9289_v56, %v7360_v43 }
 0x4d7   : > { %v3453_v12 = vadd.f32 %v3415_v9, %v9286_v46  ;;  %v9292_v9 = vld [vmem:[#allocation61_spill] sm:$0xff] }
 0x508   : > { %v3646_v58 = vpop.permute.xlu1 %3645 }
 0x509   : > { %v3741_v7 = vadd.f32 %v3646_v58, %v3453_v12  ;;  %v9294_v12 = vld [vmem:[#allocation128_spill] sm:$0xff]  ;;  %v9295_v58 = vld [vmem:[#allocation127_spill] sm:$0xff] }
 0x50a   : > { %v3458_v32 = vadd.f32 %v3420_v39, %v9295_v58  ;;  %v9298_v39 = vld [vmem:[#allocation137_spill] sm:$0xff] }
 0x50b   : > { %v3648_v41 = vpop.permute.xlu0 %3647  ;;  %v9302_v58 = vld [vmem:[#allocation149_spill] sm:$0xff] }
 0x50c   : > { %v3650_v24 = vpop.permute.xlu1 %3649 }
 0x50f   : > { %v3652_v1 = vpop.permute.xlu0 %3651 }
 0x510   : > { %v3654_v25 = vpop.permute.xlu1 %3653  ;;  %v3744_v46 = vadd.f32 %v3652_v1, %v3456_v31  ;;  %v9297_v1 = vld [vmem:[#allocation67_spill] sm:$0xff] }
 0x511   : > { %v9299_v31 = vld [vmem:[#allocation135_spill] sm:$0xff] }
 0x513   : > { %v3656_v20 = vpop.permute.xlu0 %3655 }
 0x514   : > { %v3658_v4 = vpop.permute.xlu1 %3657 }
 0x517   : > { %v3660_v10 = vpop.permute.xlu0 %3659 }
 0x518   : > { %v7493_v23 = vpop.permute.xlu1 %3661 }
 0x51b   : > { %v3664_v60 = vpop.permute.xlu0 %3663 }
 0x51c   : > { %v7495_v19 = vpop.permute.xlu1 %3665 }
 0x51f   : > { %v7513_v33 = vpop.permute.xlu0 %3667 }
 0x520   : > { %v7497_v17 = vpop.permute.xlu1 %3669 }
 0x523   : > { %v7529_v37 = vpop.permute.xlu0 %3671 }
 0x524   : > { %v7499_v49 = vpop.permute.xlu1 %3673 }
 0x528   : > { %v7501_v61 = vpop.permute.xlu1 %3677 }
 0x52c   : > { %v7503_v36 = vpop.permute.xlu1 %3681 }
 0x530   : > { %v7505_v26 = vpop.permute.xlu1 %3685 }
 0x534   : > { %v7507_v51 = vpop.permute.xlu1 %3689 }
 0x538   : > { %v7509_v29 = vpop.permute.xlu1 %3693 }
 0x53c   : > { %v7511_v18 = vpop.permute.xlu1 %3697 }
 0x53d   : > { %9279 = vst [vmem:[#allocation120_spill] sm:$0xff] %v7511_v18  ;;  %v9287_v18 = vld [vmem:[#allocation113_spill] sm:$0xff] }
 0x53e   : > { %v3454_v30 = vadd.f32 %v3416_v53, %v9287_v18 }
 0x540   : > { %v7515_v40 = vpop.permute.xlu1 %3701  ;;  %v3742_v63 = vadd.f32 %v3648_v41, %v3454_v30  ;;  %v7547_v41 = vpop.permute.xlu0 %3675 }
 0x541   : > { %9280 = vst [vmem:[#allocation124_spill] sm:$0xff] %v7515_v40  ;;  %v9288_v40 = vld [vmem:[#allocation49_spill] sm:$0xff] }
 0x542   : > { %v3419_v8 = vadd.f32 %v7350_v22, %v9288_v40  ;;  %v3421_v22 = vadd.f32 %v7358_v57, %v9292_v9  ;;  %v9293_v40 = vld [vmem:[#allocation55_spill] sm:$0xff]  ;;  %v9296_v57 = vld [vmem:[#allocation73_spill] sm:$0xff] }
 0x543   : > { %v3422_v43 = vadd.f32 %v9293_v40, %v7368_v48  ;;  %v3423_v48 = vadd.f32 %v7366_v34, %v9296_v57  ;;  %v9300_v34 = vld [vmem:[#allocation83_spill] sm:$0xff] }
 0x544   : > { %v7525_v52 = vpop.permute.xlu1 %3705  ;;  %v3457_v30 = vadd.f32 %v3419_v8, %v9294_v12  ;;  %v3424_v8 = vadd.f32 %v9297_v1, %v7374_v14  ;;  %v3459_v45 = vadd.f32 %v3421_v22, %v9298_v39  ;;  %v3425_v14 = vadd.f32 %v7372_v21, %v9300_v34  ;;  %v9301_v22 = vld [vmem:[#allocation79_spill] sm:$0xff]  ;;  %v9304_v21 = vld [vmem:[#allocation97_spill] sm:$0xff] }
 0x545   : > { %9285 = vst [vmem:[#allocation126_spill] sm:$0xff] %v7525_v52  ;;  %v3743_v52 = vadd.f32 %v3650_v24, %v3455_v0 }
 0x546   : > { %v3745_v24 = vadd.f32 %v3654_v25, %v3457_v30  ;;  %v7561_v30 = vpop.permute.xlu0 %3679 }
 0x548   : > { %v7537_v50 = vpop.permute.xlu1 %3773 }
 0x549   : > { %v3776_v53 = vadd.f32 %v7537_v50, %v3741_v7  ;;  %v3777_v18 = vadd.f32 %v7537_v50, %v3742_v63  ;;  %v3778_v0 = vadd.f32 %v7537_v50, %v3743_v52  ;;  %v3779_v7 = vadd.f32 %v7537_v50, %v3744_v46 }
 0x54a   : > { %v3746_v63 = vadd.f32 %v3656_v20, %v3458_v32  ;;  %v3780_v25 = vadd.f32 %v7537_v50, %v3745_v24  ;;  %v3747_v46 = vadd.f32 %v3658_v4, %v3459_v45  ;;  %v3461_v32 = vadd.f32 %v3423_v48, %v9302_v58  ;;  %v9305_v48 = vld [vmem:[#allocation85_spill] sm:$0xff] }
 0x54b   : > { %v3808_v13 = vmax.f32 %v3776_v53, 0.0  ;;  %v3809_v5 = vmax.f32 %v3777_v18, 0.0  ;;  %v3460_v53 = vadd.f32 %v3422_v43, %v9299_v31  ;;  %v3810_v52 = vmax.f32 %v3778_v0, 0.0  ;;  %v9307_v31 = vld [vmem:[#allocation160_spill] sm:$0xff] }
 0x54c   : > { %v3811_v18 = vmax.f32 %v3779_v7, 0.0  ;;  %v3781_v20 = vadd.f32 %v7537_v50, %v3746_v63  ;;  %v3426_v43 = vadd.f32 %v9301_v22, %v7378_v59  ;;  %v3812_v0 = vmax.f32 %v3780_v25, 0.0 }
 0x54d   : > { %3872 = vrot.lane.b32.xlu0 %v3808_v13, %s4966_s14  ;;  %3874 = vrot.lane.b32.xlu1 %v3809_v5, %s4966_s14  ;;  %v3748_v12 = vadd.f32 %v3660_v10, %v3460_v53  ;;  %v9303_v13 = vld [vmem:[#allocation148_spill] sm:$0xff]  ;;  %v3782_v4 = vadd.f32 %v7537_v50, %v3747_v46  ;;  %v3749_v24 = vadd.f32 %v7493_v23, %v3461_v32  ;;  %v9311_v32 = vld [vmem:[#allocation170_spill] sm:$0xff] }
 0x54e   : > { %v3462_v5 = vadd.f32 %v3424_v8, %v9303_v13  ;;  %v3813_v7 = vmax.f32 %v3781_v20, 0.0  ;;  %v3427_v59 = vadd.f32 %v7376_v27, %v9304_v21  ;;  %v3428_v39 = vadd.f32 %v9305_v48, %v7382_v47  ;;  %v9306_v8 = vld [vmem:[#allocation161_spill] sm:$0xff]  ;;  %v9308_v27 = vld [vmem:[#allocation3_spill] sm:$0xff] }
 0x54f   : > { %v3783_v10 = vadd.f32 %v7537_v50, %v3748_v12  ;;  %v3463_v45 = vadd.f32 %v3425_v14, %v9306_v8  ;;  %v3464_v53 = vadd.f32 %v3426_v43, %v9307_v31  ;;  %v3784_v23 = vadd.f32 %v7537_v50, %v3749_v24  ;;  %v9309_v12 = vld [vmem:[#allocation2_spill] sm:$0xff]  ;;  %v9310_v43 = vld [vmem:[#allocation169_spill] sm:$0xff] }
 0x550   : > { %v3750_v63 = vadd.f32 %v3664_v60, %v3462_v5  ;;  %v3429_v47 = vadd.f32 %v7380_v62, %v9308_v27  ;;  %v3430_v14 = vadd.f32 %v9309_v12, %v7386_v3  ;;  %v3465_v58 = vadd.f32 %v3427_v59, %v9310_v43  ;;  %v9312_v62 = vld [vmem:[#allocation9_spill] sm:$0xff]  ;;  %v9314_v59 = vld [vmem:[#allocation175_spill] sm:$0xff] }
 0x551   : > { %3876 = vrot.lane.b32.xlu0 %v3810_v52, %s4966_s14  ;;  %3878 = vrot.lane.b32.xlu1 %v3811_v18, %s4966_s14  ;;  %v3684_v52 = vpop.permute.xlu0 %3683  ;;  %v3814_v18 = vmax.f32 %v3782_v4, 0.0  ;;  %v3815_v25 = vmax.f32 %v3783_v10, 0.0  ;;  %v3751_v20 = vadd.f32 %v7495_v19, %v3463_v45  ;;  %v3752_v46 = vadd.f32 %v7513_v33, %v3464_v53  ;;  %v9313_v24 = vld [vmem:[#allocation5_spill] sm:$0xff] }
 0x552   : > { %v3785_v60 = vadd.f32 %v7537_v50, %v3750_v63  ;;  %v3466_v13 = vadd.f32 %v3428_v39, %v9311_v32  ;;  %v3816_v5 = vmax.f32 %v3784_v23, 0.0  ;;  %v3431_v3 = vadd.f32 %v7384_v28, %v9312_v62  ;;  %v9315_v8 = vld [vmem:[#allocation177_spill] sm:$0xff]  ;;  %v9316_v28 = vld [vmem:[#allocation16_spill] sm:$0xff]  ;;  %v9317_v23 = vld [vmem:[#allocation11_spill] sm:$0xff] }
 0x553   : > { %v3786_v19 = vadd.f32 %v7537_v50, %v3751_v20  ;;  %v3787_v33 = vadd.f32 %v7537_v50, %v3752_v46  ;;  %v3432_v63 = vadd.f32 %v9313_v24, %v7390_v2  ;;  %v3467_v39 = vadd.f32 %v3429_v47, %v9314_v59  ;;  %v9318_v20 = vld [vmem:[#allocation106_spill] sm:$0xff]  ;;  %v9319_v47 = vld [vmem:[#allocation105_spill] sm:$0xff] }
 0x554   : > { %v3754_v4 = vadd.f32 %v7529_v37, %v3466_v13  ;;  %v3468_v45 = vadd.f32 %v3430_v14, %v9315_v8  ;;  %v3433_v2 = vadd.f32 %v7388_v54, %v9316_v28  ;;  %v3469_v46 = vadd.f32 %v3431_v3, %v9318_v20  ;;  %v9320_v54 = vld [vmem:[#allocation26_spill] sm:$0xff] }
 0x555   : > { %3880 = vrot.lane.b32.xlu0 %v3812_v0, %s4966_s14  ;;  %3882 = vrot.lane.b32.xlu1 %v3813_v7, %s4966_s14  ;;  %v3817_v0 = vmax.f32 %v3785_v60, 0.0  ;;  %v3753_v7 = vadd.f32 %v7497_v17, %v3465_v58  ;;  %v3688_v10 = vpop.permute.xlu0 %3687  ;;  %v3818_v31 = vmax.f32 %v3786_v19, 0.0  ;;  %v3819_v53 = vmax.f32 %v3787_v33, 0.0  ;;  %v9322_v33 = vld [vmem:[#allocation109_spill] sm:$0xff] }
 0x556   : > { %v3789_v37 = vadd.f32 %v7537_v50, %v3754_v4  ;;  %v3434_v60 = vadd.f32 %v9317_v23, %v7394_v11  ;;  %v3470_v14 = vadd.f32 %v3432_v63, %v9319_v47  ;;  %v3757_v13 = vadd.f32 %v7501_v61, %v3469_v46  ;;  %v9323_v4 = vld [vmem:[#allocation110_spill] sm:$0xff]  ;;  %v9329_v47 = vld [vmem:[#allocation44_spill] sm:$0xff] }
 0x557   : > { %v3788_v17 = vadd.f32 %v7537_v50, %v3753_v7  ;;  %v3435_v11 = vadd.f32 %v7392_v35, %v9320_v54  ;;  %v3471_v7 = vadd.f32 %v3433_v2, %v9322_v33  ;;  %v9324_v35 = vld [vmem:[#allocation38_spill] sm:$0xff] }
 0x558   : > { %v3821_v32 = vmax.f32 %v3789_v37, 0.0  ;;  %v3472_v3 = vadd.f32 %v3434_v60, %v9323_v4  ;;  %v3792_v61 = vadd.f32 %v7537_v50, %v3757_v13 }
 0x559   : > { %3884 = vrot.lane.b32.xlu0 %v3814_v18, %s4966_s14  ;;  %3886 = vrot.lane.b32.xlu1 %v3815_v25, %s4966_s14  ;;  %v3755_v18 = vadd.f32 %v7499_v49, %v3467_v39  ;;  %v3756_v25 = vadd.f32 %v7547_v41, %v3468_v45  ;;  %v3692_v43 = vpop.permute.xlu0 %3691  ;;  %v3820_v58 = vmax.f32 %v3788_v17, 0.0  ;;  %v3759_v39 = vadd.f32 %v7503_v36, %v3471_v7  ;;  %v9326_v17 = vld [vmem:[#allocation116_spill] sm:$0xff] }
 0x55a   : > { %v3760_v8 = vadd.f32 %v3684_v52, %v3472_v3  ;;  %v3473_v37 = vadd.f32 %v3435_v11, %v9326_v17  ;;  %v3824_v2 = vmax.f32 %v3792_v61, 0.0  ;;  %v9333_v7 = vld [vmem:[#allocation56_spill] sm:$0xff]  ;;  %v9334_v3 = vld [vmem:[#allocation130_spill] sm:$0xff] }
 0x55b   : > { %v3790_v49 = vadd.f32 %v7537_v50, %v3755_v18  ;;  %v3791_v41 = vadd.f32 %v7537_v50, %v3756_v25  ;;  %v9327_v18 = vld [vmem:[#allocation115_spill] sm:$0xff]  ;;  %v3794_v36 = vadd.f32 %v7537_v50, %v3759_v39  ;;  %v3442_v4 = vadd.f32 %v9333_v7, %v7410_v6  ;;  %v9337_v6 = vld [vmem:[#allocation180_spill] sm:$0xff] }
 0x55c   : > { %v3795_v52 = vadd.f32 %v7537_v50, %v3760_v8  ;;  %v3761_v20 = vadd.f32 %v7505_v26, %v3473_v37  ;;  %v9338_v37 = vld [vmem:[#allocation184_spill] sm:$0xff] }
 0x55d   : > { %3888 = vrot.lane.b32.xlu0 %v3816_v5, %s4966_s14  ;;  %3890 = vrot.lane.b32.xlu1 %v3817_v0, %s4966_s14  ;;  %v3758_v5 = vadd.f32 %v7561_v30, %v3470_v14  ;;  %v9321_v0 = vld [vmem:[#allocation20_spill] sm:$0xff]  ;;  %v3822_v63 = vmax.f32 %v3790_v49, 0.0  ;;  %v3823_v59 = vmax.f32 %v3791_v41, 0.0  ;;  %v3696_v45 = vpop.permute.xlu0 %3695  ;;  %v3440_v14 = vadd.f32 %v9329_v47, %v7406_v38  ;;  %v9331_v49 = vld [vmem:[#allocation119_spill] sm:$0xff] }
 0x55e   : > { %v3436_v19 = vadd.f32 %v9321_v0, %v7398_v16  ;;  %v3437_v16 = vadd.f32 %v7396_v42, %v9324_v35  ;;  %v9328_v42 = vld [vmem:[#allocation50_spill] sm:$0xff]  ;;  %v3827_v11 = vmax.f32 %v3795_v52, 0.0  ;;  %v3796_v26 = vadd.f32 %v7537_v50, %v3761_v20 }
 0x55f   : > { %v3793_v30 = vadd.f32 %v7537_v50, %v3758_v5  ;;  %v3826_v5 = vmax.f32 %v3794_v36, 0.0  ;;  %v9341_v36 = vld [vmem:[#allocation138_spill] sm:$0xff] }
 0x560   : > { %v3474_v25 = vadd.f32 %v3436_v19, %v9327_v18  ;;  %v9339_v18 = vld [vmem:[#allocation68_spill] sm:$0xff]  ;;  %v3480_v52 = vadd.f32 %v3442_v4, %v9341_v36 }
 0x561   : > { %3892 = vrot.lane.b32.xlu0 %v3818_v31, %s4966_s14  ;;  %3894 = vrot.lane.b32.xlu1 %v3819_v53, %s4966_s14  ;;  %v9325_v31 = vld [vmem:[#allocation32_spill] sm:$0xff]  ;;  %v3825_v60 = vmax.f32 %v3793_v30, 0.0  ;;  %v3700_v13 = vpop.permute.xlu0 %3699  ;;  %v3828_v30 = vmax.f32 %v3796_v26, 0.0  ;;  %v9346_v26 = vld [vmem:[#allocation151_spill] sm:$0xff] }
 0x562   : > { %v3438_v53 = vadd.f32 %v9325_v31, %v7402_v44  ;;  %v3762_v46 = vadd.f32 %v3688_v10, %v3474_v25  ;;  %v3439_v44 = vadd.f32 %v7400_v55, %v9328_v42  ;;  %v9332_v55 = vld [vmem:[#allocation62_spill] sm:$0xff]  ;;  %v3444_v25 = vadd.f32 %v9339_v18, %v9338_v37 }
 0x563   : > { %v3441_v38 = vadd.f32 %v7404_v15, %v9332_v55  ;;  %v9336_v15 = vld [vmem:[#allocation74_spill] sm:$0xff] }
 0x564   : > { %v3476_v41 = vadd.f32 %v3438_v53, %v9331_v49  ;;  %v3797_v10 = vadd.f32 %v7537_v50, %v3762_v46  ;;  %v3443_v17 = vadd.f32 %v9337_v6, %v9336_v15  ;;  %v9344_v49 = vld [vmem:[#allocation92_spill] sm:$0xff] }
 0x565   : > { %3896 = vrot.lane.b32.xlu0 %v3820_v58, %s4966_s14  ;;  %3898 = vrot.lane.b32.xlu1 %v3821_v32, %s4966_s14  ;;  %v9330_v58 = vld [vmem:[#allocation122_spill] sm:$0xff]  ;;  %v3704_v53 = vpop.permute.xlu0 %3703 }
 0x566   : > { %v3475_v32 = vadd.f32 %v3437_v16, %v9330_v58  ;;  %v3764_v33 = vadd.f32 %v3692_v43, %v3476_v41  ;;  %v3829_v39 = vmax.f32 %v3797_v10, 0.0  ;;  %v3768_v58 = vadd.f32 %v3700_v13, %v3480_v52  ;;  %v9348_v13 = vld [vmem:[#allocation183_spill] sm:$0xff] }
 0x567   : > { %v3482_v10 = vadd.f32 %v3444_v25, %v9346_v26 }
 0x568   : > { %v3763_v19 = vadd.f32 %v7507_v51, %v3475_v32  ;;  %v3799_v51 = vadd.f32 %v7537_v50, %v3764_v33  ;;  %v9343_v32 = vld [vmem:[#allocation111_spill] sm:$0xff] }
 0x569   : > { %3900 = vrot.lane.b32.xlu0 %v3822_v63, %s4966_s14  ;;  %3902 = vrot.lane.b32.xlu1 %v3823_v59, %s4966_s14  ;;  %v3477_v63 = vadd.f32 %v3439_v44, %v9334_v3  ;;  %v9335_v59 = vld [vmem:[#allocation129_spill] sm:$0xff]  ;;  %v9342_v44 = vld [vmem:[#allocation120_spill] sm:$0xff]  ;;  %v3446_v41 = vadd.f32 %v9344_v49, %v9343_v32  ;;  %v3803_v3 = vadd.f32 %v7537_v50, %v3768_v58 }
 0x56a   : > { %v3478_v61 = vadd.f32 %v3440_v14, %v9335_v59  ;;  %v3798_v8 = vadd.f32 %v7537_v50, %v3763_v19  ;;  %v3831_v46 = vmax.f32 %v3799_v51, 0.0  ;;  %v3708_v19 = vpop.permute.xlu0 %3707  ;;  %v3770_v51 = vadd.f32 %v3704_v53, %v3482_v10  ;;  %v9355_v58 = vld [vmem:[#allocation37_spill] sm:$0xff] }
 0x56b   : > { %v3765_v43 = vadd.f32 %v7509_v29, %v3477_v63  ;;  %v9347_v63 = vld [vmem:[#allocation93_spill] sm:$0xff]  ;;  %v3835_v37 = vmax.f32 %v3803_v3, 0.0  ;;  %v9367_v3 = vld [vmem:[#allocation36_spill] sm:$0xff] }
 0x56c   : > { %v3766_v16 = vadd.f32 %v3696_v45, %v3478_v61  ;;  %v3830_v20 = vmax.f32 %v3798_v8, 0.0  ;;  %v3445_v59 = vadd.f32 %v9348_v13, %v9347_v63  ;;  %v9349_v61 = vld [vmem:[#allocation112_spill] sm:$0xff]  ;;  %v9357_v32 = vld [vmem:[#allocation49_spill] sm:$0xff] }
 0x56d   : > { %3904 = vrot.lane.b32.xlu0 %v3824_v2, %s4966_s14  ;;  %3906 = vrot.lane.b32.xlu1 %v3825_v60, %s4966_s14  ;;  %v9340_v2 = vld [vmem:[#allocation139_spill] sm:$0xff]  ;;  %v3800_v29 = vadd.f32 %v7537_v50, %v3765_v43 }
 0x56e   : > { %v3479_v60 = vadd.f32 %v3441_v38, %v9340_v2  ;;  %v3801_v45 = vadd.f32 %v7537_v50, %v3766_v16  ;;  %v9351_v43 = vld [vmem:[#allocation179_spill] sm:$0xff]  ;;  %v3805_v2 = vadd.f32 %v7537_v50, %v3770_v51  ;;  %v9374_v51 = vld [vmem:[#allocation53_spill] sm:$0xff] }
 0x56f   : > { %v3832_v33 = vmax.f32 %v3800_v29, 0.0  ;;  %v3483_v16 = vadd.f32 %v9351_v43, %v3445_v59  ;;  %v9375_v43 = vld [vmem:[#allocation60_spill] sm:$0xff] }
 0x570   : > { %v3767_v14 = vadd.f32 %v9342_v44, %v3479_v60  ;;  %v3833_v38 = vmax.f32 %v3801_v45, 0.0  ;;  %v9352_v60 = vld [vmem:[#allocation126_spill] sm:$0xff]  ;;  %v3837_v52 = vmax.f32 %v3805_v2, 0.0  ;;  %v9353_v44 = vld [vmem:[#allocation25_spill] sm:$0xff] }
 0x571   : > { %3908 = vrot.lane.b32.xlu0 %v3826_v5, %s4966_s14  ;;  %3910 = vrot.lane.b32.xlu1 %v3827_v11, %s4966_s14  ;;  %v9345_v5 = vld [vmem:[#allocation152_spill] sm:$0xff]  ;;  %v3771_v36 = vadd.f32 %v9352_v60, %v3483_v16 }
 0x572   : > { %v3481_v11 = vadd.f32 %v3443_v17, %v9345_v5  ;;  %v3802_v4 = vadd.f32 %v7537_v50, %v3767_v14  ;;  %v9354_v14 = vld [vmem:[#allocation19_spill] sm:$0xff]  ;;  %v9382_v60 = vld [vmem:[#allocation76_spill] sm:$0xff] }
 0x574   : > { %v3834_v17 = vmax.f32 %v3802_v4, 0.0  ;;  %v9366_v4 = vld [vmem:[#allocation28_spill] sm:$0xff] }
 0x575   : > { %3912 = vrot.lane.b32.xlu0 %v3828_v30, %s4966_s14  ;;  %3914 = vrot.lane.b32.xlu1 %v3829_v39, %s4966_s14  ;;  %v3484_v30 = vadd.f32 %v9349_v61, %v3446_v41  ;;  %v9350_v39 = vld [vmem:[#allocation124_spill] sm:$0xff]  ;;  %v9370_v61 = vld [vmem:[#allocation41_spill] sm:$0xff] }
 0x576   : > { %v3769_v8 = vadd.f32 %v9350_v39, %v3481_v11 }
 0x577   : > { %v3772_v6 = vadd.f32 %v3708_v19, %v3484_v30  ;;  %v9371_v30 = vld [vmem:[#allocation48_spill] sm:$0xff] }
 0x578   : > { %v3804_v25 = vadd.f32 %v7537_v50, %v3769_v8 }
 0x579   : > { %3916 = vrot.lane.b32.xlu0 %v3830_v20, %s4966_s14  ;;  %3918 = vrot.lane.b32.xlu1 %v3831_v46, %s4966_s14  ;;  %v3806_v20 = vadd.f32 %v7537_v50, %v3771_v36  ;;  %v3807_v46 = vadd.f32 %v7537_v50, %v3772_v6  ;;  %v9356_v50 = vld [vmem:[#allocation31_spill] sm:$0xff]  ;;  %v9383_v36 = vld [vmem:[#allocation82_spill] sm:$0xff] }
 0x57a   : > { %v3836_v53 = vmax.f32 %v3804_v25, 0.0 }
 0x57b   : > { %v3838_v29 = vmax.f32 %v3806_v20, 0.0  ;;  %v3839_v45 = vmax.f32 %v3807_v46, 0.0  ;;  %v9385_v20 = vld [vmem:[#allocation91_spill] sm:$0xff]  ;;  %v9386_v46 = vld [vmem:[#allocation90_spill] sm:$0xff] }
 0x57d   : > { %3920 = vrot.lane.b32.xlu0 %v3832_v33, %s4966_s14  ;;  %3922 = vrot.lane.b32.xlu1 %v3833_v38, %s4966_s14 }
 0x581   : > { %3924 = vrot.lane.b32.xlu0 %v3834_v17, %s4966_s14  ;;  %3926 = vrot.lane.b32.xlu1 %v3835_v37, %s4966_s14  ;;  %v9378_v17 = vld [vmem:[#allocation65_spill] sm:$0xff]  ;;  %v9379_v37 = vld [vmem:[#allocation72_spill] sm:$0xff] }
 0x585   : > { %3928 = vrot.lane.b32.xlu0 %v3836_v53, %s4966_s14  ;;  %3930 = vrot.lane.b32.xlu1 %v3837_v52, %s4966_s14 }
 0x589   : > { %3932 = vrot.lane.b32.xlu0 %v3838_v29, %s4966_s14  ;;  %3934 = vrot.lane.b32.xlu1 %v3839_v45, %s4966_s14 }
 0x58d   : > { %4102 = vrot.lane.b32.xlu0 %v9353_v44, %s4967_s15  ;;  %4104 = vrot.lane.b32.xlu1 %v9354_v14, %s4967_s15 }
 0x591   : > { %4106 = vrot.lane.b32.xlu0 %v9355_v58, %s4967_s15  ;;  %4108 = vrot.lane.b32.xlu1 %v9356_v50, %s4967_s15 }
 0x595   : > { %4110 = vrot.lane.b32.xlu0 %v9357_v32, %s4967_s15  ;;  %4112 = vrot.lane.b32.xlu1 %v9289_v56, %s4967_s15 }
 0x599   : > { %4114 = vrot.lane.b32.xlu0 %v9292_v9, %s4967_s15  ;;  %4116 = vrot.lane.b32.xlu1 %v9293_v40, %s4967_s15 }
 0x59d   : > { %4118 = vrot.lane.b32.xlu0 %v9296_v57, %s4967_s15  ;;  %4120 = vrot.lane.b32.xlu1 %v9297_v1, %s4967_s15 }
 0x5a1   : > { %4122 = vrot.lane.b32.xlu0 %v9300_v34, %s4967_s15  ;;  %4124 = vrot.lane.b32.xlu1 %v9301_v22, %s4967_s15 }
 0x5a5   : > { %4126 = vrot.lane.b32.xlu0 %v9304_v21, %s4967_s15  ;;  %4128 = vrot.lane.b32.xlu1 %v9305_v48, %s4967_s15 }
 0x5a9   : > { %4130 = vrot.lane.b32.xlu0 %v9308_v27, %s4967_s15  ;;  %4132 = vrot.lane.b32.xlu1 %v9309_v12, %s4967_s15 }
 0x5ad   : > { %4134 = vrot.lane.b32.xlu0 %v9312_v62, %s4967_s15  ;;  %4136 = vrot.lane.b32.xlu1 %v9313_v24, %s4967_s15 }
 0x5b1   : > { %4138 = vrot.lane.b32.xlu0 %v9316_v28, %s4967_s15  ;;  %4140 = vrot.lane.b32.xlu1 %v9317_v23, %s4967_s15 }
 0x5b5   : > { %4142 = vrot.lane.b32.xlu0 %v9320_v54, %s4967_s15  ;;  %4144 = vrot.lane.b32.xlu1 %v9321_v0, %s4967_s15 }
 0x5b9   : > { %4146 = vrot.lane.b32.xlu0 %v9324_v35, %s4967_s15  ;;  %4148 = vrot.lane.b32.xlu1 %v9325_v31, %s4967_s15 }
 0x5bd   : > { %4150 = vrot.lane.b32.xlu0 %v9328_v42, %s4967_s15  ;;  %4152 = vrot.lane.b32.xlu1 %v9329_v47, %s4967_s15 }
 0x5bf   : > { %v3875_v41 = vpop.permute.xlu1 %3874  ;;  %v3873_v5 = vpop.permute.xlu0 %3872 }
 0x5c0   : > { %4752 = vst.msk [vmem:[%s6583_s6 + $0x208] sm:$0xff] %vm9358_vm0, %v3875_v41  ;;  %v9389_v41 = vld [vmem:[#allocation99_spill] sm:$0xff] }
 0x5c1   : > { %4751 = vst.msk [vmem:[%s6583_s6 + $0x200] sm:$0xff] %vm9359_vm2, %v3873_v5  ;;  %4154 = vrot.lane.b32.xlu0 %v9332_v55, %s4967_s15  ;;  %4156 = vrot.lane.b32.xlu1 %v9333_v7, %s4967_s15  ;;  %vm9384_vm2 = vmmov %vm9358_vm0  ;;  %v9390_v5 = vld [vmem:[#allocation101_spill] sm:$0xff] }
 0x5c3   : > { %v3879_v11 = vpop.permute.xlu1 %3878  ;;  %v3877_v26 = vpop.permute.xlu0 %3876 }
 0x5c4   : > { %4754 = vst.msk [vmem:[%s6583_s6 + $0x218] sm:$0xff] %vm9360_vm3, %v3879_v11  ;;  %vm9387_vm3 = vmmov %vm9358_vm0 }
 0x5c5   : > { %4753 = vst.msk [vmem:[%s6583_s6 + $0x210] sm:$0xff] %vm9361_vm4, %v3877_v26  ;;  %4158 = vrot.lane.b32.xlu0 %v9336_v15, %s4967_s15  ;;  %4160 = vrot.lane.b32.xlu1 %v9339_v18, %s4967_s15  ;;  %vm9388_vm4 = vmmov %vm9358_vm0 }
 0x5c7   : > { %v3883_v10 = vpop.permute.xlu1 %3882  ;;  %v3881_v19 = vpop.permute.xlu0 %3880 }
 0x5c8   : > { %4756 = vst.msk [vmem:[%s6583_s6 + $0x228] sm:$0xff] %vm9362_vm5, %v3883_v10  ;;  %vm9391_vm5 = vmmov %vm9358_vm0  ;;  %v9393_v10 = vld [vmem:[#allocation103_spill] sm:$0xff] }
 0x5c9   : > { %4755 = vst.msk [vmem:[%s6583_s6 + $0x220] sm:$0xff] %vm9363_vm6, %v3881_v19  ;;  %4162 = vrot.lane.b32.xlu0 %v9347_v63, %s4967_s15  ;;  %4164 = vrot.lane.b32.xlu1 %v9344_v49, %s4967_s15  ;;  %vm9392_vm6 = vmmov %vm9358_vm0  ;;  %v9394_v19 = vld [vmem:[#allocation87_spill] sm:$0xff] }
 0x5cb   : > { %v3887_v33 = vpop.permute.xlu1 %3886  ;;  %v3885_v38 = vpop.permute.xlu0 %3884 }
 0x5cc   : > { %4758 = vst.msk [vmem:[%s6583_s6 + $0x238] sm:$0xff] %vm9364_vm7, %v3887_v33  ;;  %vm9395_vm7 = vmmov %vm9358_vm0 }
 0x5cd   : > { %4757 = vst.msk [vmem:[%s6583_s6 + $0x230] sm:$0xff] %vm9365_vm8, %v3885_v38  ;;  %4230 = vrot.lane.b32.xlu0 %v9366_v4, %s4957_s23  ;;  %4232 = vrot.lane.b32.xlu1 %v9367_v3, %s4957_s23  ;;  %vm9396_vm8 = vmmov %vm9358_vm0  ;;  %v9397_v4 = vld [vmem:[#allocation7_spill] sm:$0xff]  ;;  %v9398_v3 = vld [vmem:[#allocation14_spill] sm:$0xff] }
 0x5cf   : > { %v3891_v13 = vpop.permute.xlu1 %3890  ;;  %v3889_v59 = vpop.permute.xlu0 %3888 }
 0x5d0   : > { %4760 = vst.msk [vmem:[%s6583_s6 + $0x248] sm:$0xff] %vm9368_vm10, %v3891_v13  ;;  %vm9399_vm10 = vmmov %vm9358_vm0 }
 0x5d1   : > { %4759 = vst.msk [vmem:[%s6583_s6 + $0x240] sm:$0xff] %vm9369_vm12, %v3889_v59  ;;  %4234 = vrot.lane.b32.xlu0 %v9370_v61, %s4957_s23  ;;  %4236 = vrot.lane.b32.xlu1 %v9371_v30, %s4957_s23  ;;  %vm9400_vm12 = vmmov %vm9358_vm0 }
 0x5d3   : > { %v3895_v39 = vpop.permute.xlu1 %3894  ;;  %v3893_v8 = vpop.permute.xlu0 %3892 }
 0x5d4   : > { %4762 = vst.msk [vmem:[%s6583_s6 + $0x258] sm:$0xff] %vm9372_vm14, %v3895_v39  ;;  %v9401_v39 = vld [vmem:[#allocation17_spill] sm:$0xff]  ;;  %vm9403_vm14 = vmmov %vm9358_vm0 }
 0x5d5   : > { %4761 = vst.msk [vmem:[%s6583_s6 + $0x250] sm:$0xff] %vm9373_vm1, %v3893_v8  ;;  %4238 = vrot.lane.b32.xlu0 %v9374_v51, %s4957_s23  ;;  %4240 = vrot.lane.b32.xlu1 %v9375_v43, %s4957_s23  ;;  %v9402_v8 = vld [vmem:[#allocation27_spill] sm:$0xff]  ;;  %vm9404_vm1 = vmmov %vm9358_vm0 }
 0x5d7   : > { %v3899_v16 = vpop.permute.xlu1 %3898  ;;  %v3897_v6 = vpop.permute.xlu0 %3896 }
 0x5d8   : > { %4764 = vst.msk [vmem:[%s6583_s6 + $0x268] sm:$0xff] %vm9376_vm9, %v3899_v16  ;;  %vm9407_vm9 = vmmov %vm9358_vm0 }
 0x5d9   : > { %4763 = vst.msk [vmem:[%s6583_s6 + $0x260] sm:$0xff] %vm9377_vm15, %v3897_v6  ;;  %4242 = vrot.lane.b32.xlu0 %v9378_v17, %s4957_s23  ;;  %4244 = vrot.lane.b32.xlu1 %v9379_v37, %s4957_s23  ;;  %vm9408_vm15 = vmmov %vm9358_vm0 }
 0x5db   : > { %v3903_v25 = vpop.permute.xlu1 %3902  ;;  %v3901_v2 = vpop.permute.xlu0 %3900 }
 0x5dc   : > { %4766 = vst.msk [vmem:[%s6583_s6 + $0x278] sm:$0xff] %vm9380_vm13, %v3903_v25  ;;  %v9405_v25 = vld [vmem:[#allocation29_spill] sm:$0xff]  ;;  %vm9411_vm13 = vmmov %vm9358_vm0 }
 0x5dd   : > { %4765 = vst.msk [vmem:[%s6583_s6 + $0x270] sm:$0xff] %vm9381_vm11, %v3901_v2  ;;  %4246 = vrot.lane.b32.xlu0 %v9382_v60, %s4957_s23  ;;  %4248 = vrot.lane.b32.xlu1 %v9383_v36, %s4957_s23  ;;  %v9406_v2 = vld [vmem:[#allocation40_spill] sm:$0xff]  ;;  %vm9412_vm11 = vmmov %vm9358_vm0 }
 0x5df   : > { %v3907_v53 = vpop.permute.xlu1 %3906  ;;  %v3905_v52 = vpop.permute.xlu0 %3904 }
 0x5e0   : > { %4768 = vst.msk [vmem:[%s6583_s6 + $0x288] sm:$0xff] %vm9358_vm0, %v3907_v53 }
 0x5e1   : > { %4767 = vst.msk [vmem:[%s6583_s6 + $0x280] sm:$0xff] %vm9384_vm2, %v3905_v52  ;;  %4250 = vrot.lane.b32.xlu0 %v9385_v20, %s4957_s23  ;;  %4252 = vrot.lane.b32.xlu1 %v9386_v46, %s4957_s23  ;;  %vm9440_vm2 = vcmask 1046528  }
 0x5e3   : > { %v3911_v29 = vpop.permute.xlu1 %3910  ;;  %v3909_v45 = vpop.permute.xlu0 %3908 }
 0x5e4   : > { %4770 = vst.msk [vmem:[%s6583_s6 + $0x298] sm:$0xff] %vm9387_vm3, %v3911_v29  ;;  %v9409_v29 = vld [vmem:[#allocation42_spill] sm:$0xff] }
 0x5e5   : > { %4769 = vst.msk [vmem:[%s6583_s6 + $0x290] sm:$0xff] %vm9388_vm4, %v3909_v45  ;;  %4254 = vrot.lane.b32.xlu0 %v9389_v41, %s4957_s23  ;;  %4256 = vrot.lane.b32.xlu1 %v9390_v5, %s4957_s23  ;;  %v9410_v45 = vld [vmem:[#allocation52_spill] sm:$0xff] }
 0x5e7   : > { %v3915_v11 = vpop.permute.xlu1 %3914  ;;  %v3913_v26 = vpop.permute.xlu0 %3912 }
 0x5e8   : > { %4772 = vst.msk [vmem:[%s6583_s6 + $0x2a8] sm:$0xff] %vm9391_vm5, %v3915_v11 }
 0x5e9   : > { %4771 = vst.msk [vmem:[%s6583_s6 + $0x2a0] sm:$0xff] %vm9392_vm6, %v3913_v26  ;;  %4258 = vrot.lane.b32.xlu0 %v9393_v10, %s4957_s23  ;;  %4260 = vrot.lane.b32.xlu1 %v9394_v19, %s4957_s23 }
 0x5eb   : > { %v3919_v33 = vpop.permute.xlu1 %3918  ;;  %v3917_v38 = vpop.permute.xlu0 %3916 }
 0x5ec   : > { %4774 = vst.msk [vmem:[%s6583_s6 + $0x2b8] sm:$0xff] %vm9395_vm7, %v3919_v33  ;;  %v9413_v33 = vld [vmem:[#allocation54_spill] sm:$0xff]  ;;  %vm9467_vm7 = vmmov %vm9404_vm1 }
 0x5ed   : > { %4773 = vst.msk [vmem:[%s6583_s6 + $0x2b0] sm:$0xff] %vm9396_vm8, %v3917_v38  ;;  %4262 = vrot.lane.b32.xlu0 %v9397_v4, %s4957_s23  ;;  %4264 = vrot.lane.b32.xlu1 %v9398_v3, %s4957_s23  ;;  %v9414_v38 = vld [vmem:[#allocation64_spill] sm:$0xff]  ;;  %vm9468_vm8 = vmmov %vm9404_vm1 }
 0x5ef   : > { %v3923_v13 = vpop.permute.xlu1 %3922  ;;  %v3921_v59 = vpop.permute.xlu0 %3920 }
 0x5f0   : > { %4776 = vst.msk [vmem:[%s6583_s6 + $0x2c8] sm:$0xff] %vm9399_vm10, %v3923_v13 }
 0x5f1   : > { %4775 = vst.msk [vmem:[%s6583_s6 + $0x2c0] sm:$0xff] %vm9400_vm12, %v3921_v59  ;;  %4266 = vrot.lane.b32.xlu0 %v9401_v39, %s4957_s23  ;;  %4268 = vrot.lane.b32.xlu1 %v9402_v8, %s4957_s23  ;;  %vm9471_vm12 = vmmov %vm9404_vm1 }
 0x5f3   : > { %v3927_v16 = vpop.permute.xlu1 %3926  ;;  %v3925_v6 = vpop.permute.xlu0 %3924 }
 0x5f4   : > { %4778 = vst.msk [vmem:[%s6583_s6 + $0x2d8] sm:$0xff] %vm9403_vm14, %v3927_v16  ;;  %v9415_v16 = vld [vmem:[#allocation66_spill] sm:$0xff]  ;;  %vm9472_vm14 = vmmov %vm9404_vm1 }
 0x5f5   : > { %4777 = vst.msk [vmem:[%s6583_s6 + $0x2d0] sm:$0xff] %vm9404_vm1, %v3925_v6  ;;  %4270 = vrot.lane.b32.xlu0 %v9405_v25, %s4957_s23  ;;  %4272 = vrot.lane.b32.xlu1 %v9406_v2, %s4957_s23  ;;  %v9416_v6 = vld [vmem:[#allocation75_spill] sm:$0xff] }
 0x5f7   : > { %v3931_v53 = vpop.permute.xlu1 %3930  ;;  %v3929_v52 = vpop.permute.xlu0 %3928 }
 0x5f8   : > { %4780 = vst.msk [vmem:[%s6583_s6 + $0x2e8] sm:$0xff] %vm9407_vm9, %v3931_v53  ;;  %vm9475_vm9 = vmmov %vm9467_vm7 }
 0x5f9   : > { %4779 = vst.msk [vmem:[%s6583_s6 + $0x2e0] sm:$0xff] %vm9408_vm15, %v3929_v52  ;;  %4274 = vrot.lane.b32.xlu0 %v9409_v29, %s4957_s23  ;;  %4276 = vrot.lane.b32.xlu1 %v9410_v45, %s4957_s23  ;;  %v9419_v29 = vld [vmem:[#allocation95_spill] sm:$0xff]  ;;  %vm9476_vm15 = vmmov %vm9467_vm7 }
 0x5fb   : > { %v3935_v11 = vpop.permute.xlu1 %3934  ;;  %v3933_v26 = vpop.permute.xlu0 %3932 }
 0x5fc   : > { %4782 = vst.msk [vmem:[%s6583_s6 + $0x2f8] sm:$0xff] %vm9411_vm13, %v3935_v11  ;;  %v9417_v11 = vld [vmem:[#allocation78_spill] sm:$0xff] }
 0x5fd   : > { %4781 = vst.msk [vmem:[%s6583_s6 + $0x2f0] sm:$0xff] %vm9412_vm11, %v3933_v26  ;;  %4278 = vrot.lane.b32.xlu0 %v9413_v33, %s4957_s23  ;;  %4280 = vrot.lane.b32.xlu1 %v9414_v38, %s4957_s23  ;;  %v9418_v26 = vld [vmem:[#allocation84_spill] sm:$0xff]  ;;  %vm9479_vm11 = vmmov %vm9467_vm7 }
 0x5ff   : > { %v7883_v13 = vpop.permute.xlu1 %4104  ;;  %v7885_v59 = vpop.permute.xlu0 %4102 }
 0x601   : > { %4282 = vrot.lane.b32.xlu0 %v9415_v16, %s4957_s23  ;;  %4284 = vrot.lane.b32.xlu1 %v9416_v6, %s4957_s23  ;;  %v9420_v16 = vld [vmem:[#allocation186_spill] sm:$0xff] }
 0x603   : > { %v7891_v53 = vpop.permute.xlu1 %4108  ;;  %v7893_v52 = vpop.permute.xlu0 %4106 }
 0x605   : > { %4286 = vrot.lane.b32.xlu0 %v9417_v11, %s4957_s23  ;;  %4288 = vrot.lane.b32.xlu1 %v9418_v26, %s4957_s23  ;;  %v9421_v11 = vld [vmem:[#allocation10_spill] sm:$0xff]  ;;  %v9422_v26 = vld [vmem:[#allocation15_spill] sm:$0xff] }
 0x607   : > { %v7899_v33 = vpop.permute.xlu1 %4112  ;;  %v7901_v38 = vpop.permute.xlu0 %4110 }
 0x609   : > { %4290 = vrot.lane.b32.xlu0 %v9419_v29, %s4957_s23  ;;  %4292 = vrot.lane.b32.xlu1 %v9420_v16, %s4957_s23 }
 0x60b   : > { %v7907_v6 = vpop.permute.xlu1 %4116  ;;  %v7909_v45 = vpop.permute.xlu0 %4114 }
 0x60d   : > { %4392 = vrot.lane.b32.xlu1 %v9421_v11, %s4968_s16  ;;  %4390 = vrot.lane.b32.xlu0 %v9422_v26, %s4968_s16 }
 0x60f   : > { %v7915_v25 = vpop.permute.xlu1 %4120  ;;  %v7917_v2 = vpop.permute.xlu0 %4118 }
 0x611   : > { %4396 = vrot.lane.b32.xlu1 %v9354_v14, %s4968_s16  ;;  %4394 = vrot.lane.b32.xlu0 %v9353_v44, %s4968_s16 }
 0x613   : > { %v7923_v29 = vpop.permute.xlu1 %4124  ;;  %v7925_v16 = vpop.permute.xlu0 %4122 }
 0x615   : > { %4400 = vrot.lane.b32.xlu1 %v9356_v50, %s4968_s16  ;;  %4398 = vrot.lane.b32.xlu0 %v9355_v58, %s4968_s16 }
 0x617   : > { %v7931_v11 = vpop.permute.xlu1 %4128  ;;  %v7933_v26 = vpop.permute.xlu0 %4126 }
 0x619   : > { %4404 = vrot.lane.b32.xlu1 %v9289_v56, %s4968_s16  ;;  %4402 = vrot.lane.b32.xlu0 %v9357_v32, %s4968_s16 }
 0x61b   : > { %v7939_v44 = vpop.permute.xlu1 %4132  ;;  %v7941_v14 = vpop.permute.xlu0 %4130 }
 0x61d   : > { %4408 = vrot.lane.b32.xlu1 %v9293_v40, %s4968_s16  ;;  %4406 = vrot.lane.b32.xlu0 %v9292_v9, %s4968_s16 }
 0x61f   : > { %v7947_v58 = vpop.permute.xlu1 %4136  ;;  %v7949_v50 = vpop.permute.xlu0 %4134 }
 0x621   : > { %4412 = vrot.lane.b32.xlu1 %v9297_v1, %s4968_s16  ;;  %4410 = vrot.lane.b32.xlu0 %v9296_v57, %s4968_s16 }
 0x623   : > { %v7955_v56 = vpop.permute.xlu1 %4140  ;;  %v7957_v32 = vpop.permute.xlu0 %4138 }
 0x624   : > { %9423 = vst [vmem:[#allocation132_spill] sm:$0xff] %v7955_v56  ;;  %9424 = vst [vmem:[#allocation134_spill] sm:$0xff] %v7957_v32 }
 0x625   : > { %4416 = vrot.lane.b32.xlu1 %v9301_v22, %s4968_s16  ;;  %4414 = vrot.lane.b32.xlu0 %v9300_v34, %s4968_s16 }
 0x627   : > { %v7963_v40 = vpop.permute.xlu1 %4144  ;;  %v7965_v9 = vpop.permute.xlu0 %4142 }
 0x628   : > { %9425 = vst [vmem:[#allocation144_spill] sm:$0xff] %v7963_v40  ;;  %9426 = vst [vmem:[#allocation191_spill] sm:$0xff] %v7965_v9 }
 0x629   : > { %4420 = vrot.lane.b32.xlu1 %v9305_v48, %s4968_s16  ;;  %4418 = vrot.lane.b32.xlu0 %v9304_v21, %s4968_s16 }
 0x62b   : > { %v7971_v57 = vpop.permute.xlu1 %4148  ;;  %v7973_v1 = vpop.permute.xlu0 %4146 }
 0x62c   : > { %9427 = vst [vmem:[#allocation185_spill] sm:$0xff] %v7971_v57  ;;  %9428 = vst [vmem:[#allocation190_spill] sm:$0xff] %v7973_v1 }
 0x62d   : > { %4424 = vrot.lane.b32.xlu1 %v9309_v12, %s4968_s16  ;;  %4422 = vrot.lane.b32.xlu0 %v9308_v27, %s4968_s16 }
 0x62f   : > { %v7979_v34 = vpop.permute.xlu1 %4152  ;;  %v7981_v22 = vpop.permute.xlu0 %4150 }
 0x630   : > { %9429 = vst [vmem:[#allocation146_spill] sm:$0xff] %v7979_v34  ;;  %9430 = vst [vmem:[#allocation156_spill] sm:$0xff] %v7981_v22  ;;  %v9439_v22 = vrot.slane %v9347_v63, 1 }
 0x631   : > { %4428 = vrot.lane.b32.xlu1 %v9313_v24, %s4968_s16  ;;  %4426 = vrot.lane.b32.xlu0 %v9312_v62, %s4968_s16  ;;  %v9435_v62 = vld [vmem:[#allocation176_spill] sm:$0xff] }
 0x632   : > { %v9436_v24 = vld [vmem:[#allocation172_spill] sm:$0xff] }
 0x633   : > { %v7987_v21 = vpop.permute.xlu1 %4156  ;;  %v7989_v48 = vpop.permute.xlu0 %4154  ;;  %vm9437_vm0 = vnez %v9436_v24 }
 0x634   : > { %9431 = vst [vmem:[#allocation30_spill] sm:$0xff] %v7987_v21  ;;  %9432 = vst [vmem:[#allocation193_spill] sm:$0xff] %v7989_v48  ;;  %v4069_v48 = vsel %vm9437_vm0, %v9435_v62, 0.0 }
 0x635   : > { %4432 = vrot.lane.b32.xlu1 %v9317_v23, %s4968_s16  ;;  %4430 = vrot.lane.b32.xlu0 %v9316_v28, %s4968_s16  ;;  %v9438_v23 = vrot.slane %v9344_v49, 1 }
 0x637   : > { %v7995_v27 = vpop.permute.xlu1 %4160  ;;  %v7997_v12 = vpop.permute.xlu0 %4158  ;;  %v4003_v28 = vsel %vm9440_vm2, %v9439_v22, %v9438_v23  ;;  %vm9480_vm2 = vmmov %vm9467_vm7 }
 0x638   : > { %9433 = vst [vmem:[#allocation18_spill] sm:$0xff] %v7995_v27  ;;  %9434 = vst [vmem:[#allocation192_spill] sm:$0xff] %v7997_v12 }
 0x639   : > { %4436 = vrot.lane.b32.xlu1 %v9321_v0, %s4968_s16  ;;  %4434 = vrot.lane.b32.xlu0 %v9320_v54, %s4968_s16 }
 0x63b   : > { %v4165_v21 = vpop.permute.xlu1 %4164  ;;  %v4163_v27 = vpop.permute.xlu0 %4162 }
 0x63c   : > { %v8011_v34 = vadd.f32 %v4165_v21, %v4069_v48  ;;  %v8013_v12 = vadd.f32 %v4163_v27, %v4003_v28 }
 0x63d   : > { %4440 = vrot.lane.b32.xlu1 %v9325_v31, %s4968_s16  ;;  %4438 = vrot.lane.b32.xlu0 %v9324_v35, %s4968_s16 }
 0x63e   : > { %9441 = vst [vmem:[#allocation158_spill] sm:$0xff] %v8011_v34  ;;  %9442 = vst [vmem:[#allocation165_spill] sm:$0xff] %v8013_v12 }
 0x63f   : > { %v4233_v54 = vpop.permute.xlu1 %4232  ;;  %v4231_v0 = vpop.permute.xlu0 %4230 }
 0x641   : > { %4444 = vrot.lane.b32.xlu1 %v9329_v47, %s4968_s16  ;;  %4442 = vrot.lane.b32.xlu0 %v9328_v42, %s4968_s16 }
 0x643   : > { %v4237_v49 = vpop.permute.xlu1 %4236  ;;  %v4235_v63 = vpop.permute.xlu0 %4234 }
 0x645   : > { %4448 = vrot.lane.b32.xlu1 %v9333_v7, %s4968_s16  ;;  %4446 = vrot.lane.b32.xlu0 %v9332_v55, %s4968_s16 }
 0x647   : > { %v4241_v31 = vpop.permute.xlu1 %4240  ;;  %v4239_v22 = vpop.permute.xlu0 %4238 }
 0x649   : > { %4452 = vrot.lane.b32.xlu1 %v9339_v18, %s4968_s16  ;;  %4450 = vrot.lane.b32.xlu0 %v9336_v15, %s4968_s16 }
 0x64b   : > { %v8031_v35 = vpop.permute.xlu1 %4244  ;;  %v8033_v47 = vpop.permute.xlu0 %4242 }
 0x64f   : > { %v8035_v42 = vpop.permute.xlu1 %4248  ;;  %v8037_v21 = vpop.permute.xlu0 %4246 }
 0x653   : > { %v8039_v7 = vpop.permute.xlu1 %4252  ;;  %v8041_v48 = vpop.permute.xlu0 %4250 }
 0x657   : > { %v8043_v55 = vpop.permute.xlu1 %4256  ;;  %v8045_v27 = vpop.permute.xlu0 %4254 }
 0x65b   : > { %v8047_v18 = vpop.permute.xlu1 %4260  ;;  %v8049_v62 = vpop.permute.xlu0 %4258 }
 0x65f   : > { %v8051_v15 = vpop.permute.xlu1 %4264  ;;  %v8053_v23 = vpop.permute.xlu0 %4262 }
 0x660   : > { %9443 = vst [vmem:[#allocation8_spill] sm:$0xff] %v8053_v23 }
 0x663   : > { %v8055_v28 = vpop.permute.xlu1 %4268  ;;  %v8057_v12 = vpop.permute.xlu0 %4266 }
 0x664   : > { %9444 = vst [vmem:[#allocation194_spill] sm:$0xff] %v8055_v28  ;;  %9445 = vst [vmem:[#allocation4_spill] sm:$0xff] %v8057_v12 }
 0x667   : > { %v8059_v34 = vpop.permute.xlu1 %4272  ;;  %v8061_v24 = vpop.permute.xlu0 %4270 }
 0x668   : > { %9446 = vst [vmem:[#allocation136_spill] sm:$0xff] %v8059_v34  ;;  %9447 = vst [vmem:[#allocation107_spill] sm:$0xff] %v8061_v24  ;;  %v9456_v34 = vld [vmem:[#allocation196_spill] sm:$0xff] }
 0x669   : > { %vm9457_vm3 = vnez %v9456_v34 }
 0x66a   : > { %v4039_v24 = vsel %vm9457_vm3, %v9371_v30, 0.0 }
 0x66b   : > { %v8063_v1 = vpop.permute.xlu1 %4276  ;;  %v8065_v57 = vpop.permute.xlu0 %4274 }
 0x66c   : > { %9448 = vst [vmem:[#allocation108_spill] sm:$0xff] %v8063_v1  ;;  %9449 = vst [vmem:[#allocation187_spill] sm:$0xff] %v8065_v57  ;;  %v4327_v1 = vsel %vm9457_vm3, %v4233_v54, 0.0 }
 0x66f   : > { %v8067_v9 = vpop.permute.xlu1 %4280  ;;  %v8069_v40 = vpop.permute.xlu0 %4278 }
 0x670   : > { %9450 = vst [vmem:[#allocation123_spill] sm:$0xff] %v8067_v9  ;;  %9451 = vst [vmem:[#allocation188_spill] sm:$0xff] %v8069_v40  ;;  %v4199_v40 = vadd.f32 %v7883_v13, %v4039_v24 }
 0x673   : > { %v8071_v32 = vpop.permute.xlu1 %4284  ;;  %v8073_v56 = vpop.permute.xlu0 %4282 }
 0x674   : > { %9452 = vst [vmem:[#allocation195_spill] sm:$0xff] %v8071_v32  ;;  %9453 = vst [vmem:[#allocation104_spill] sm:$0xff] %v8073_v56  ;;  %v4198_v56 = vadd.f32 %v7885_v59, %v9370_v61  ;;  %v4359_v32 = vadd.f32 %v4327_v1, %v4199_v40  ;;  %v9462_v61 = vld [vmem:[#allocation133_spill] sm:$0xff] }
 0x675   : > { %vm9463_vm5 = vnez %v9462_v61 }
 0x676   : > { %v4043_v59 = vsel %vm9463_vm5, %v9379_v37, 0.0 }
 0x677   : > { %v8075_v23 = vpop.permute.xlu1 %4288  ;;  %v8077_v28 = vpop.permute.xlu0 %4286 }
 0x678   : > { %9454 = vst [vmem:[#allocation125_spill] sm:$0xff] %v8075_v23  ;;  %9455 = vst [vmem:[#allocation189_spill] sm:$0xff] %v8077_v28  ;;  %v4358_v23 = vadd.f32 %v4231_v0, %v4198_v56  ;;  %v9460_v28 = vld [vmem:[#allocation131_spill] sm:$0xff] }
 0x679   : > { %vm9461_vm4 = vnez %v9460_v28 }
 0x67a   : > { %v4041_v12 = vsel %vm9461_vm4, %v9375_v43, 0.0  ;;  %v4329_v30 = vsel %vm9461_vm4, %v4237_v49, 0.0  ;;  %v9464_v43 = vld [vmem:[#allocation117_spill] sm:$0xff]  ;;  %v4203_v49 = vadd.f32 %v7899_v33, %v4043_v59  ;;  %vm9483_vm4 = vmmov %vm9480_vm2 }
 0x67b   : > { %v8084_v57 = vpop.permute.xlu1 %4292  ;;  %v8086_v9 = vpop.permute.xlu0 %4290  ;;  %v9469_v59 = vld [vmem:[#allocation81_spill] sm:$0xff] }
 0x67c   : > { %9458 = vst [vmem:[#allocation141_spill] sm:$0xff] %v8084_v57  ;;  %9459 = vst [vmem:[#allocation147_spill] sm:$0xff] %v8086_v9  ;;  %v4201_v57 = vadd.f32 %v7891_v53, %v4041_v12  ;;  %v4200_v9 = vadd.f32 %v7893_v52, %v9374_v51  ;;  %v4202_v53 = vadd.f32 %v7901_v38, %v9378_v17  ;;  %v4331_v51 = vsel %vm9463_vm5, %v4241_v31, 0.0 }
 0x67d   : > { %v4363_v28 = vadd.f32 %v4331_v51, %v4203_v49  ;;  %v4204_v31 = vadd.f32 %v7909_v45, %v9382_v60  ;;  %vm9470_vm10 = vnez %v9469_v59  ;;  %vm9484_vm5 = vmmov %vm9480_vm2 }
 0x67e   : > { %v4361_v56 = vadd.f32 %v4329_v30, %v4201_v57  ;;  %v4360_v40 = vadd.f32 %v4235_v63, %v4200_v9  ;;  %v9465_v9 = vld [vmem:[#allocation142_spill] sm:$0xff]  ;;  %v4362_v30 = vadd.f32 %v4239_v22, %v4202_v53 }
 0x67f   : > { %v4393_v34 = vpop.permute.xlu1 %4392  ;;  %v4391_v54 = vpop.permute.xlu0 %4390  ;;  %vm9466_vm6 = vnez %v9465_v9 }
 0x680   : > { %v4487_v13 = vadd.f32 %v4393_v34, %v4359_v32  ;;  %v4486_v24 = vadd.f32 %v4391_v54, %v4358_v23  ;;  %v4045_v63 = vsel %vm9466_vm6, %v9383_v36, 0.0  ;;  %v4333_v36 = vsel %vm9466_vm6, %v8031_v35, 0.0 }
 0x681   : > { %v4205_v38 = vadd.f32 %v7907_v6, %v4045_v63  ;;  %v4364_v6 = vadd.f32 %v8033_v47, %v4204_v31  ;;  %v4210_v31 = vadd.f32 %v7933_v26, %v9393_v10 }
 0x682   : > { %v4519_v1 = vadd.f32 %v9464_v43, %v4487_v13  ;;  %v4518_v0 = vadd.f32 %v9464_v43, %v4486_v24 }
 0x683   : > { %v4397_v52 = vpop.permute.xlu1 %4396  ;;  %v4395_v32 = vpop.permute.xlu0 %4394 }
 0x684   : > { %v4551_v12 = vmax.f32 %v4519_v1, 0.0  ;;  %v4550_v37 = vmax.f32 %v4518_v0, 0.0  ;;  %v4489_v57 = vadd.f32 %v4397_v52, %v4361_v56  ;;  %v4488_v23 = vadd.f32 %v4395_v32, %v4360_v40  ;;  %v9473_v32 = vld [vmem:[#allocation77_spill] sm:$0xff] }
 0x685   : > { %v4047_v56 = vsel %vm9470_vm10, %v9386_v46, 0.0  ;;  %v4365_v40 = vadd.f32 %v4333_v36, %v4205_v38  ;;  %v4206_v1 = vadd.f32 %v7917_v2, %v9385_v20  ;;  %v4335_v46 = vsel %vm9470_vm10, %v8035_v42, 0.0  ;;  %v8151_v20 = vld [vmem:[%s8339_s2] ss:$0 sm:$0xff] }
 0x686   : > { %4784 = vst.msk [vmem:[%s6583_s6 + $0x308] sm:$0xff] %vm9467_vm7, %v4551_v12  ;;  %v4521_v17 = vadd.f32 %v9464_v43, %v4489_v57  ;;  %v4520_v33 = vadd.f32 %v9464_v43, %v4488_v23  ;;  %v4207_v35 = vadd.f32 %v7915_v25, %v4047_v56  ;;  %vm9474_vm1 = vnez %v9473_v32  ;;  %vm9487_vm7 = vmmov %vm9480_vm2 }
 0x687   : > { %4783 = vst.msk [vmem:[%s6583_s6 + $0x300] sm:$0xff] %vm9468_vm8, %v4550_v37  ;;  %v4401_v22 = vpop.permute.xlu1 %4400  ;;  %v4399_v34 = vpop.permute.xlu0 %4398  ;;  %v4049_v12 = vsel %vm9474_vm1, %v9390_v5, 0.0  ;;  %v4366_v25 = vadd.f32 %v8037_v21, %v4206_v1  ;;  %v4208_v21 = vadd.f32 %v7925_v16, %v9389_v41  ;;  %v4337_v37 = vsel %vm9474_vm1, %v8039_v7, 0.0  ;;  %v9485_v1 = vld [vmem:[#allocation96_spill] sm:$0xff]  ;;  %vm9488_vm8 = vmmov %vm9480_vm2 }
 0x688   : > { %v4553_v54 = vmax.f32 %v4521_v17, 0.0  ;;  %v4552_v13 = vmax.f32 %v4520_v33, 0.0  ;;  %v4491_v24 = vadd.f32 %v4401_v22, %v4363_v28  ;;  %v4490_v61 = vadd.f32 %v4399_v34, %v4362_v30  ;;  %v9477_v17 = vld [vmem:[#allocation145_spill] sm:$0xff] }
 0x689   : > { %v4209_v5 = vadd.f32 %v7923_v29, %v4049_v12  ;;  %vm9478_vm13 = vnez %v9477_v17  ;;  %v4368_v29 = vadd.f32 %v8041_v48, %v4208_v21  ;;  %v4212_v56 = vadd.f32 %v7941_v14, %v9397_v4  ;;  %v9489_v12 = vld [vmem:[#allocation40_spill] sm:$0xff]  ;;  %v9496_v21 = vld [vmem:[#allocation29_spill] sm:$0xff] }
 0x68a   : > { %4786 = vst.msk [vmem:[%s6583_s6 + $0x318] sm:$0xff] %vm9471_vm12, %v4553_v54  ;;  %v4523_v60 = vadd.f32 %v9464_v43, %v4491_v24  ;;  %v4522_v45 = vadd.f32 %v9464_v43, %v4490_v61  ;;  %v4367_v43 = vadd.f32 %v4335_v46, %v4207_v35  ;;  %v4051_v33 = vsel %vm9478_vm13, %v9394_v19, 0.0  ;;  %v9481_v24 = vld [vmem:[#allocation154_spill] sm:$0xff]  ;;  %vm9493_vm12 = vmmov %vm9480_vm2 }
 0x68b   : > { %4785 = vst.msk [vmem:[%s6583_s6 + $0x310] sm:$0xff] %vm9472_vm14, %v4552_v13  ;;  %v4405_v47 = vpop.permute.xlu1 %4404  ;;  %v4403_v0 = vpop.permute.xlu0 %4402  ;;  %v4369_v38 = vadd.f32 %v4337_v37, %v4209_v5  ;;  %v4211_v7 = vadd.f32 %v7931_v11, %v4051_v33  ;;  %v4339_v19 = vsel %vm9478_vm13, %v8043_v55, 0.0  ;;  %vm9482_vm3 = vnez %v9481_v24  ;;  %vm9494_vm14 = vmmov %vm9480_vm2  ;;  %v9497_v37 = vld [vmem:[#allocation134_spill] sm:$0xff] }
 0x68c   : > { %v4555_v49 = vmax.f32 %v4523_v60, 0.0  ;;  %v4554_v53 = vmax.f32 %v4522_v45, 0.0  ;;  %v4493_v51 = vadd.f32 %v4405_v47, %v4365_v40  ;;  %v4492_v52 = vadd.f32 %v4403_v0, %v4364_v6 }
 0x68d   : > { %v4053_v61 = vsel %vm9482_vm3, %v9398_v3, 0.0  ;;  %v4371_v59 = vadd.f32 %v4339_v19, %v4211_v7  ;;  %v4370_v11 = vadd.f32 %v8045_v27, %v4210_v31  ;;  %v4341_v3 = vsel %vm9482_vm3, %v8047_v18, 0.0  ;;  %v9502_v31 = vld [vmem:[#allocation4_spill] sm:$0xff] }
 0x68e   : > { %4788 = vst.msk [vmem:[%s6583_s6 + $0x328] sm:$0xff] %vm9475_vm9, %v4555_v49  ;;  %v4525_v2 = vadd.f32 %v8151_v20, %v4493_v51  ;;  %v4524_v42 = vadd.f32 %v8151_v20, %v4492_v52  ;;  %v4213_v55 = vadd.f32 %v7939_v44, %v4053_v61  ;;  %vm9486_vm6 = vnez %v9485_v1  ;;  %vm9503_vm9 = vmmov %vm9480_vm2  ;;  %v9508_v61 = vld [vmem:[#allocation136_spill] sm:$0xff] }
 0x68f   : > { %4787 = vst.msk [vmem:[%s6583_s6 + $0x320] sm:$0xff] %vm9476_vm15, %v4554_v53  ;;  %v4409_v57 = vpop.permute.xlu1 %4408  ;;  %v4407_v23 = vpop.permute.xlu0 %4406  ;;  %v4055_v46 = vsel %vm9486_vm6, %v9402_v8, 0.0  ;;  %v4372_v44 = vadd.f32 %v8049_v62, %v4212_v56  ;;  %v4214_v0 = vadd.f32 %v7949_v50, %v9401_v39  ;;  %v4343_v8 = vsel %vm9486_vm6, %v8051_v15, 0.0  ;;  %v9495_v15 = vld [vmem:[#allocation132_spill] sm:$0xff]  ;;  %vm9504_vm15 = vmmov %vm9480_vm2 }
 0x690   : > { %v4557_v9 = vmax.f32 %v4525_v2, 0.0  ;;  %v4556_v63 = vmax.f32 %v4524_v42, 0.0  ;;  %v4495_v28 = vadd.f32 %v4409_v57, %v4367_v43  ;;  %v4494_v30 = vadd.f32 %v4407_v23, %v4366_v25  ;;  %v9490_v43 = vld [vmem:[#allocation94_spill] sm:$0xff]  ;;  %v9492_v42 = vld [vmem:[#allocation8_spill] sm:$0xff] }
 0x691   : > { %v4373_v47 = vadd.f32 %v4341_v3, %v4213_v55  ;;  %v4215_v18 = vadd.f32 %v7947_v58, %v4055_v46  ;;  %vm9491_vm10 = vnez %v9490_v43  ;;  %v4374_v58 = vadd.f32 %v9492_v42, %v4214_v0  ;;  %v9498_v23 = vld [vmem:[#allocation194_spill] sm:$0xff]  ;;  %v9517_v0 = vld [vmem:[#allocation108_spill] sm:$0xff]  ;;  %v9521_v42 = vld [vmem:[#allocation187_spill] sm:$0xff] }
 0x692   : > { %4790 = vst.msk [vmem:[%s6583_s6 + $0x338] sm:$0xff] %vm9479_vm11, %v4557_v9  ;;  %v4527_v41 = vadd.f32 %v8151_v20, %v4495_v28  ;;  %v4526_v16 = vadd.f32 %v8151_v20, %v4494_v30  ;;  %v4057_v25 = vsel %vm9491_vm10, %v9489_v12, 0.0  ;;  %v4216_v57 = vadd.f32 %v9497_v37, %v9496_v21  ;;  %vm9513_vm11 = vmmov %vm9480_vm2  ;;  %v9518_v12 = vld [vmem:[#allocation75_spill] sm:$0xff]  ;;  %v9519_v43 = vld [vmem:[#allocation168_spill] sm:$0xff] }
 0x693   : > { %4789 = vst.msk [vmem:[%s6583_s6 + $0x330] sm:$0xff] %vm9480_vm2, %v4556_v63  ;;  %v4413_v48 = vpop.permute.xlu1 %4412  ;;  %v4411_v36 = vpop.permute.xlu0 %4410  ;;  %v4375_v2 = vadd.f32 %v4343_v8, %v4215_v18  ;;  %v4217_v5 = vadd.f32 %v9495_v15, %v4057_v25  ;;  %v4345_v9 = vsel %vm9491_vm10, %v9498_v23, 0.0  ;;  %vm9520_vm3 = vnez %v9519_v43  ;;  %v9524_v15 = vld [vmem:[#allocation146_spill] sm:$0xff]  ;;  %v9526_v37 = vld [vmem:[#allocation156_spill] sm:$0xff]  ;;  %v9527_v23 = vld [vmem:[#allocation123_spill] sm:$0xff] }
 0x694   : > { %v4559_v22 = vmax.f32 %v4527_v41, 0.0  ;;  %v4558_v34 = vmax.f32 %v4526_v16, 0.0  ;;  %v4497_v54 = vadd.f32 %v4413_v48, %v4369_v38  ;;  %v4496_v13 = vadd.f32 %v4411_v36, %v4368_v29  ;;  %v9499_v29 = vld [vmem:[#allocation52_spill] sm:$0xff]  ;;  %v9500_v41 = vld [vmem:[#allocation157_spill] sm:$0xff]  ;;  %v9525_v21 = vld [vmem:[#allocation66_spill] sm:$0xff] }
 0x695   : > { %vm9501_vm1 = vnez %v9500_v41  ;;  %v4377_v7 = vadd.f32 %v4345_v9, %v4217_v5  ;;  %v4376_v19 = vadd.f32 %v9502_v31, %v4216_v57  ;;  %v4063_v25 = vsel %vm9520_vm3, %v9518_v12, 0.0  ;;  %v9529_v41 = vld [vmem:[#allocation166_spill] sm:$0xff]  ;;  %v9531_v31 = vld [vmem:[#allocation188_spill] sm:$0xff]  ;;  %v9548_v43 = vld [vmem:[#allocation189_spill] sm:$0xff] }
 0x696   : > { %4792 = vst.msk [vmem:[%s6583_s6 + $0x348] sm:$0xff] %vm9483_vm4, %v4559_v22  ;;  %v4529_v10 = vadd.f32 %v8151_v20, %v4497_v54  ;;  %v4528_v26 = vadd.f32 %v8151_v20, %v4496_v13  ;;  %v4059_v16 = vsel %vm9501_vm1, %v9499_v29, 0.0  ;;  %v9505_v22 = vld [vmem:[#allocation144_spill] sm:$0xff]  ;;  %v9506_v54 = vld [vmem:[#allocation42_spill] sm:$0xff]  ;;  %v9507_v13 = vld [vmem:[#allocation191_spill] sm:$0xff]  ;;  %v4223_v5 = vadd.f32 %v9524_v15, %v4063_v25 }
 0x697   : > { %4791 = vst.msk [vmem:[%s6583_s6 + $0x340] sm:$0xff] %vm9484_vm5, %v4558_v34  ;;  %v4417_v27 = vpop.permute.xlu1 %4416  ;;  %v4415_v40 = vpop.permute.xlu0 %4414  ;;  %v4219_v34 = vadd.f32 %v9505_v22, %v4059_v16  ;;  %v4218_v24 = vadd.f32 %v9507_v13, %v9506_v54  ;;  %vm9522_vm4 = vmmov %vm9480_vm2  ;;  %v4222_v57 = vadd.f32 %v9526_v37, %v9525_v21  ;;  %v4351_v9 = vsel %vm9520_vm3, %v9527_v23, 0.0  ;;  %v9528_v29 = vld [vmem:[#allocation84_spill] sm:$0xff]  ;;  %v9534_v22 = vld [vmem:[#allocation30_spill] sm:$0xff] }
 0x698   : > { %v4561_v6 = vmax.f32 %v4529_v10, 0.0  ;;  %v4560_v60 = vmax.f32 %v4528_v26, 0.0  ;;  %v4499_v45 = vadd.f32 %v4417_v27, %v4371_v59  ;;  %v4498_v35 = vadd.f32 %v4415_v40, %v4370_v11  ;;  %v9509_v27 = vld [vmem:[#allocation64_spill] sm:$0xff]  ;;  %v9510_v40 = vld [vmem:[#allocation163_spill] sm:$0xff]  ;;  %vm9523_vm5 = vmmov %vm9480_vm2 }
 0x699   : > { %v4347_v59 = vsel %vm9501_vm1, %v9508_v61, 0.0  ;;  %vm9511_vm13 = vnez %v9510_v40  ;;  %vm9530_vm6 = vnez %v9529_v41  ;;  %v9535_v54 = vld [vmem:[#allocation78_spill] sm:$0xff]  ;;  %v9536_v13 = vld [vmem:[#allocation193_spill] sm:$0xff]  ;;  %v9537_v61 = vld [vmem:[#allocation195_spill] sm:$0xff] }
 0x69a   : > { %4794 = vst.msk [vmem:[%s6583_s6 + $0x358] sm:$0xff] %vm9487_vm7, %v4561_v6  ;;  %v4531_v4 = vadd.f32 %v8151_v20, %v4499_v45  ;;  %v4530_v14 = vadd.f32 %v8151_v20, %v4498_v35  ;;  %v4061_v6 = vsel %vm9511_vm13, %v9509_v27, 0.0  ;;  %v9512_v45 = vld [vmem:[#allocation107_spill] sm:$0xff]  ;;  %v4349_v8 = vsel %vm9511_vm13, %v9517_v0, 0.0  ;;  %vm9532_vm7 = vmmov %vm9480_vm2  ;;  %v9538_v27 = vld [vmem:[#allocation186_spill] sm:$0xff] }
 0x69b   : > { %4793 = vst.msk [vmem:[%s6583_s6 + $0x350] sm:$0xff] %vm9488_vm8, %v4560_v60  ;;  %v4421_v62 = vpop.permute.xlu1 %4420  ;;  %v4419_v49 = vpop.permute.xlu0 %4418  ;;  %v4379_v60 = vadd.f32 %v4347_v59, %v4219_v34  ;;  %v4378_v35 = vadd.f32 %v9512_v45, %v4218_v24  ;;  %v4065_v16 = vsel %vm9530_vm6, %v9528_v29, 0.0  ;;  %vm9533_vm8 = vmmov %vm9480_vm2  ;;  %v4224_v24 = vadd.f32 %v9536_v13, %v9535_v54  ;;  %v9539_v40 = vld [vmem:[#allocation174_spill] sm:$0xff]  ;;  %v9541_v45 = vld [vmem:[#allocation104_spill] sm:$0xff] }
 0x69c   : > { %v4563_v53 = vmax.f32 %v4531_v4, 0.0  ;;  %v4562_v51 = vmax.f32 %v4530_v14, 0.0  ;;  %v4501_v52 = vadd.f32 %v4421_v62, %v4373_v47  ;;  %v4500_v32 = vadd.f32 %v4419_v49, %v4372_v44  ;;  %v9514_v47 = vld [vmem:[#allocation185_spill] sm:$0xff]  ;;  %v9515_v4 = vld [vmem:[#allocation54_spill] sm:$0xff]  ;;  %vm9549_vm1 = vmmov %vm9480_vm2 }
 0x69d   : > { %v4221_v44 = vadd.f32 %v9514_v47, %v4061_v6  ;;  %v9516_v14 = vld [vmem:[#allocation190_spill] sm:$0xff]  ;;  %v4225_v34 = vadd.f32 %v9534_v22, %v4065_v16  ;;  %v4353_v59 = vsel %vm9530_vm6, %v9537_v61, 0.0  ;;  %vm9540_vm10 = vnez %v9539_v40  ;;  %v9547_v0 = vld [vmem:[#allocation125_spill] sm:$0xff]  ;;  %vm9557_vm13 = vmmov %vm9549_vm1 }
 0x69e   : > { %4796 = vst.msk [vmem:[%s6583_s6 + $0x368] sm:$0xff] %vm9493_vm12, %v4563_v53  ;;  %v4533_v39 = vadd.f32 %v8151_v20, %v4501_v52  ;;  %v4532_v50 = vadd.f32 %v8151_v20, %v4500_v32  ;;  %v4220_v18 = vadd.f32 %v9516_v14, %v9515_v4  ;;  %v4067_v6 = vsel %vm9540_vm10, %v9538_v27, 0.0  ;;  %vm9542_vm12 = vmmov %vm9480_vm2  ;;  %v9544_v47 = vld [vmem:[#allocation18_spill] sm:$0xff]  ;;  %v9545_v4 = vld [vmem:[#allocation95_spill] sm:$0xff] }
 0x69f   : > { %4795 = vst.msk [vmem:[%s6583_s6 + $0x360] sm:$0xff] %vm9494_vm14, %v4562_v51  ;;  %v4425_v63 = vpop.permute.xlu1 %4424  ;;  %v4423_v28 = vpop.permute.xlu0 %4422  ;;  %vm9543_vm14 = vmmov %vm9480_vm2  ;;  %v9546_v14 = vld [vmem:[#allocation192_spill] sm:$0xff] }
 0x6a0   : > { %v4565_v30 = vmax.f32 %v4533_v39, 0.0  ;;  %v4564_v17 = vmax.f32 %v4532_v50, 0.0  ;;  %v4503_v33 = vadd.f32 %v4425_v63, %v4375_v2  ;;  %v4502_v38 = vadd.f32 %v4423_v28, %v4374_v58 }
 0x6a1   : > { %v4381_v2 = vadd.f32 %v4349_v8, %v4221_v44  ;;  %v4380_v58 = vadd.f32 %v9521_v42, %v4220_v18  ;;  %v4227_v44 = vadd.f32 %v9544_v47, %v4067_v6  ;;  %v4226_v18 = vadd.f32 %v9546_v14, %v9545_v4 }
 0x6a2   : > { %4798 = vst.msk [vmem:[%s6583_s6 + $0x378] sm:$0xff] %vm9503_vm9, %v4565_v30  ;;  %v4535_v48 = vadd.f32 %v8151_v20, %v4503_v33  ;;  %v4534_v36 = vadd.f32 %v8151_v20, %v4502_v38  ;;  %v4355_v8 = vsel %vm9540_vm10, %v9547_v0, 0.0  ;;  %vm9550_vm9 = vmmov %vm9549_vm1 }
 0x6a3   : > { %4797 = vst.msk [vmem:[%s6583_s6 + $0x370] sm:$0xff] %vm9504_vm15, %v4564_v17  ;;  %v4429_v11 = vpop.permute.xlu1 %4428  ;;  %v4427_v10 = vpop.permute.xlu0 %4426  ;;  %v4387_v12 = vadd.f32 %v4355_v8, %v4227_v44  ;;  %v4386_v25 = vadd.f32 %v9548_v43, %v4226_v18  ;;  %vm9556_vm15 = vmmov %vm9549_vm1 }
 0x6a4   : > { %v4567_v26 = vmax.f32 %v4535_v48, 0.0  ;;  %v4566_v55 = vmax.f32 %v4534_v36, 0.0  ;;  %v4505_v56 = vadd.f32 %v4429_v11, %v4377_v7  ;;  %v4504_v3 = vadd.f32 %v4427_v10, %v4376_v19 }
 0x6a5   : > { %v4383_v7 = vadd.f32 %v4351_v9, %v4223_v5  ;;  %v4382_v19 = vadd.f32 %v9531_v31, %v4222_v57  ;;  %v9553_v9 = vld [vmem:[#allocation158_spill] sm:$0xff] }
 0x6a6   : > { %4800 = vst.msk [vmem:[%s6583_s6 + $0x388] sm:$0xff] %vm9513_vm11, %v4567_v26  ;;  %v4537_v1 = vadd.f32 %v8151_v20, %v4505_v56  ;;  %v4536_v46 = vadd.f32 %v8151_v20, %v4504_v3 }
 0x6a7   : > { %4799 = vst.msk [vmem:[%s6583_s6 + $0x380] sm:$0xff] %vm9480_vm2, %v4566_v55  ;;  %v4433_v62 = vpop.permute.xlu1 %4432  ;;  %v4431_v49 = vpop.permute.xlu0 %4430 }
 0x6a8   : > { %v4569_v53 = vmax.f32 %v4537_v1, 0.0  ;;  %v4568_v51 = vmax.f32 %v4536_v46, 0.0  ;;  %v4507_v52 = vadd.f32 %v4433_v62, %v4379_v60  ;;  %v4506_v32 = vadd.f32 %v4431_v49, %v4378_v35 }
 0x6a9   : > { %v4385_v60 = vadd.f32 %v4353_v59, %v4225_v34  ;;  %v4384_v35 = vadd.f32 %v9541_v45, %v4224_v24 }
 0x6aa   : > { %4802 = vst.msk [vmem:[%s6583_s6 + $0x398] sm:$0xff] %vm9522_vm4, %v4569_v53  ;;  %v4539_v39 = vadd.f32 %v8151_v20, %v4507_v52  ;;  %v4538_v50 = vadd.f32 %v8151_v20, %v4506_v32 }
 0x6ab   : > { %4801 = vst.msk [vmem:[%s6583_s6 + $0x390] sm:$0xff] %vm9523_vm5, %v4568_v51  ;;  %v4437_v63 = vpop.permute.xlu1 %4436  ;;  %v4435_v28 = vpop.permute.xlu0 %4434 }
 0x6ac   : > { %v4571_v30 = vmax.f32 %v4539_v39, 0.0  ;;  %v4570_v17 = vmax.f32 %v4538_v50, 0.0  ;;  %v4509_v33 = vadd.f32 %v4437_v63, %v4381_v2  ;;  %v4508_v38 = vadd.f32 %v4435_v28, %v4380_v58  ;;  %v9551_v58 = vld [vmem:[#allocation141_spill] sm:$0xff] }
 0x6ad   : > { %v4357_v50 = vsel %vm9437_vm0, %v9551_v58, 0.0  ;;  %v9554_v28 = vld [vmem:[#allocation165_spill] sm:$0xff]  ;;  %vm9558_vm0 = vmmov %vm9549_vm1 }
 0x6ae   : > { %4804 = vst.msk [vmem:[%s6583_s6 + $0x3a8] sm:$0xff] %vm9532_vm7, %v4571_v30  ;;  %v4541_v48 = vadd.f32 %v8151_v20, %v4509_v33  ;;  %v4540_v36 = vadd.f32 %v8151_v20, %v4508_v38  ;;  %v4389_v63 = vadd.f32 %v4357_v50, %v9553_v9  ;;  %v9555_v30 = vld [vmem:[#allocation147_spill] sm:$0xff]  ;;  %vm9559_vm11 = vmmov %vm9558_vm0 }
 0x6af   : > { %4803 = vst.msk [vmem:[%s6583_s6 + $0x3a0] sm:$0xff] %vm9533_vm8, %v4570_v17  ;;  %v4441_v11 = vpop.permute.xlu1 %4440  ;;  %v4439_v10 = vpop.permute.xlu0 %4438  ;;  %v4388_v17 = vadd.f32 %v9555_v30, %v9554_v28  ;;  %vm9560_vm2 = vmmov %vm9558_vm0 }
 0x6b0   : > { %v4573_v26 = vmax.f32 %v4541_v48, 0.0  ;;  %v4572_v55 = vmax.f32 %v4540_v36, 0.0  ;;  %v4511_v56 = vadd.f32 %v4441_v11, %v4383_v7  ;;  %v4510_v3 = vadd.f32 %v4439_v10, %v4382_v19  ;;  %vm9561_vm3 = vmmov %vm9558_vm0 }
 0x6b2   : > { %4806 = vst.msk [vmem:[%s6583_s6 + $0x3b8] sm:$0xff] %vm9542_vm12, %v4573_v26  ;;  %v4543_v1 = vadd.f32 %v8151_v20, %v4511_v56  ;;  %v4542_v46 = vadd.f32 %v8151_v20, %v4510_v3 }
 0x6b3   : > { %4805 = vst.msk [vmem:[%s6583_s6 + $0x3b0] sm:$0xff] %vm9543_vm14, %v4572_v55  ;;  %v4445_v62 = vpop.permute.xlu1 %4444  ;;  %v4443_v49 = vpop.permute.xlu0 %4442 }
 0x6b4   : > { %v4575_v53 = vmax.f32 %v4543_v1, 0.0  ;;  %v4574_v51 = vmax.f32 %v4542_v46, 0.0  ;;  %v4513_v52 = vadd.f32 %v4445_v62, %v4385_v60  ;;  %v4512_v32 = vadd.f32 %v4443_v49, %v4384_v35 }
 0x6b6   : > { %4808 = vst.msk [vmem:[%s6583_s6 + $0x3c8] sm:$0xff] %vm9549_vm1, %v4575_v53  ;;  %v4545_v2 = vadd.f32 %v8151_v20, %v4513_v52  ;;  %v4544_v42 = vadd.f32 %v8151_v20, %v4512_v32 }
 0x6b7   : > { %4807 = vst.msk [vmem:[%s6583_s6 + $0x3c0] sm:$0xff] %vm9550_vm9, %v4574_v51  ;;  %v4449_v15 = vpop.permute.xlu1 %4448  ;;  %v4447_v5 = vpop.permute.xlu0 %4446 }
 0x6b8   : > { %v4577_v21 = vmax.f32 %v4545_v2, 0.0  ;;  %v4576_v37 = vmax.f32 %v4544_v42, 0.0  ;;  %v4515_v57 = vadd.f32 %v4449_v15, %v4387_v12  ;;  %v4514_v23 = vadd.f32 %v4447_v5, %v4386_v25 }
 0x6ba   : > { %4810 = vst.msk [vmem:[%s6583_s6 + $0x3d8] sm:$0xff] %vm9556_vm15, %v4577_v21  ;;  %v4547_v33 = vadd.f32 %v8151_v20, %v4515_v57  ;;  %v4546_v38 = vadd.f32 %v8151_v20, %v4514_v23 }
 0x6bb   : > { %4809 = vst.msk [vmem:[%s6583_s6 + $0x3d0] sm:$0xff] %vm9557_vm13, %v4576_v37  ;;  %v4453_v29 = vpop.permute.xlu1 %4452  ;;  %v4451_v41 = vpop.permute.xlu0 %4450 }
 0x6bc   : > { %v4579_v16 = vmax.f32 %v4547_v33, 0.0  ;;  %v4578_v7 = vmax.f32 %v4546_v38, 0.0  ;;  %v4517_v31 = vadd.f32 %v4453_v29, %v4389_v63  ;;  %v4516_v19 = vadd.f32 %v4451_v41, %v4388_v17 }
 0x6be   : > { %4812 = vst.msk [vmem:[%s6583_s6 + $0x3e8] sm:$0xff] %vm9558_vm0, %v4579_v16  ;;  %v4549_v48 = vadd.f32 %v8151_v20, %v4517_v31  ;;  %v4548_v36 = vadd.f32 %v8151_v20, %v4516_v19 }
 0x6bf   : > { %4811 = vst.msk [vmem:[%s6583_s6 + $0x3e0] sm:$0xff] %vm9559_vm11, %v4578_v7 }
 0x6c0   : > { %v4581_v22 = vmax.f32 %v4549_v48, 0.0  ;;  %v4580_v34 = vmax.f32 %v4548_v36, 0.0 }
 0x6c2   : > { %4814 = vst.msk [vmem:[%s6583_s6 + $0x3f8] sm:$0xff] %vm9560_vm2, %v4581_v22 }
 0x6c3   : > { %4813 = vst.msk [vmem:[%s6583_s6 + $0x3f0] sm:$0xff] %vm9561_vm3, %v4580_v34 }
 0x6c4 PF: > { %s13_s12 = sadd.s32 1, %s4954_s12  }
 0x6c5   : > { %p10_p4 = scmp.ge.s32.totalorder %s13_s12, 4  }
 0x6c7   :  { %12 = sbr.rel (!%p10_p4) target bundleno = 1 (0x1), region = 65 }

</bundles_post_ra>
